<compile_context>
chip_gen: v6e
topology: v6e:2x2x1
jax: 0.10.0
libtpu: 0.0.40
codegen_flags: <defaults>
</compile_context>

<pallas_src>
import jax
import jax.numpy as jnp
from jax.experimental import pallas as pl
from jax.experimental.pallas import tpu as pltpu


# ------------------------------ fused kernel ------------------------------- #

def _make_kernel(H, W, Cin, P, Cout, stride, has_ds, Wp, OFF):
    """Build the fused BottleNeck2 kernel (one NHWC image per grid step)."""
    Ho = (H - 1) // stride + 1      # 3x3 conv, padding=1
    Wo = (W - 1) // stride + 1

    def body(x_ref, s1_ref, b1_ref, w1_ref, b2_ref, w2_ref, b3_ref,
             w3_ref, wds_ref, bds_ref, o_ref, hp_ref):
        # --- BN1 + ReLU (f32 VPU), then conv1 (1x1) as one MXU matmul (s2 folded in w1).
        xm = x_ref[0].reshape(H * W, Cin)                        # raw input rows, f32
        a = jnp.maximum(xm * s1_ref[...] + b1_ref[...], 0.0)
        h1 = jnp.dot(a.astype(jnp.bfloat16), w1_ref[...],
                     preferred_element_type=jnp.float32)
        h1 = jnp.maximum(h1 + b2_ref[...], 0.0)                  # BN2 + ReLU

        # --- Zero only the halo BORDER (cheap): rows 0 and H+1, columns OFF-1 and
        #     OFF+W.  The interior is fully overwritten below, so no full clear.
        hp_ref[0:1, :, :] = jnp.zeros((1, Wp, P), jnp.bfloat16)
        hp_ref[H + 1:H + 2, :, :] = jnp.zeros((1, Wp, P), jnp.bfloat16)
        hp_ref[1:H + 1, OFF - 1:OFF, :] = jnp.zeros((H, 1, P), jnp.bfloat16)
        hp_ref[1:H + 1, OFF + W:OFF + W + 1, :] = jnp.zeros((H, 1, P), jnp.bfloat16)

        # --- Stash h1 (bf16) at a sublane-aligned interior offset (OFF = 8):
        #     the big store (and the center tap read) are dense, unmasked.
        hp_ref[1:H + 1, OFF:OFF + W, :] = h1.astype(jnp.bfloat16).reshape(H, W, P)

        # --- conv2 (3x3, pad=1, stride) = 9 shifted matmuls accumulated in f32.
        # TODO(synk): on v6e/v7x, fold taps into K=3P (or K=9P im2col) matmuls to
        # fill the 256-deep MXU; K=P is kept since it is the v5e-optimal shape.
        acc = jnp.zeros((Ho * Wo, P), jnp.float32)
        for k in range(9):
            dy, dx = divmod(k, 3)
            c0 = OFF - 1 + dx
            if stride == 1:
                patch = hp_ref[dy:dy + Ho, c0:c0 + Wo, :]
            else:
                # TODO(synk): phase-split hp for stride=2 to avoid strided XLU reads.
                patch = hp_ref[pl.ds(dy, Ho, stride), pl.ds(c0, Wo, stride), :]
            acc = acc + jnp.dot(patch.reshape(Ho * Wo, P), w2_ref[k],
                                preferred_element_type=jnp.float32)
        t = jnp.maximum(acc + b3_ref[...], 0.0)                  # BN3 + ReLU

        # --- conv3 (1x1) + shortcut.
        out = jnp.dot(t.astype(jnp.bfloat16), w3_ref[...],
                      preferred_element_type=jnp.float32)
        if has_ds:
            if stride == 1:
                xs = xm
            else:
                xs = x_ref[0, pl.ds(0, Ho, stride),
                           pl.ds(0, Wo, stride), :].reshape(Ho * Wo, Cin)
            ident = jnp.dot(xs.astype(jnp.bfloat16), wds_ref[...],
                            preferred_element_type=jnp.float32)
            out = out + ident + bds_ref[...]                     # folded BN_ds bias
        else:
            out = out + xm                                       # plain identity add
        o_ref[0] = out                                           # flat, lane-dense store

    if has_ds:
        kernel = body
    else:
        def kernel(x_ref, s1_ref, b1_ref, w1_ref, b2_ref, w2_ref, b3_ref,
                   w3_ref, o_ref, hp_ref):
            body(x_ref, s1_ref, b1_ref, w1_ref, b2_ref, w2_ref, b3_ref,
                 w3_ref, None, None, o_ref, hp_ref)
    return kernel, Ho, Wo


# ------------------------------- host glue --------------------------------- #

def _fold_bn(gamma, beta, mean, var, eps=1e-5):
    scale = gamma / jnp.sqrt(var + eps)
    bias = beta - mean * scale
    return scale.reshape(1, -1), bias.reshape(1, -1)


def _rup(n, m):
    return ((n + m - 1) // m) * m


def _pad2(a, rows, cols):
    return jnp.pad(a, ((0, rows - a.shape[0]), (0, cols - a.shape[1])))


def bottleneck2_forward(x, params, stride=1, opt=0):
    """x: (N, H, W, Cin) float32 NHWC; returns (N, Ho, Wo, 4*planes) float32."""
    N, H, W, cin = x.shape
    planes = params["w1"].shape[1]
    cout = planes * 4

    LANE = 128
    Cin, P, Cout = _rup(cin, LANE), _rup(planes, LANE), _rup(cout, LANE)

    s1, b1 = _fold_bn(*params["bn1"])
    s2, b2 = _fold_bn(*params["bn2"])
    s3, b3 = _fold_bn(*params["bn3"])

    # Fold BN scales into weight columns; biases stay as in-kernel adds.
    w1 = params["w1"] * s2                                        # (cin, planes)
    w2 = (params["w2"] * s3.reshape(1, 1, 1, planes)).reshape(9, planes, planes)
    w3 = params["w3"]                                             # (planes, cout)

    # Zero-pad channel dims to lane-dense multiples of 128 (pads are exact zeros;
    # padded output columns are sliced off at the end).
    x_p = jnp.pad(x, ((0, 0), (0, 0), (0, 0), (0, Cin - cin)))
    s1p = _pad2(s1, 1, Cin)
    b1p = _pad2(b1, 1, Cin)
    w1p = _pad2(w1, Cin, P).astype(jnp.bfloat16)
    b2p = _pad2(b2, 1, P)
    w2p = jnp.pad(w2, ((0, 0), (0, P - planes), (0, P - planes))).astype(jnp.bfloat16)
    b3p = _pad2(b3, 1, P)
    w3p = _pad2(w3, P, Cout).astype(jnp.bfloat16)

    has_ds = (opt != 0)
    if has_ds:
        sds, bds = _fold_bn(*params["bnds"])
        wdsp = _pad2(params["wds"] * sds, Cin, Cout).astype(jnp.bfloat16)
        bdsp = _pad2(bds, 1, Cout)
    else:
        assert stride == 1 and cin == cout, "identity shortcut needs matching shapes"

    # Halo scratch layout: interior starts at sublane-aligned column OFF=8,
    # left halo at column OFF-1, right halo at column OFF+W.
    OFF = 8
    Wp = _rup(W + OFF + 1, 8)

    kernel, Ho, Wo = _make_kernel(H, W, Cin, P, Cout, stride, has_ds, Wp, OFF)

    inputs = [x_p, s1p, b1p, w1p, b2p, w2p, b3p, w3p]
    const_shapes = [(1, Cin), (1, Cin), (Cin, P), (1, P), (9, P, P), (1, P), (P, Cout)]
    if has_ds:
        inputs += [wdsp, bdsp]
        const_shapes += [(Cin, Cout), (1, Cout)]

    def _build_in_specs(single_buffer_weights):
        specs = [pl.BlockSpec((1, H, W, Cin), lambda n: (n, 0, 0, 0))]
        for shp in const_shapes:
            imap = (lambda nd: (lambda n: (0,) * nd))(len(shp))
            if single_buffer_weights:
                # Constant index map -> fetch once, keep a single resident copy.
                specs.append(pl.BlockSpec(shp, imap, pipeline_mode=pl.Buffered(1)))
            else:
                specs.append(pl.BlockSpec(shp, imap))
        return specs

    # Advisory cost estimate so XLA schedules the surrounding host ops sensibly.
    Mi, Mo = N * H * W, N * Ho * Wo
    flops = 2 * Mi * Cin * P + 2 * Mo * (9 * P * P + P * Cout)
    if has_ds:
        flops += 2 * Mo * Cin * Cout
    w_bytes = 2 * (w1p.size + w2p.size + w3p.size) + (2 * wdsp.size if has_ds else 0)
    bytes_accessed = 4 * (x_p.size + Mo * Cout) + w_bytes

    # Derive the VMEM budget from the device: ~75% of capacity, capped at 100 MiB
    # (=> ~96 MiB on v5e/v6e, ~48 MiB on v7x's 64 MiB VMEM).
    try:
        vmem_limit = min(int(0.75 * pltpu.get_tpu_info().vmem_capacity_bytes),
                         100 * 1024 * 1024)
    except Exception:
        vmem_limit = 48 * 1024 * 1024

    def _run(single_buffer_weights):
        return pl.pallas_call(
            kernel,
            out_shape=jax.ShapeDtypeStruct((N, Ho * Wo, Cout), jnp.float32),
            grid=(N,),
            in_specs=_build_in_specs(single_buffer_weights),
            out_specs=pl.BlockSpec((1, Ho * Wo, Cout), lambda n: (n, 0, 0)),
            scratch_shapes=[pltpu.VMEM((H + 2, Wp, P), jnp.bfloat16)],
            compiler_params=pltpu.CompilerParams(
                dimension_semantics=("parallel",),
                vmem_limit_bytes=vmem_limit),
            cost_estimate=pl.CostEstimate(flops=int(flops), transcendentals=0,
                                          bytes_accessed=int(bytes_accessed)),
        )(*inputs)

    try:
        out = _run(True)
    except Exception:
        # This jax build rejects pipeline_mode=pl.Buffered on pallas_call specs;
        # fall back to default double-buffering (correct, just more VMEM).
        out = _run(False)

    return out.reshape(N, Ho, Wo, Cout)[..., :cout]


# ---------------------------- reference & setup ----------------------------- #

def _ref_forward(x, params, stride, opt):
    def bn(v, p):
        gamma, beta, mean, var = p
        return gamma * (v - mean) / jnp.sqrt(var + 1e-5) + beta

    def conv1x1(v, w, s=1):
        return jax.lax.conv_general_dilated(
            v, w.reshape(1, 1, *w.shape), (s, s), "VALID",
            dimension_numbers=("NHWC", "HWIO", "NHWC"))

    h = jnp.maximum(bn(x, params["bn1"]), 0.0)
    h = conv1x1(h, params["w1"])
    h = jnp.maximum(bn(h, params["bn2"]), 0.0)
    h = jax.lax.conv_general_dilated(
        h, params["w2"], (stride, stride), ((1, 1), (1, 1)),
        dimension_numbers=("NHWC", "HWIO", "NHWC"))
    h = jnp.maximum(bn(h, params["bn3"]), 0.0)
    h = conv1x1(h, params["w3"])
    if opt != 0:
        ident = bn(conv1x1(x, params["wds"], stride), params["bnds"])
    else:
        ident = x
    return h + ident


def make_params(key, in_planes, planes, opt):
    expansion = 4
    ks = jax.random.split(key, 8)

    def bn_params(k, c):
        k1, k2, k3, k4 = jax.random.split(k, 4)
        gamma = 1.0 + 0.1 * jax.random.normal(k1, (c,), jnp.float32)
        beta = 0.1 * jax.random.normal(k2, (c,), jnp.float32)
        mean = 0.1 * jax.random.normal(k3, (c,), jnp.float32)
        var = jax.random.uniform(k4, (c,), jnp.float32, minval=0.5, maxval=1.5)
        return (gamma, beta, mean, var)

    params = {
        "bn1": bn_params(ks[0], in_planes),
        "w1": 0.1 * jax.random.normal(ks[1], (in_planes, planes), jnp.float32),
        "bn2": bn_params(ks[2], planes),
        "w2": 0.1 * jax.random.normal(ks[3], (3, 3, planes, planes), jnp.float32),
        "bn3": bn_params(ks[4], planes),
        "w3": 0.1 * jax.random.normal(ks[5], (planes, planes * expansion), jnp.float32),
    }
    if opt != 0:
        params["wds"] = 0.1 * jax.random.normal(
            ks[6], (in_planes, planes * expansion), jnp.float32)
        params["bnds"] = bn_params(ks[7], planes * expansion)
    return params


if __name__ == "__main__":
    key = jax.random.PRNGKey(0)
    k_x, k_p1, k_p0 = jax.random.split(key, 3)

    N, H, W = 2, 8, 8
    in_planes, planes = 32, 8          # cout = 4*planes = 32 == in_planes (opt=0 valid)

    x = jax.random.normal(k_x, (N, H, W, in_planes), jnp.float32)
    TOL = 5e-2                          # bf16-MXU matmuls vs f32 reference

    # Variant 1: projection shortcut (opt != 0), stride=1.
    params1 = make_params(k_p1, in_planes, planes, opt=1)
    out1 = jax.block_until_ready(bottleneck2_forward(x, params1, stride=1, opt=1))
    ref1 = _ref_forward(x, params1, 1, 1)
    assert out1.shape == ref1.shape, (out1.shape, ref1.shape)
    err1 = float(jnp.max(jnp.abs(out1 - ref1)))
    assert err1 < TOL, f"opt=1 mismatch vs reference: {err1}"

    # Variant 2: identity shortcut (opt == 0), stride=1.
    params0 = make_params(k_p0, in_planes, planes, opt=0)
    out0 = jax.block_until_ready(bottleneck2_forward(x, params0, stride=1, opt=0))
    ref0 = _ref_forward(x, params0, 1, 0)
    assert out0.shape == ref0.shape, (out0.shape, ref0.shape)
    err0 = float(jnp.max(jnp.abs(out0 - ref0)))
    assert err0 < TOL, f"opt=0 mismatch vs reference: {err0}"

    print("KERNEL_OK")
</pallas_src>

<mosaic_0001>
module attributes {stable_mosaic.version = 11 : i64} {
  func.func @body(%arg0: i32, %arg1: memref<1x8x8x128xf32, #tpu.memory_space<vmem>>, %arg2: memref<1x128xf32, #tpu.memory_space<vmem>>, %arg3: memref<1x128xf32, #tpu.memory_space<vmem>>, %arg4: memref<128x128xbf16, #tpu.memory_space<vmem>>, %arg5: memref<1x128xf32, #tpu.memory_space<vmem>>, %arg6: memref<9x128x128xbf16, #tpu.memory_space<vmem>>, %arg7: memref<1x128xf32, #tpu.memory_space<vmem>>, %arg8: memref<128x128xbf16, #tpu.memory_space<vmem>>, %arg9: memref<128x128xbf16, #tpu.memory_space<vmem>>, %arg10: memref<1x128xf32, #tpu.memory_space<vmem>>, %arg11: memref<1x64x128xf32, #tpu.memory_space<vmem>>, %arg12: memref<10x24x128xbf16, #tpu.memory_space<vmem>>) attributes {dimension_semantics = [#tpu.dimension_semantics<parallel>], iteration_bounds = array<i64: 2>, scalar_prefetch = 0 : i64, scratch_operands = 1 : i64, tpu.core_type = #tpu.core_type<tc>, window_params = [{transform_indices = @transform_0, window_bounds = array<i64: 1, 8, 8, 128>}, {pipeline_mode = #tpu.pipeline_mode<synchronous>, transform_indices = @transform_1, window_bounds = array<i64: 1, 128>}, {pipeline_mode = #tpu.pipeline_mode<synchronous>, transform_indices = @transform_2, window_bounds = array<i64: 1, 128>}, {pipeline_mode = #tpu.pipeline_mode<synchronous>, transform_indices = @transform_3, window_bounds = array<i64: 128, 128>}, {pipeline_mode = #tpu.pipeline_mode<synchronous>, transform_indices = @transform_4, window_bounds = array<i64: 1, 128>}, {pipeline_mode = #tpu.pipeline_mode<synchronous>, transform_indices = @transform_5, window_bounds = array<i64: 9, 128, 128>}, {pipeline_mode = #tpu.pipeline_mode<synchronous>, transform_indices = @transform_6, window_bounds = array<i64: 1, 128>}, {pipeline_mode = #tpu.pipeline_mode<synchronous>, transform_indices = @transform_7, window_bounds = array<i64: 128, 128>}, {pipeline_mode = #tpu.pipeline_mode<synchronous>, transform_indices = @transform_8, window_bounds = array<i64: 128, 128>}, {pipeline_mode = #tpu.pipeline_mode<synchronous>, transform_indices = @transform_9, window_bounds = array<i64: 1, 128>}, {transform_indices = @transform_10, window_bounds = array<i64: 1, 64, 128>}]} {
    %c0 = arith.constant 0 : index
    %c0_0 = arith.constant 0 : index
    %c0_1 = arith.constant 0 : index
    %c0_2 = arith.constant 0 : index
    %0 = vector.load %arg1[%c0, %c0_0, %c0_1, %c0_2] : memref<1x8x8x128xf32, #tpu.memory_space<vmem>>, vector<1x8x8x128xf32>
    %1 = vector.shape_cast %0 : vector<1x8x8x128xf32> to vector<8x8x128xf32>
    %2 = vector.shape_cast %1 : vector<8x8x128xf32> to vector<64x128xf32>
    %c0_3 = arith.constant 0 : index
    %c0_4 = arith.constant 0 : index
    %3 = vector.load %arg2[%c0_3, %c0_4] : memref<1x128xf32, #tpu.memory_space<vmem>>, vector<1x128xf32>
    %4 = vector.broadcast %3 : vector<1x128xf32> to vector<64x128xf32>
    %5 = arith.mulf %2, %4 : vector<64x128xf32>
    %c0_5 = arith.constant 0 : index
    %c0_6 = arith.constant 0 : index
    %6 = vector.load %arg3[%c0_5, %c0_6] : memref<1x128xf32, #tpu.memory_space<vmem>>, vector<1x128xf32>
    %7 = vector.broadcast %6 : vector<1x128xf32> to vector<64x128xf32>
    %8 = arith.addf %5, %7 : vector<64x128xf32>
    %cst = arith.constant 0.000000e+00 : f32
    %9 = vector.broadcast %cst : f32 to vector<64x128xf32>
    %10 = arith.maximumf %8, %9 : vector<64x128xf32>
    %11 = arith.truncf %10 : vector<64x128xf32> to vector<64x128xbf16>
    %c0_7 = arith.constant 0 : index
    %c0_8 = arith.constant 0 : index
    %12 = vector.load %arg4[%c0_7, %c0_8] : memref<128x128xbf16, #tpu.memory_space<vmem>>, vector<128x128xbf16>
    %cst_9 = arith.constant dense<0.000000e+00> : vector<64x128xf32>
    %13 = tpu.matmul %11, %12, %cst_9 {dimension_numbers = #tpu.dot_dimension_numbers<[1], [0], [0], [1], [0, 0, 1, 1], [], []>} : vector<64x128xbf16>, vector<128x128xbf16>, vector<64x128xf32> -> vector<64x128xf32>
    %c0_10 = arith.constant 0 : index
    %c0_11 = arith.constant 0 : index
    %14 = vector.load %arg5[%c0_10, %c0_11] : memref<1x128xf32, #tpu.memory_space<vmem>>, vector<1x128xf32>
    %15 = vector.broadcast %14 : vector<1x128xf32> to vector<64x128xf32>
    %16 = arith.addf %13, %15 : vector<64x128xf32>
    %cst_12 = arith.constant 0.000000e+00 : f32
    %17 = vector.broadcast %cst_12 : f32 to vector<64x128xf32>
    %18 = arith.maximumf %16, %17 : vector<64x128xf32>
    %cst_13 = arith.constant 0.000000e+00 : bf16
    %19 = vector.broadcast %cst_13 : bf16 to vector<1x24x128xbf16>
    %c0_14 = arith.constant 0 : index
    %c0_15 = arith.constant 0 : index
    %c0_16 = arith.constant 0 : index
    %20 = vector.load %arg12[%c0_14, %c0_15, %c0_16] : memref<10x24x128xbf16, #tpu.memory_space<vmem>>, vector<1x24x128xbf16>
    tpu.vector_store %arg12[%c0_14, %c0_15, %c0_16], %19 {strides = array<i32>} : memref<10x24x128xbf16, #tpu.memory_space<vmem>>, vector<1x24x128xbf16>,
    %cst_17 = arith.constant 0.000000e+00 : bf16
    %21 = vector.broadcast %cst_17 : bf16 to vector<1x24x128xbf16>
    %c9 = arith.constant 9 : index
    %c0_18 = arith.constant 0 : index
    %c0_19 = arith.constant 0 : index
    %22 = vector.load %arg12[%c9, %c0_18, %c0_19] : memref<10x24x128xbf16, #tpu.memory_space<vmem>>, vector<1x24x128xbf16>
    tpu.vector_store %arg12[%c9, %c0_18, %c0_19], %21 {strides = array<i32>} : memref<10x24x128xbf16, #tpu.memory_space<vmem>>, vector<1x24x128xbf16>,
    %cst_20 = arith.constant 0.000000e+00 : bf16
    %23 = vector.broadcast %cst_20 : bf16 to vector<8x1x128xbf16>
    %c1 = arith.constant 1 : index
    %c7 = arith.constant 7 : index
    %c0_21 = arith.constant 0 : index
    %24 = vector.load %arg12[%c1, %c7, %c0_21] : memref<10x24x128xbf16, #tpu.memory_space<vmem>>, vector<8x1x128xbf16>
    tpu.vector_store %arg12[%c1, %c7, %c0_21], %23 {strides = array<i32>} : memref<10x24x128xbf16, #tpu.memory_space<vmem>>, vector<8x1x128xbf16>,
    %cst_22 = arith.constant 0.000000e+00 : bf16
    %25 = vector.broadcast %cst_22 : bf16 to vector<8x1x128xbf16>
    %c1_23 = arith.constant 1 : index
    %c16 = arith.constant 16 : index
    %c0_24 = arith.constant 0 : index
    %26 = vector.load %arg12[%c1_23, %c16, %c0_24] : memref<10x24x128xbf16, #tpu.memory_space<vmem>>, vector<8x1x128xbf16>
    tpu.vector_store %arg12[%c1_23, %c16, %c0_24], %25 {strides = array<i32>} : memref<10x24x128xbf16, #tpu.memory_space<vmem>>, vector<8x1x128xbf16>,
    %27 = arith.truncf %18 : vector<64x128xf32> to vector<64x128xbf16>
    %28 = vector.shape_cast %27 : vector<64x128xbf16> to vector<8x8x128xbf16>
    %c1_25 = arith.constant 1 : index
    %c8 = arith.constant 8 : index
    %c0_26 = arith.constant 0 : index
    %29 = vector.load %arg12[%c1_25, %c8, %c0_26] : memref<10x24x128xbf16, #tpu.memory_space<vmem>>, vector<8x8x128xbf16>
    tpu.vector_store %arg12[%c1_25, %c8, %c0_26], %28 {strides = array<i32>} : memref<10x24x128xbf16, #tpu.memory_space<vmem>>, vector<8x8x128xbf16>,
    %cst_27 = arith.constant 0.000000e+00 : f32
    %30 = vector.broadcast %cst_27 : f32 to vector<64x128xf32>
    %c0_28 = arith.constant 0 : index
    %c7_29 = arith.constant 7 : index
    %c0_30 = arith.constant 0 : index
    %31 = vector.load %arg12[%c0_28, %c7_29, %c0_30] : memref<10x24x128xbf16, #tpu.memory_space<vmem>>, vector<8x8x128xbf16>
    %32 = vector.shape_cast %31 : vector<8x8x128xbf16> to vector<64x128xbf16>
    %c0_31 = arith.constant 0 : index
    %c0_32 = arith.constant 0 : index
    %c0_33 = arith.constant 0 : index
    %33 = vector.load %arg6[%c0_31, %c0_32, %c0_33] : memref<9x128x128xbf16, #tpu.memory_space<vmem>>, vector<1x128x128xbf16>
    %34 = vector.shape_cast %33 : vector<1x128x128xbf16> to vector<128x128xbf16>
    %cst_34 = arith.constant dense<0.000000e+00> : vector<64x128xf32>
    %35 = tpu.matmul %32, %34, %cst_34 {dimension_numbers = #tpu.dot_dimension_numbers<[1], [0], [0], [1], [0, 0, 1, 1], [], []>} : vector<64x128xbf16>, vector<128x128xbf16>, vector<64x128xf32> -> vector<64x128xf32>
    %36 = arith.addf %30, %35 : vector<64x128xf32>
    %c0_35 = arith.constant 0 : index
    %c8_36 = arith.constant 8 : index
    %c0_37 = arith.constant 0 : index
    %37 = vector.load %arg12[%c0_35, %c8_36, %c0_37] : memref<10x24x128xbf16, #tpu.memory_space<vmem>>, vector<8x8x128xbf16>
    %38 = vector.shape_cast %37 : vector<8x8x128xbf16> to vector<64x128xbf16>
    %c1_38 = arith.constant 1 : index
    %c0_39 = arith.constant 0 : index
    %c0_40 = arith.constant 0 : index
    %39 = vector.load %arg6[%c1_38, %c0_39, %c0_40] : memref<9x128x128xbf16, #tpu.memory_space<vmem>>, vector<1x128x128xbf16>
    %40 = vector.shape_cast %39 : vector<1x128x128xbf16> to vector<128x128xbf16>
    %cst_41 = arith.constant dense<0.000000e+00> : vector<64x128xf32>
    %41 = tpu.matmul %38, %40, %cst_41 {dimension_numbers = #tpu.dot_dimension_numbers<[1], [0], [0], [1], [0, 0, 1, 1], [], []>} : vector<64x128xbf16>, vector<128x128xbf16>, vector<64x128xf32> -> vector<64x128xf32>
    %42 = arith.addf %36, %41 : vector<64x128xf32>
    %c0_42 = arith.constant 0 : index
    %c9_43 = arith.constant 9 : index
    %c0_44 = arith.constant 0 : index
    %43 = vector.load %arg12[%c0_42, %c9_43, %c0_44] : memref<10x24x128xbf16, #tpu.memory_space<vmem>>, vector<8x8x128xbf16>
    %44 = vector.shape_cast %43 : vector<8x8x128xbf16> to vector<64x128xbf16>
    %c2 = arith.constant 2 : index
    %c0_45 = arith.constant 0 : index
    %c0_46 = arith.constant 0 : index
    %45 = vector.load %arg6[%c2, %c0_45, %c0_46] : memref<9x128x128xbf16, #tpu.memory_space<vmem>>, vector<1x128x128xbf16>
    %46 = vector.shape_cast %45 : vector<1x128x128xbf16> to vector<128x128xbf16>
    %cst_47 = arith.constant dense<0.000000e+00> : vector<64x128xf32>
    %47 = tpu.matmul %44, %46, %cst_47 {dimension_numbers = #tpu.dot_dimension_numbers<[1], [0], [0], [1], [0, 0, 1, 1], [], []>} : vector<64x128xbf16>, vector<128x128xbf16>, vector<64x128xf32> -> vector<64x128xf32>
    %48 = arith.addf %42, %47 : vector<64x128xf32>
    %c1_48 = arith.constant 1 : index
    %c7_49 = arith.constant 7 : index
    %c0_50 = arith.constant 0 : index
    %49 = vector.load %arg12[%c1_48, %c7_49, %c0_50] : memref<10x24x128xbf16, #tpu.memory_space<vmem>>, vector<8x8x128xbf16>
    %50 = vector.shape_cast %49 : vector<8x8x128xbf16> to vector<64x128xbf16>
    %c3 = arith.constant 3 : index
    %c0_51 = arith.constant 0 : index
    %c0_52 = arith.constant 0 : index
    %51 = vector.load %arg6[%c3, %c0_51, %c0_52] : memref<9x128x128xbf16, #tpu.memory_space<vmem>>, vector<1x128x128xbf16>
    %52 = vector.shape_cast %51 : vector<1x128x128xbf16> to vector<128x128xbf16>
    %cst_53 = arith.constant dense<0.000000e+00> : vector<64x128xf32>
    %53 = tpu.matmul %50, %52, %cst_53 {dimension_numbers = #tpu.dot_dimension_numbers<[1], [0], [0], [1], [0, 0, 1, 1], [], []>} : vector<64x128xbf16>, vector<128x128xbf16>, vector<64x128xf32> -> vector<64x128xf32>
    %54 = arith.addf %48, %53 : vector<64x128xf32>
    %c1_54 = arith.constant 1 : index
    %c8_55 = arith.constant 8 : index
    %c0_56 = arith.constant 0 : index
    %55 = vector.load %arg12[%c1_54, %c8_55, %c0_56] : memref<10x24x128xbf16, #tpu.memory_space<vmem>>, vector<8x8x128xbf16>
    %56 = vector.shape_cast %55 : vector<8x8x128xbf16> to vector<64x128xbf16>
    %c4 = arith.constant 4 : index
    %c0_57 = arith.constant 0 : index
    %c0_58 = arith.constant 0 : index
    %57 = vector.load %arg6[%c4, %c0_57, %c0_58] : memref<9x128x128xbf16, #tpu.memory_space<vmem>>, vector<1x128x128xbf16>
    %58 = vector.shape_cast %57 : vector<1x128x128xbf16> to vector<128x128xbf16>
    %cst_59 = arith.constant dense<0.000000e+00> : vector<64x128xf32>
    %59 = tpu.matmul %56, %58, %cst_59 {dimension_numbers = #tpu.dot_dimension_numbers<[1], [0], [0], [1], [0, 0, 1, 1], [], []>} : vector<64x128xbf16>, vector<128x128xbf16>, vector<64x128xf32> -> vector<64x128xf32>
    %60 = arith.addf %54, %59 : vector<64x128xf32>
    %c1_60 = arith.constant 1 : index
    %c9_61 = arith.constant 9 : index
    %c0_62 = arith.constant 0 : index
    %61 = vector.load %arg12[%c1_60, %c9_61, %c0_62] : memref<10x24x128xbf16, #tpu.memory_space<vmem>>, vector<8x8x128xbf16>
    %62 = vector.shape_cast %61 : vector<8x8x128xbf16> to vector<64x128xbf16>
    %c5 = arith.constant 5 : index
    %c0_63 = arith.constant 0 : index
    %c0_64 = arith.constant 0 : index
    %63 = vector.load %arg6[%c5, %c0_63, %c0_64] : memref<9x128x128xbf16, #tpu.memory_space<vmem>>, vector<1x128x128xbf16>
    %64 = vector.shape_cast %63 : vector<1x128x128xbf16> to vector<128x128xbf16>
    %cst_65 = arith.constant dense<0.000000e+00> : vector<64x128xf32>
    %65 = tpu.matmul %62, %64, %cst_65 {dimension_numbers = #tpu.dot_dimension_numbers<[1], [0], [0], [1], [0, 0, 1, 1], [], []>} : vector<64x128xbf16>, vector<128x128xbf16>, vector<64x128xf32> -> vector<64x128xf32>
    %66 = arith.addf %60, %65 : vector<64x128xf32>
    %c2_66 = arith.constant 2 : index
    %c7_67 = arith.constant 7 : index
    %c0_68 = arith.constant 0 : index
    %67 = vector.load %arg12[%c2_66, %c7_67, %c0_68] : memref<10x24x128xbf16, #tpu.memory_space<vmem>>, vector<8x8x128xbf16>
    %68 = vector.shape_cast %67 : vector<8x8x128xbf16> to vector<64x128xbf16>
    %c6 = arith.constant 6 : index
    %c0_69 = arith.constant 0 : index
    %c0_70 = arith.constant 0 : index
    %69 = vector.load %arg6[%c6, %c0_69, %c0_70] : memref<9x128x128xbf16, #tpu.memory_space<vmem>>, vector<1x128x128xbf16>
    %70 = vector.shape_cast %69 : vector<1x128x128xbf16> to vector<128x128xbf16>
    %cst_71 = arith.constant dense<0.000000e+00> : vector<64x128xf32>
    %71 = tpu.matmul %68, %70, %cst_71 {dimension_numbers = #tpu.dot_dimension_numbers<[1], [0], [0], [1], [0, 0, 1, 1], [], []>} : vector<64x128xbf16>, vector<128x128xbf16>, vector<64x128xf32> -> vector<64x128xf32>
    %72 = arith.addf %66, %71 : vector<64x128xf32>
    %c2_72 = arith.constant 2 : index
    %c8_73 = arith.constant 8 : index
    %c0_74 = arith.constant 0 : index
    %73 = vector.load %arg12[%c2_72, %c8_73, %c0_74] : memref<10x24x128xbf16, #tpu.memory_space<vmem>>, vector<8x8x128xbf16>
    %74 = vector.shape_cast %73 : vector<8x8x128xbf16> to vector<64x128xbf16>
    %c7_75 = arith.constant 7 : index
    %c0_76 = arith.constant 0 : index
    %c0_77 = arith.constant 0 : index
    %75 = vector.load %arg6[%c7_75, %c0_76, %c0_77] : memref<9x128x128xbf16, #tpu.memory_space<vmem>>, vector<1x128x128xbf16>
    %76 = vector.shape_cast %75 : vector<1x128x128xbf16> to vector<128x128xbf16>
    %cst_78 = arith.constant dense<0.000000e+00> : vector<64x128xf32>
    %77 = tpu.matmul %74, %76, %cst_78 {dimension_numbers = #tpu.dot_dimension_numbers<[1], [0], [0], [1], [0, 0, 1, 1], [], []>} : vector<64x128xbf16>, vector<128x128xbf16>, vector<64x128xf32> -> vector<64x128xf32>
    %78 = arith.addf %72, %77 : vector<64x128xf32>
    %c2_79 = arith.constant 2 : index
    %c9_80 = arith.constant 9 : index
    %c0_81 = arith.constant 0 : index
    %79 = vector.load %arg12[%c2_79, %c9_80, %c0_81] : memref<10x24x128xbf16, #tpu.memory_space<vmem>>, vector<8x8x128xbf16>
    %80 = vector.shape_cast %79 : vector<8x8x128xbf16> to vector<64x128xbf16>
    %c8_82 = arith.constant 8 : index
    %c0_83 = arith.constant 0 : index
    %c0_84 = arith.constant 0 : index
    %81 = vector.load %arg6[%c8_82, %c0_83, %c0_84] : memref<9x128x128xbf16, #tpu.memory_space<vmem>>, vector<1x128x128xbf16>
    %82 = vector.shape_cast %81 : vector<1x128x128xbf16> to vector<128x128xbf16>
    %cst_85 = arith.constant dense<0.000000e+00> : vector<64x128xf32>
    %83 = tpu.matmul %80, %82, %cst_85 {dimension_numbers = #tpu.dot_dimension_numbers<[1], [0], [0], [1], [0, 0, 1, 1], [], []>} : vector<64x128xbf16>, vector<128x128xbf16>, vector<64x128xf32> -> vector<64x128xf32>
    %84 = arith.addf %78, %83 : vector<64x128xf32>
    %c0_86 = arith.constant 0 : index
    %c0_87 = arith.constant 0 : index
    %85 = vector.load %arg7[%c0_86, %c0_87] : memref<1x128xf32, #tpu.memory_space<vmem>>, vector<1x128xf32>
    %86 = vector.broadcast %85 : vector<1x128xf32> to vector<64x128xf32>
    %87 = arith.addf %84, %86 : vector<64x128xf32>
    %cst_88 = arith.constant 0.000000e+00 : f32
    %88 = vector.broadcast %cst_88 : f32 to vector<64x128xf32>
    %89 = arith.maximumf %87, %88 : vector<64x128xf32>
    %90 = arith.truncf %89 : vector<64x128xf32> to vector<64x128xbf16>
    %c0_89 = arith.constant 0 : index
    %c0_90 = arith.constant 0 : index
    %91 = vector.load %arg8[%c0_89, %c0_90] : memref<128x128xbf16, #tpu.memory_space<vmem>>, vector<128x128xbf16>
    %cst_91 = arith.constant dense<0.000000e+00> : vector<64x128xf32>
    %92 = tpu.matmul %90, %91, %cst_91 {dimension_numbers = #tpu.dot_dimension_numbers<[1], [0], [0], [1], [0, 0, 1, 1], [], []>} : vector<64x128xbf16>, vector<128x128xbf16>, vector<64x128xf32> -> vector<64x128xf32>
    %93 = arith.truncf %2 : vector<64x128xf32> to vector<64x128xbf16>
    %c0_92 = arith.constant 0 : index
    %c0_93 = arith.constant 0 : index
    %94 = vector.load %arg9[%c0_92, %c0_93] : memref<128x128xbf16, #tpu.memory_space<vmem>>, vector<128x128xbf16>
    %cst_94 = arith.constant dense<0.000000e+00> : vector<64x128xf32>
    %95 = tpu.matmul %93, %94, %cst_94 {dimension_numbers = #tpu.dot_dimension_numbers<[1], [0], [0], [1], [0, 0, 1, 1], [], []>} : vector<64x128xbf16>, vector<128x128xbf16>, vector<64x128xf32> -> vector<64x128xf32>
    %96 = arith.addf %92, %95 : vector<64x128xf32>
    %c0_95 = arith.constant 0 : index
    %c0_96 = arith.constant 0 : index
    %97 = vector.load %arg10[%c0_95, %c0_96] : memref<1x128xf32, #tpu.memory_space<vmem>>, vector<1x128xf32>
    %98 = vector.broadcast %97 : vector<1x128xf32> to vector<64x128xf32>
    %99 = arith.addf %96, %98 : vector<64x128xf32>
    %c0_97 = arith.constant 0 : index
    %c0_98 = arith.constant 0 : index
    %c0_99 = arith.constant 0 : index
    %100 = vector.load %arg11[%c0_97, %c0_98, %c0_99] : memref<1x64x128xf32, #tpu.memory_space<vmem>>, vector<1x64x128xf32>
    %101 = vector.shape_cast %100 : vector<1x64x128xf32> to vector<64x128xf32>
    %102 = vector.shape_cast %99 : vector<64x128xf32> to vector<1x64x128xf32>
    tpu.vector_store %arg11[%c0_97, %c0_98, %c0_99], %102 {strides = array<i32>} : memref<1x64x128xf32, #tpu.memory_space<vmem>>, vector<1x64x128xf32>,
    return
  }
  func.func @transform_0(%arg0: i32) -> (i32, i32, i32, i32) {
    %c0_i32 = arith.constant 0 : i32
    %c0_i32_0 = arith.constant 0 : i32
    %c0_i32_1 = arith.constant 0 : i32
    %c0_i32_2 = arith.constant 0 : i32
    return %arg0, %c0_i32, %c0_i32_0, %c0_i32_1 : i32, i32, i32, i32
  }
  func.func @transform_1(%arg0: i32) -> (i32, i32) {
    %c0_i32 = arith.constant 0 : i32
    %c0_i32_0 = arith.constant 0 : i32
    %c0_i32_1 = arith.constant 0 : i32
    return %c0_i32, %c0_i32_0 : i32, i32
  }
  func.func @transform_2(%arg0: i32) -> (i32, i32) {
    %c0_i32 = arith.constant 0 : i32
    %c0_i32_0 = arith.constant 0 : i32
    %c0_i32_1 = arith.constant 0 : i32
    return %c0_i32, %c0_i32_0 : i32, i32
  }
  func.func @transform_3(%arg0: i32) -> (i32, i32) {
    %c0_i32 = arith.constant 0 : i32
    %c0_i32_0 = arith.constant 0 : i32
    %c0_i32_1 = arith.constant 0 : i32
    return %c0_i32, %c0_i32_0 : i32, i32
  }
  func.func @transform_4(%arg0: i32) -> (i32, i32) {
    %c0_i32 = arith.constant 0 : i32
    %c0_i32_0 = arith.constant 0 : i32
    %c0_i32_1 = arith.constant 0 : i32
    return %c0_i32, %c0_i32_0 : i32, i32
  }
  func.func @transform_5(%arg0: i32) -> (i32, i32, i32) {
    %c0_i32 = arith.constant 0 : i32
    %c0_i32_0 = arith.constant 0 : i32
    %c0_i32_1 = arith.constant 0 : i32
    %c0_i32_2 = arith.constant 0 : i32
    return %c0_i32, %c0_i32_0, %c0_i32_1 : i32, i32, i32
  }
  func.func @transform_6(%arg0: i32) -> (i32, i32) {
    %c0_i32 = arith.constant 0 : i32
    %c0_i32_0 = arith.constant 0 : i32
    %c0_i32_1 = arith.constant 0 : i32
    return %c0_i32, %c0_i32_0 : i32, i32
  }
  func.func @transform_7(%arg0: i32) -> (i32, i32) {
    %c0_i32 = arith.constant 0 : i32
    %c0_i32_0 = arith.constant 0 : i32
    %c0_i32_1 = arith.constant 0 : i32
    return %c0_i32, %c0_i32_0 : i32, i32
  }
  func.func @transform_8(%arg0: i32) -> (i32, i32) {
    %c0_i32 = arith.constant 0 : i32
    %c0_i32_0 = arith.constant 0 : i32
    %c0_i32_1 = arith.constant 0 : i32
    return %c0_i32, %c0_i32_0 : i32, i32
  }
  func.func @transform_9(%arg0: i32) -> (i32, i32) {
    %c0_i32 = arith.constant 0 : i32
    %c0_i32_0 = arith.constant 0 : i32
    %c0_i32_1 = arith.constant 0 : i32
    return %c0_i32, %c0_i32_0 : i32, i32
  }
  func.func @transform_10(%arg0: i32) -> (i32, i32, i32) {
    %c0_i32 = arith.constant 0 : i32
    %c0_i32_0 = arith.constant 0 : i32
    %c0_i32_1 = arith.constant 0 : i32
    return %arg0, %c0_i32, %c0_i32_0 : i32, i32, i32
  }
}

module attributes {stable_mosaic.version = 11 : i64} {
  func.func @body(%arg0: i32, %arg1: memref<1x8x8x128xf32, #tpu.memory_space<vmem>>, %arg2: memref<1x128xf32, #tpu.memory_space<vmem>>, %arg3: memref<1x128xf32, #tpu.memory_space<vmem>>, %arg4: memref<128x128xbf16, #tpu.memory_space<vmem>>, %arg5: memref<1x128xf32, #tpu.memory_space<vmem>>, %arg6: memref<9x128x128xbf16, #tpu.memory_space<vmem>>, %arg7: memref<1x128xf32, #tpu.memory_space<vmem>>, %arg8: memref<128x128xbf16, #tpu.memory_space<vmem>>, %arg9: memref<128x128xbf16, #tpu.memory_space<vmem>>, %arg10: memref<1x128xf32, #tpu.memory_space<vmem>>, %arg11: memref<1x64x128xf32, #tpu.memory_space<vmem>>, %arg12: memref<10x24x128xbf16, #tpu.memory_space<vmem>>) attributes {dimension_semantics = [#tpu.dimension_semantics<parallel>], iteration_bounds = array<i64: 2>, scalar_prefetch = 0 : i64, scratch_operands = 1 : i64, tpu.core_type = #tpu.core_type<tc>, window_params = [{transform_indices = @transform_0, window_bounds = array<i64: 1, 8, 8, 128>}, {pipeline_mode = #tpu.pipeline_mode<synchronous>, transform_indices = @transform_1, window_bounds = array<i64: 1, 128>}, {pipeline_mode = #tpu.pipeline_mode<synchronous>, transform_indices = @transform_2, window_bounds = array<i64: 1, 128>}, {pipeline_mode = #tpu.pipeline_mode<synchronous>, transform_indices = @transform_3, window_bounds = array<i64: 128, 128>}, {pipeline_mode = #tpu.pipeline_mode<synchronous>, transform_indices = @transform_4, window_bounds = array<i64: 1, 128>}, {pipeline_mode = #tpu.pipeline_mode<synchronous>, transform_indices = @transform_5, window_bounds = array<i64: 9, 128, 128>}, {pipeline_mode = #tpu.pipeline_mode<synchronous>, transform_indices = @transform_6, window_bounds = array<i64: 1, 128>}, {pipeline_mode = #tpu.pipeline_mode<synchronous>, transform_indices = @transform_7, window_bounds = array<i64: 128, 128>}, {pipeline_mode = #tpu.pipeline_mode<synchronous>, transform_indices = @transform_8, window_bounds = array<i64: 128, 128>}, {pipeline_mode = #tpu.pipeline_mode<synchronous>, transform_indices = @transform_9, window_bounds = array<i64: 1, 128>}, {transform_indices = @transform_10, window_bounds = array<i64: 1, 64, 128>}]} {
    %c0 = arith.constant 0 : index
    %c0_0 = arith.constant 0 : index
    %c0_1 = arith.constant 0 : index
    %c0_2 = arith.constant 0 : index
    %0 = vector.load %arg1[%c0, %c0_0, %c0_1, %c0_2] : memref<1x8x8x128xf32, #tpu.memory_space<vmem>>, vector<1x8x8x128xf32>
    %1 = vector.shape_cast %0 : vector<1x8x8x128xf32> to vector<8x8x128xf32>
    %2 = vector.shape_cast %1 : vector<8x8x128xf32> to vector<64x128xf32>
    %c0_3 = arith.constant 0 : index
    %c0_4 = arith.constant 0 : index
    %3 = vector.load %arg2[%c0_3, %c0_4] : memref<1x128xf32, #tpu.memory_space<vmem>>, vector<1x128xf32>
    %4 = vector.broadcast %3 : vector<1x128xf32> to vector<64x128xf32>
    %5 = arith.mulf %2, %4 : vector<64x128xf32>
    %c0_5 = arith.constant 0 : index
    %c0_6 = arith.constant 0 : index
    %6 = vector.load %arg3[%c0_5, %c0_6] : memref<1x128xf32, #tpu.memory_space<vmem>>, vector<1x128xf32>
    %7 = vector.broadcast %6 : vector<1x128xf32> to vector<64x128xf32>
    %8 = arith.addf %5, %7 : vector<64x128xf32>
    %cst = arith.constant 0.000000e+00 : f32
    %9 = vector.broadcast %cst : f32 to vector<64x128xf32>
    %10 = arith.maximumf %8, %9 : vector<64x128xf32>
    %11 = arith.truncf %10 : vector<64x128xf32> to vector<64x128xbf16>
    %c0_7 = arith.constant 0 : index
    %c0_8 = arith.constant 0 : index
    %12 = vector.load %arg4[%c0_7, %c0_8] : memref<128x128xbf16, #tpu.memory_space<vmem>>, vector<128x128xbf16>
    %cst_9 = arith.constant dense<0.000000e+00> : vector<64x128xf32>
    %13 = tpu.matmul %11, %12, %cst_9 {dimension_numbers = #tpu.dot_dimension_numbers<[1], [0], [0], [1], [0, 0, 1, 1], [], []>} : vector<64x128xbf16>, vector<128x128xbf16>, vector<64x128xf32> -> vector<64x128xf32>
    %c0_10 = arith.constant 0 : index
    %c0_11 = arith.constant 0 : index
    %14 = vector.load %arg5[%c0_10, %c0_11] : memref<1x128xf32, #tpu.memory_space<vmem>>, vector<1x128xf32>
    %15 = vector.broadcast %14 : vector<1x128xf32> to vector<64x128xf32>
    %16 = arith.addf %13, %15 : vector<64x128xf32>
    %cst_12 = arith.constant 0.000000e+00 : f32
    %17 = vector.broadcast %cst_12 : f32 to vector<64x128xf32>
    %18 = arith.maximumf %16, %17 : vector<64x128xf32>
    %cst_13 = arith.constant 0.000000e+00 : bf16
    %19 = vector.broadcast %cst_13 : bf16 to vector<1x24x128xbf16>
    %c0_14 = arith.constant 0 : index
    %c0_15 = arith.constant 0 : index
    %c0_16 = arith.constant 0 : index
    %20 = vector.load %arg12[%c0_14, %c0_15, %c0_16] : memref<10x24x128xbf16, #tpu.memory_space<vmem>>, vector<1x24x128xbf16>
    tpu.vector_store %arg12[%c0_14, %c0_15, %c0_16], %19 {strides = array<i32>} : memref<10x24x128xbf16, #tpu.memory_space<vmem>>, vector<1x24x128xbf16>,
    %cst_17 = arith.constant 0.000000e+00 : bf16
    %21 = vector.broadcast %cst_17 : bf16 to vector<1x24x128xbf16>
    %c9 = arith.constant 9 : index
    %c0_18 = arith.constant 0 : index
    %c0_19 = arith.constant 0 : index
    %22 = vector.load %arg12[%c9, %c0_18, %c0_19] : memref<10x24x128xbf16, #tpu.memory_space<vmem>>, vector<1x24x128xbf16>
    tpu.vector_store %arg12[%c9, %c0_18, %c0_19], %21 {strides = array<i32>} : memref<10x24x128xbf16, #tpu.memory_space<vmem>>, vector<1x24x128xbf16>,
    %cst_20 = arith.constant 0.000000e+00 : bf16
    %23 = vector.broadcast %cst_20 : bf16 to vector<8x1x128xbf16>
    %c1 = arith.constant 1 : index
    %c7 = arith.constant 7 : index
    %c0_21 = arith.constant 0 : index
    %24 = vector.load %arg12[%c1, %c7, %c0_21] : memref<10x24x128xbf16, #tpu.memory_space<vmem>>, vector<8x1x128xbf16>
    tpu.vector_store %arg12[%c1, %c7, %c0_21], %23 {strides = array<i32>} : memref<10x24x128xbf16, #tpu.memory_space<vmem>>, vector<8x1x128xbf16>,
    %cst_22 = arith.constant 0.000000e+00 : bf16
    %25 = vector.broadcast %cst_22 : bf16 to vector<8x1x128xbf16>
    %c1_23 = arith.constant 1 : index
    %c16 = arith.constant 16 : index
    %c0_24 = arith.constant 0 : index
    %26 = vector.load %arg12[%c1_23, %c16, %c0_24] : memref<10x24x128xbf16, #tpu.memory_space<vmem>>, vector<8x1x128xbf16>
    tpu.vector_store %arg12[%c1_23, %c16, %c0_24], %25 {strides = array<i32>} : memref<10x24x128xbf16, #tpu.memory_space<vmem>>, vector<8x1x128xbf16>,
    %27 = arith.truncf %18 : vector<64x128xf32> to vector<64x128xbf16>
    %28 = vector.shape_cast %27 : vector<64x128xbf16> to vector<8x8x128xbf16>
    %c1_25 = arith.constant 1 : index
    %c8 = arith.constant 8 : index
    %c0_26 = arith.constant 0 : index
    %29 = vector.load %arg12[%c1_25, %c8, %c0_26] : memref<10x24x128xbf16, #tpu.memory_space<vmem>>, vector<8x8x128xbf16>
    tpu.vector_store %arg12[%c1_25, %c8, %c0_26], %28 {strides = array<i32>} : memref<10x24x128xbf16, #tpu.memory_space<vmem>>, vector<8x8x128xbf16>,
    %cst_27 = arith.constant 0.000000e+00 : f32
    %30 = vector.broadcast %cst_27 : f32 to vector<64x128xf32>
    %c0_28 = arith.constant 0 : index
    %c7_29 = arith.constant 7 : index
    %c0_30 = arith.constant 0 : index
    %31 = vector.load %arg12[%c0_28, %c7_29, %c0_30] : memref<10x24x128xbf16, #tpu.memory_space<vmem>>, vector<8x8x128xbf16>
    %32 = vector.shape_cast %31 : vector<8x8x128xbf16> to vector<64x128xbf16>
    %c0_31 = arith.constant 0 : index
    %c0_32 = arith.constant 0 : index
    %c0_33 = arith.constant 0 : index
    %33 = vector.load %arg6[%c0_31, %c0_32, %c0_33] : memref<9x128x128xbf16, #tpu.memory_space<vmem>>, vector<1x128x128xbf16>
    %34 = vector.shape_cast %33 : vector<1x128x128xbf16> to vector<128x128xbf16>
    %cst_34 = arith.constant dense<0.000000e+00> : vector<64x128xf32>
    %35 = tpu.matmul %32, %34, %cst_34 {dimension_numbers = #tpu.dot_dimension_numbers<[1], [0], [0], [1], [0, 0, 1, 1], [], []>} : vector<64x128xbf16>, vector<128x128xbf16>, vector<64x128xf32> -> vector<64x128xf32>
    %36 = arith.addf %30, %35 : vector<64x128xf32>
    %c0_35 = arith.constant 0 : index
    %c8_36 = arith.constant 8 : index
    %c0_37 = arith.constant 0 : index
    %37 = vector.load %arg12[%c0_35, %c8_36, %c0_37] : memref<10x24x128xbf16, #tpu.memory_space<vmem>>, vector<8x8x128xbf16>
    %38 = vector.shape_cast %37 : vector<8x8x128xbf16> to vector<64x128xbf16>
    %c1_38 = arith.constant 1 : index
    %c0_39 = arith.constant 0 : index
    %c0_40 = arith.constant 0 : index
    %39 = vector.load %arg6[%c1_38, %c0_39, %c0_40] : memref<9x128x128xbf16, #tpu.memory_space<vmem>>, vector<1x128x128xbf16>
    %40 = vector.shape_cast %39 : vector<1x128x128xbf16> to vector<128x128xbf16>
    %cst_41 = arith.constant dense<0.000000e+00> : vector<64x128xf32>
    %41 = tpu.matmul %38, %40, %cst_41 {dimension_numbers = #tpu.dot_dimension_numbers<[1], [0], [0], [1], [0, 0, 1, 1], [], []>} : vector<64x128xbf16>, vector<128x128xbf16>, vector<64x128xf32> -> vector<64x128xf32>
    %42 = arith.addf %36, %41 : vector<64x128xf32>
    %c0_42 = arith.constant 0 : index
    %c9_43 = arith.constant 9 : index
    %c0_44 = arith.constant 0 : index
    %43 = vector.load %arg12[%c0_42, %c9_43, %c0_44] : memref<10x24x128xbf16, #tpu.memory_space<vmem>>, vector<8x8x128xbf16>
    %44 = vector.shape_cast %43 : vector<8x8x128xbf16> to vector<64x128xbf16>
    %c2 = arith.constant 2 : index
    %c0_45 = arith.constant 0 : index
    %c0_46 = arith.constant 0 : index
    %45 = vector.load %arg6[%c2, %c0_45, %c0_46] : memref<9x128x128xbf16, #tpu.memory_space<vmem>>, vector<1x128x128xbf16>
    %46 = vector.shape_cast %45 : vector<1x128x128xbf16> to vector<128x128xbf16>
    %cst_47 = arith.constant dense<0.000000e+00> : vector<64x128xf32>
    %47 = tpu.matmul %44, %46, %cst_47 {dimension_numbers = #tpu.dot_dimension_numbers<[1], [0], [0], [1], [0, 0, 1, 1], [], []>} : vector<64x128xbf16>, vector<128x128xbf16>, vector<64x128xf32> -> vector<64x128xf32>
    %48 = arith.addf %42, %47 : vector<64x128xf32>
    %c1_48 = arith.constant 1 : index
    %c7_49 = arith.constant 7 : index
    %c0_50 = arith.constant 0 : index
    %49 = vector.load %arg12[%c1_48, %c7_49, %c0_50] : memref<10x24x128xbf16, #tpu.memory_space<vmem>>, vector<8x8x128xbf16>
    %50 = vector.shape_cast %49 : vector<8x8x128xbf16> to vector<64x128xbf16>
    %c3 = arith.constant 3 : index
    %c0_51 = arith.constant 0 : index
    %c0_52 = arith.constant 0 : index
    %51 = vector.load %arg6[%c3, %c0_51, %c0_52] : memref<9x128x128xbf16, #tpu.memory_space<vmem>>, vector<1x128x128xbf16>
    %52 = vector.shape_cast %51 : vector<1x128x128xbf16> to vector<128x128xbf16>
    %cst_53 = arith.constant dense<0.000000e+00> : vector<64x128xf32>
    %53 = tpu.matmul %50, %52, %cst_53 {dimension_numbers = #tpu.dot_dimension_numbers<[1], [0], [0], [1], [0, 0, 1, 1], [], []>} : vector<64x128xbf16>, vector<128x128xbf16>, vector<64x128xf32> -> vector<64x128xf32>
    %54 = arith.addf %48, %53 : vector<64x128xf32>
    %c1_54 = arith.constant 1 : index
    %c8_55 = arith.constant 8 : index
    %c0_56 = arith.constant 0 : index
    %55 = vector.load %arg12[%c1_54, %c8_55, %c0_56] : memref<10x24x128xbf16, #tpu.memory_space<vmem>>, vector<8x8x128xbf16>
    %56 = vector.shape_cast %55 : vector<8x8x128xbf16> to vector<64x128xbf16>
    %c4 = arith.constant 4 : index
    %c0_57 = arith.constant 0 : index
    %c0_58 = arith.constant 0 : index
    %57 = vector.load %arg6[%c4, %c0_57, %c0_58] : memref<9x128x128xbf16, #tpu.memory_space<vmem>>, vector<1x128x128xbf16>
    %58 = vector.shape_cast %57 : vector<1x128x128xbf16> to vector<128x128xbf16>
    %cst_59 = arith.constant dense<0.000000e+00> : vector<64x128xf32>
    %59 = tpu.matmul %56, %58, %cst_59 {dimension_numbers = #tpu.dot_dimension_numbers<[1], [0], [0], [1], [0, 0, 1, 1], [], []>} : vector<64x128xbf16>, vector<128x128xbf16>, vector<64x128xf32> -> vector<64x128xf32>
    %60 = arith.addf %54, %59 : vector<64x128xf32>
    %c1_60 = arith.constant 1 : index
    %c9_61 = arith.constant 9 : index
    %c0_62 = arith.constant 0 : index
    %61 = vector.load %arg12[%c1_60, %c9_61, %c0_62] : memref<10x24x128xbf16, #tpu.memory_space<vmem>>, vector<8x8x128xbf16>
    %62 = vector.shape_cast %61 : vector<8x8x128xbf16> to vector<64x128xbf16>
    %c5 = arith.constant 5 : index
    %c0_63 = arith.constant 0 : index
    %c0_64 = arith.constant 0 : index
    %63 = vector.load %arg6[%c5, %c0_63, %c0_64] : memref<9x128x128xbf16, #tpu.memory_space<vmem>>, vector<1x128x128xbf16>
    %64 = vector.shape_cast %63 : vector<1x128x128xbf16> to vector<128x128xbf16>
    %cst_65 = arith.constant dense<0.000000e+00> : vector<64x128xf32>
    %65 = tpu.matmul %62, %64, %cst_65 {dimension_numbers = #tpu.dot_dimension_numbers<[1], [0], [0], [1], [0, 0, 1, 1], [], []>} : vector<64x128xbf16>, vector<128x128xbf16>, vector<64x128xf32> -> vector<64x128xf32>
    %66 = arith.addf %60, %65 : vector<64x128xf32>
    %c2_66 = arith.constant 2 : index
    %c7_67 = arith.constant 7 : index
    %c0_68 = arith.constant 0 : index
    %67 = vector.load %arg12[%c2_66, %c7_67, %c0_68] : memref<10x24x128xbf16, #tpu.memory_space<vmem>>, vector<8x8x128xbf16>
    %68 = vector.shape_cast %67 : vector<8x8x128xbf16> to vector<64x128xbf16>
    %c6 = arith.constant 6 : index
    %c0_69 = arith.constant 0 : index
    %c0_70 = arith.constant 0 : index
    %69 = vector.load %arg6[%c6, %c0_69, %c0_70] : memref<9x128x128xbf16, #tpu.memory_space<vmem>>, vector<1x128x128xbf16>
    %70 = vector.shape_cast %69 : vector<1x128x128xbf16> to vector<128x128xbf16>
    %cst_71 = arith.constant dense<0.000000e+00> : vector<64x128xf32>
    %71 = tpu.matmul %68, %70, %cst_71 {dimension_numbers = #tpu.dot_dimension_numbers<[1], [0], [0], [1], [0, 0, 1, 1], [], []>} : vector<64x128xbf16>, vector<128x128xbf16>, vector<64x128xf32> -> vector<64x128xf32>
    %72 = arith.addf %66, %71 : vector<64x128xf32>
    %c2_72 = arith.constant 2 : index
    %c8_73 = arith.constant 8 : index
    %c0_74 = arith.constant 0 : index
    %73 = vector.load %arg12[%c2_72, %c8_73, %c0_74] : memref<10x24x128xbf16, #tpu.memory_space<vmem>>, vector<8x8x128xbf16>
    %74 = vector.shape_cast %73 : vector<8x8x128xbf16> to vector<64x128xbf16>
    %c7_75 = arith.constant 7 : index
    %c0_76 = arith.constant 0 : index
    %c0_77 = arith.constant 0 : index
    %75 = vector.load %arg6[%c7_75, %c0_76, %c0_77] : memref<9x128x128xbf16, #tpu.memory_space<vmem>>, vector<1x128x128xbf16>
    %76 = vector.shape_cast %75 : vector<1x128x128xbf16> to vector<128x128xbf16>
    %cst_78 = arith.constant dense<0.000000e+00> : vector<64x128xf32>
    %77 = tpu.matmul %74, %76, %cst_78 {dimension_numbers = #tpu.dot_dimension_numbers<[1], [0], [0], [1], [0, 0, 1, 1], [], []>} : vector<64x128xbf16>, vector<128x128xbf16>, vector<64x128xf32> -> vector<64x128xf32>
    %78 = arith.addf %72, %77 : vector<64x128xf32>
    %c2_79 = arith.constant 2 : index
    %c9_80 = arith.constant 9 : index
    %c0_81 = arith.constant 0 : index
    %79 = vector.load %arg12[%c2_79, %c9_80, %c0_81] : memref<10x24x128xbf16, #tpu.memory_space<vmem>>, vector<8x8x128xbf16>
    %80 = vector.shape_cast %79 : vector<8x8x128xbf16> to vector<64x128xbf16>
    %c8_82 = arith.constant 8 : index
    %c0_83 = arith.constant 0 : index
    %c0_84 = arith.constant 0 : index
    %81 = vector.load %arg6[%c8_82, %c0_83, %c0_84] : memref<9x128x128xbf16, #tpu.memory_space<vmem>>, vector<1x128x128xbf16>
    %82 = vector.shape_cast %81 : vector<1x128x128xbf16> to vector<128x128xbf16>
    %cst_85 = arith.constant dense<0.000000e+00> : vector<64x128xf32>
    %83 = tpu.matmul %80, %82, %cst_85 {dimension_numbers = #tpu.dot_dimension_numbers<[1], [0], [0], [1], [0, 0, 1, 1], [], []>} : vector<64x128xbf16>, vector<128x128xbf16>, vector<64x128xf32> -> vector<64x128xf32>
    %84 = arith.addf %78, %83 : vector<64x128xf32>
    %c0_86 = arith.constant 0 : index
    %c0_87 = arith.constant 0 : index
    %85 = vector.load %arg7[%c0_86, %c0_87] : memref<1x128xf32, #tpu.memory_space<vmem>>, vector<1x128xf32>
    %86 = vector.broadcast %85 : vector<1x128xf32> to vector<64x128xf32>
    %87 = arith.addf %84, %86 : vector<64x128xf32>
    %cst_88 = arith.constant 0.000000e+00 : f32
    %88 = vector.broadcast %cst_88 : f32 to vector<64x128xf32>
    %89 = arith.maximumf %87, %88 : vector<64x128xf32>
    %90 = arith.truncf %89 : vector<64x128xf32> to vector<64x128xbf16>
    %c0_89 = arith.constant 0 : index
    %c0_90 = arith.constant 0 : index
    %91 = vector.load %arg8[%c0_89, %c0_90] : memref<128x128xbf16, #tpu.memory_space<vmem>>, vector<128x128xbf16>
    %cst_91 = arith.constant dense<0.000000e+00> : vector<64x128xf32>
    %92 = tpu.matmul %90, %91, %cst_91 {dimension_numbers = #tpu.dot_dimension_numbers<[1], [0], [0], [1], [0, 0, 1, 1], [], []>} : vector<64x128xbf16>, vector<128x128xbf16>, vector<64x128xf32> -> vector<64x128xf32>
    %93 = arith.truncf %2 : vector<64x128xf32> to vector<64x128xbf16>
    %c0_92 = arith.constant 0 : index
    %c0_93 = arith.constant 0 : index
    %94 = vector.load %arg9[%c0_92, %c0_93] : memref<128x128xbf16, #tpu.memory_space<vmem>>, vector<128x128xbf16>
    %cst_94 = arith.constant dense<0.000000e+00> : vector<64x128xf32>
    %95 = tpu.matmul %93, %94, %cst_94 {dimension_numbers = #tpu.dot_dimension_numbers<[1], [0], [0], [1], [0, 0, 1, 1], [], []>} : vector<64x128xbf16>, vector<128x128xbf16>, vector<64x128xf32> -> vector<64x128xf32>
    %96 = arith.addf %92, %95 : vector<64x128xf32>
    %c0_95 = arith.constant 0 : index
    %c0_96 = arith.constant 0 : index
    %97 = vector.load %arg10[%c0_95, %c0_96] : memref<1x128xf32, #tpu.memory_space<vmem>>, vector<1x128xf32>
    %98 = vector.broadcast %97 : vector<1x128xf32> to vector<64x128xf32>
    %99 = arith.addf %96, %98 : vector<64x128xf32>
    %c0_97 = arith.constant 0 : index
    %c0_98 = arith.constant 0 : index
    %c0_99 = arith.constant 0 : index
    %100 = vector.load %arg11[%c0_97, %c0_98, %c0_99] : memref<1x64x128xf32, #tpu.memory_space<vmem>>, vector<1x64x128xf32>
    %101 = vector.shape_cast %100 : vector<1x64x128xf32> to vector<64x128xf32>
    %102 = vector.shape_cast %99 : vector<64x128xf32> to vector<1x64x128xf32>
    tpu.vector_store %arg11[%c0_97, %c0_98, %c0_99], %102 {strides = array<i32>} : memref<1x64x128xf32, #tpu.memory_space<vmem>>, vector<1x64x128xf32>,
    return
  }
  func.func @transform_0(%arg0: i32) -> (i32, i32, i32, i32) {
    %c0_i32 = arith.constant 0 : i32
    %c0_i32_0 = arith.constant 0 : i32
    %c0_i32_1 = arith.constant 0 : i32
    %c0_i32_2 = arith.constant 0 : i32
    return %arg0, %c0_i32, %c0_i32_0, %c0_i32_1 : i32, i32, i32, i32
  }
  func.func @transform_1(%arg0: i32) -> (i32, i32) {
    %c0_i32 = arith.constant 0 : i32
    %c0_i32_0 = arith.constant 0 : i32
    %c0_i32_1 = arith.constant 0 : i32
    return %c0_i32, %c0_i32_0 : i32, i32
  }
  func.func @transform_2(%arg0: i32) -> (i32, i32) {
    %c0_i32 = arith.constant 0 : i32
    %c0_i32_0 = arith.constant 0 : i32
    %c0_i32_1 = arith.constant 0 : i32
    return %c0_i32, %c0_i32_0 : i32, i32
  }
  func.func @transform_3(%arg0: i32) -> (i32, i32) {
    %c0_i32 = arith.constant 0 : i32
    %c0_i32_0 = arith.constant 0 : i32
    %c0_i32_1 = arith.constant 0 : i32
    return %c0_i32, %c0_i32_0 : i32, i32
  }
  func.func @transform_4(%arg0: i32) -> (i32, i32) {
    %c0_i32 = arith.constant 0 : i32
    %c0_i32_0 = arith.constant 0 : i32
    %c0_i32_1 = arith.constant 0 : i32
    return %c0_i32, %c0_i32_0 : i32, i32
  }
  func.func @transform_5(%arg0: i32) -> (i32, i32, i32) {
    %c0_i32 = arith.constant 0 : i32
    %c0_i32_0 = arith.constant 0 : i32
    %c0_i32_1 = arith.constant 0 : i32
    %c0_i32_2 = arith.constant 0 : i32
    return %c0_i32, %c0_i32_0, %c0_i32_1 : i32, i32, i32
  }
  func.func @transform_6(%arg0: i32) -> (i32, i32) {
    %c0_i32 = arith.constant 0 : i32
    %c0_i32_0 = arith.constant 0 : i32
    %c0_i32_1 = arith.constant 0 : i32
    return %c0_i32, %c0_i32_0 : i32, i32
  }
  func.func @transform_7(%arg0: i32) -> (i32, i32) {
    %c0_i32 = arith.constant 0 : i32
    %c0_i32_0 = arith.constant 0 : i32
    %c0_i32_1 = arith.constant 0 : i32
    return %c0_i32, %c0_i32_0 : i32, i32
  }
  func.func @transform_8(%arg0: i32) -> (i32, i32) {
    %c0_i32 = arith.constant 0 : i32
    %c0_i32_0 = arith.constant 0 : i32
    %c0_i32_1 = arith.constant 0 : i32
    return %c0_i32, %c0_i32_0 : i32, i32
  }
  func.func @transform_9(%arg0: i32) -> (i32, i32) {
    %c0_i32 = arith.constant 0 : i32
    %c0_i32_0 = arith.constant 0 : i32
    %c0_i32_1 = arith.constant 0 : i32
    return %c0_i32, %c0_i32_0 : i32, i32
  }
  func.func @transform_10(%arg0: i32) -> (i32, i32, i32) {
    %c0_i32 = arith.constant 0 : i32
    %c0_i32_0 = arith.constant 0 : i32
    %c0_i32_1 = arith.constant 0 : i32
    return %arg0, %c0_i32, %c0_i32_0 : i32, i32, i32
  }
}

</mosaic_0001>

<bundles_post_ra>
// kernel: tpu_custom_call.1
= control target key start
LH: loop header
LB: loop body
LE: loop exit
PB: predicated region body
PF: predicated region fallthrough
CT: control target
= control target key end

     0   :  { %s5113_s0 = inlined_call_operand.hbm [shape: f32[2,8,8,128], index: 0, kind: input, shape index: {}]   ;;  %s5114_s1 = inlined_call_operand.vmem [shape: f32[1,128], index: 1, kind: input, shape index: {}]   ;;  %s5115_s2 = inlined_call_operand.vmem [shape: f32[1,128], index: 2, kind: input, shape index: {}]   ;;  %s5116_s3 = inlined_call_operand.hbm [shape: bf16[128,128], index: 3, kind: input, shape index: {}]   ;;  %s5117_s4 = inlined_call_operand.vmem [shape: f32[1,128], index: 4, kind: input, shape index: {}]   ;;  %s5118_s5 = inlined_call_operand.hbm [shape: bf16[9,128,128], index: 5, kind: input, shape index: {}]   ;;  %s5119_s6 = inlined_call_operand.vmem [shape: f32[1,128], index: 6, kind: input, shape index: {}]   ;;  %s5120_s7 = inlined_call_operand.hbm [shape: bf16[128,128], index: 7, kind: input, shape index: {}]   ;;  %s5121_s8 = inlined_call_operand.hbm [shape: bf16[128,128], index: 8, kind: input, shape index: {}]   ;;  %s5122_s9 = inlined_call_operand.vmem [shape: f32[1,128], index: 9, kind: input, shape index: {}]   ;;  %s5123_s10 = inlined_call_operand.hbm [shape: f32[2,64,128], index: 10, kind: output, shape index: {}]  }
   0x1   :  { %5128 = sst [smem:[#allocation25_spill]] %s5116_s3 }
   0x2   :  { %5129 = sst [smem:[#allocation26_spill]] %s5118_s5 }
   0x3   :  { %5130 = sst [smem:[#allocation27_spill]] %s5120_s7 }
   0x4   :  { %5131 = sst [smem:[#allocation28_spill]] %s5121_s8 }
   0x5   :  { %15 = vsyncpa [#allocation4], 0 }
   0x6   :  { %17 = vsyncpa [#allocation4 + $0x1], 0 }
   0x7   :  { %18 = vsyncpa [#allocation7], 0 }
   0x8   :  { %19 = vsyncpa [#allocation10], 0 }
   0x9   :  { %20 = vsyncpa [#allocation5], 0 }
   0xa   :  { %22 = vsyncpa [#allocation5 + $0x1], 0  ;;  %s4428_s13 = smov 0   ;;  %s4430_s14 = smov 0  }
   0xb   :  { %s4432_s15 = smov 0   ;;  %s4434_s16 = smov 0  }
   0xc LB: > { %s4449_s17 = sadd.s32 4294967295, %s4358_s16   ;;  %s3313_s18 = sadd.s32 4294967294, %s4358_s16   ;;  %s4358_s16 = sphi %s4434_s16, %s5178_s16   ;;  %s4354_s15 = sphi %s4432_s15, %s5177_s15   ;;  %s4350_s14 = sphi %s4430_s14, %s5176_s14   ;;  %s4346_s13 = sphi %s4428_s13, %s5175_s13  }
   0xd   : > { %p48_p0 = scmp.ne.s32.totalorder %s4350_s14, %s4346_s13  ;;  %p5124_p1 = scmp.eq.s32.totalorder %s4449_s17, 0 }
   0xe   : > { %p261_p2 = scmp.eq.s32.totalorder %s4449_s17, 1  ;;  %p267_p3 = scmp.eq.s32.totalorder %s3313_s18, 1 }
   0xf   : > { %p4458_p4 = por %p5124_p1, %p48_p0  ;;  %p3314_p5 = scmp.ge.s32.totalorder %s4358_s16, 1 }
  0x10   : > { %p4463_p6 = por %p267_p3, %p48_p0  ;;  %p274_p7 = scmp.lt.s32.totalorder %s4358_s16, 3 }
  0x11   : > { %s5132_s19 = scalar_select %p4458_p4, 1, 0 }
  0x12   : > { %s5133_s20 = scalar_select %p4463_p6, 1, 0 }
  0x13   : > { %p4468_p8 = pnand %p3314_p5, %p274_p7  ;;  %s4360_s22 = smov [#allocation6]  }
  0x14   : > { %s292_s23 = sshll.u32 %s4360_s22, 4  ;;  %s4361_s25 = smov [#allocation9]   ;;  %s293_s23 = int_to_ptr.vmem [resolvable:$true] %s292_s23 }
  0x15   : > { %s5134_s21 = scalar_select %p4468_p8, 1, 0 }
  0x16   : > { %p3966_p9 = pneg %p4468_p8  ;;  %s324_s26 = sshll.u32 %s4361_s25, 4  ;;  %s325_s26 = int_to_ptr.vmem [resolvable:$true] %s324_s26 }
  0x17   : > { %s4362_s27 = smov [#allocation8]   ;;  %s4165_s29 = scalar_lea.vmem %s293_s23, 1024 }
  0x18   : > { %p4477_p11 = pnand %p3966_p9, %p5124_p1  ;;  %s308_s28 = sshll.u32 %s4362_s27, 4  ;;  %s309_s28 = int_to_ptr.vmem [resolvable:$true] %s308_s28 }
  0x19   : > { %p4166_p13 = scmp.ne.s32.totalorder %s293_s23, %s4165_s29  ;;  %p4173_p5 = scmp.lt.s32.totalorder %s293_s23, %s293_s23 }
  0x1a   : > { %p4156_p12 = pneg %p4477_p11  ;;  %p4174_p7 = scmp.lt.s32.totalorder %s4165_s29, %s4165_s29 }
  0x1c   : > { %p4168_p0 = pnand %p4166_p13, %p4156_p12  ;;  %p4175_p9 = por %p4174_p7, %p4173_p5 }
  0x1e   : > { %p4169_p3 = pneg %p4168_p0 }
  0x20   : > { %p4176_p10 = pnand %p4175_p9, %p4169_p3 }
  0x22   : > { %4179 = shalt.err (!%p4176_p10)
}
  0x23   : > { %s4363_s30 = smov 64   ;;  %s4364_s11 = smov 4  }
  0x24   : > { %s5136_s3 = sld [smem:[#allocation25_spill]]  ;;  %s4191_s22 = scalar_lea.vmem %s325_s26, 1024 }
  0x25   : > { %p4192_p13 = scmp.ne.s32.totalorder %s325_s26, %s4191_s22  ;;  %p4199_p3 = scmp.lt.s32.totalorder %s325_s26, %s325_s26 }
  0x26   : > { %p4200_p10 = scmp.lt.s32.totalorder %s4191_s22, %s4191_s22 }
  0x27   : > { %p4194_p0 = pnand %p4192_p13, %p4156_p12 }
  0x28   : > { %p4201_p7 = por %p4200_p10, %p4199_p3 }
  0x29   : > { %p4195_p5 = pneg %p4194_p0 }
  0x2a   : > { %3969 = dma.hbm_to_vmem [thread:$0]  (!%p4477_p11), %s5136_s3, 1024, %s293_s23, [#allocation7], %s4363_s30, %s4363_s30, %s4364_s11  }
  0x2b   : > { %p4202_p9 = pnand %p4201_p7, %p4195_p5 }
  0x2d   : > { %4205 = shalt.err (!%p4202_p9)
}
  0x2e   : > { %s5137_s7 = sld [smem:[#allocation27_spill]]  ;;  %s4217_s23 = scalar_lea.vmem %s309_s28, 9216 }
  0x2f   : > { %p4218_p1 = scmp.ne.s32.totalorder %s309_s28, %s4217_s23  ;;  %p4225_p3 = scmp.lt.s32.totalorder %s309_s28, %s309_s28 }
  0x30   : > { %p4226_p5 = scmp.lt.s32.totalorder %s4217_s23, %s4217_s23 }
  0x31   : > { %p4220_p13 = pnand %p4218_p1, %p4156_p12 }
  0x32   : > { %p4227_p10 = por %p4226_p5, %p4225_p3 }
  0x33   : > { %p4221_p0 = pneg %p4220_p13 }
  0x34   : > { %3975 = dma.hbm_to_vmem [thread:$0]  (!%p4477_p11), %s5137_s7, 1024, %s325_s26, [#allocation10], %s4363_s30, %s4363_s30, %s4364_s11  }
  0x35   : > { %p4228_p7 = pnand %p4227_p10, %p4221_p0 }
  0x37   : > { %4231 = shalt.err (!%p4228_p7)
}
  0x38   : > { %s5138_s5 = sld [smem:[#allocation26_spill]]  ;;  %s4365_s26 = smov [#allocation11]  }
  0x39   : > { %s337_s18 = sshll.u32 %s4365_s26, 4  ;;  %s338_s18 = int_to_ptr.vmem [resolvable:$true] %s337_s18 }
  0x3a   : > { %s4243_s22 = scalar_lea.vmem %s338_s18, 1024  ;;  %p4251_p0 = scmp.lt.s32.totalorder %s338_s18, %s338_s18 }
  0x3b   : > { %p4244_p1 = scmp.ne.s32.totalorder %s338_s18, %s4243_s22  ;;  %p4252_p3 = scmp.lt.s32.totalorder %s4243_s22, %s4243_s22 }
  0x3d   : > { %p4246_p9 = pnand %p4244_p1, %p4156_p12  ;;  %p4253_p5 = por %p4252_p3, %p4251_p0 }
  0x3e   : > { %3972 = dma.hbm_to_vmem [thread:$0]  (!%p4477_p11), %s5138_s5, 9216, %s309_s28, [#allocation7], %s4363_s30, %s4363_s30, %s4364_s11  }
  0x3f   : > { %p4247_p13 = pneg %p4246_p9 }
  0x41   : > { %p4254_p10 = pnand %p4253_p5, %p4247_p13 }
  0x43   : > { %4257 = shalt.err (!%p4254_p10)
}
  0x44   : > { %s5139_s8 = sld [smem:[#allocation28_spill]]  ;;  %s4528_s27 = sadd.s32 1, %s4358_s16  }
  0x45   : > { %s35_s24 = sadd.s32 1, %s4354_s15  ;;  %s32_s23 = ssub.s32 %s4358_s16, %s4528_s27 }
  0x46   : > { %p42_p12 = scmp.ne.s32.totalorder %s4354_s15, %s4350_s14  ;;  %p33_p7 = scmp.eq.s32.totalorder %s32_s23, 0 }
  0x47   : > { %p43_p1 = scmp.eq.s32.totalorder %s4358_s16, 0  ;;  %p3991_p13 = scmp.lt.s32.totalorder %s4358_s16, 2 }
  0x48   : > { %p4538_p9 = por %p261_p2, %p42_p12  ;;  %s354_s26 = sand.u32 1, %s4354_s15  }
  0x49   : > { %s4544_s12 = scalar_select %p33_p7, %s4354_s15, %s35_s24  }
  0x4a   : > { %3978 = dma.hbm_to_vmem [thread:$0]  (!%p4477_p11), %s5139_s8, 1024, %s338_s18, [#allocation10], %s4363_s30, %s4363_s30, %s4364_s11  }
  0x4b   : > { %s5140_s29 = scalar_select %p4538_p9, 1, 0 }
  0x4c   : > { %p44_p0 = por %p43_p1, %p42_p12  ;;  %s3320_s22 = sshll.u32 %s354_s26, 6 }
  0x4d   : > { %s3504_s30 = sshll.u32 %s4358_s16, 10  ;;  %s358_s25 = scalar_lea.vmem [#allocation3], %s3320_s22 }
  0x4e   : > { %s4551_s28 = scalar_lea.hbm %s5113_s0, %s3504_s30  ;;  %s365_s23 = sshll.u32 %s358_s25, 4  ;;  %s4553_s23 = int_to_ptr.vmem [resolvable:$true] %s365_s23 }
  0x4f   : > { %p4555_p2 = pnand %p3991_p13, %p44_p0  ;;  %s4559_s24 = scalar_lea.sflag [#allocation4], %s354_s26 }
  0x50   : > { %s4258_s5 = scalar_lea.hbm %s4551_s28, 1024  ;;  %s4263_s22 = scalar_lea.hbm %s5113_s0, 2048 }
  0x51   : > { %p4259_p11 = scmp.ne.s32.totalorder %s4551_s28, %s4258_s5  ;;  %p4260_p3 = pneg %p4555_p2 }
  0x52   : > { %p4264_p12 = scmp.lt.s32.totalorder %s4551_s28, %s5113_s0  ;;  %p4265_p7 = scmp.lt.s32.totalorder %s4263_s22, %s4258_s5 }
  0x53   : > { %p4261_p5 = pnand %p4260_p3, %p4259_p11 }
  0x54   : > { %p4266_p1 = por %p4265_p7, %p4264_p12 }
  0x55   : > { %p4262_p10 = pneg %p4261_p5 }
  0x57   : > { %p4267_p13 = pnand %p4266_p1, %p4262_p10 }
  0x59   : > { %4270 = shalt.err (!%p4267_p13)
}
  0x5a   : > { %s4271_s26 = scalar_lea.vmem %s4553_s23, 1024  ;;  %s4366_s7 = smov [#allocation3]  }
  0x5b   : > { %p4272_p0 = scmp.ne.s32.totalorder %s4553_s23, %s4271_s26  ;;  %s4276_s8 = sshll.u32 %s4366_s7, 4  ;;  %s4277_s8 = int_to_ptr.vmem [resolvable:$false] %s4276_s8 }
  0x5c   : > { %s4278_s30 = scalar_lea.vmem %s4277_s8, 2048  ;;  %p4279_p5 = scmp.lt.s32.totalorder %s4553_s23, %s4277_s8 }
  0x5d   : > { %p4274_p6 = pnand %p4272_p0, %p4260_p3  ;;  %p4280_p9 = scmp.lt.s32.totalorder %s4278_s30, %s4271_s26 }
  0x5f   : > { %p4275_p11 = pneg %p4274_p6  ;;  %p4281_p4 = por %p4280_p9, %p4279_p5 }
  0x61   : > { %p4282_p8 = pnand %p4281_p4, %p4275_p11 }
  0x63   : > { %4285 = shalt.err (!%p4282_p8)
}
  0x64   : > { %s4367_s5 = smov 128   ;;  %s4368_s11 = smov 8  }
  0x65   : > { %3982 = dma.hbm_to_vmem [thread:$0]  (!%p4555_p2), %s4551_s28, 1024, %s4553_s23, %s4559_s24, %s4367_s5, %s4367_s5, %s4368_s11  }
  0x66   : > { %p5142_p3 = scmp.ne.s32.totalorder %s5134_s21, 0 }
  0x68   : > { %377 = sbr.rel (%p5142_p3) target bundleno = 929 (0x3a1), region = 60 }
  0x6d   : > { %s4583_s7 = sand.u32 1, %s4350_s14   ;;  %p5143_p4 = scmp.ne.s32.totalorder %s5132_s19, 0 }
  0x6e   : > { %s3324_s8 = sshll.u32 %s4583_s7, 6  ;;  %s380_s22 = scalar_lea.sflag [#allocation4], %s4583_s7 }
  0x6f   : > { %s4589_s18 = scalar_lea.vmem [#allocation3], %s3324_s8 }
  0x70   : > { %4329 = dma.done.wait (%p5143_p4), %s380_s22, 1024  }
  0x71   : > { %4331 = vsyncadd (%p5143_p4), %s380_s22, 4294966272  ;;  %p5144_p6 = scmp.eq.s32.totalorder %s4449_s17, 0 }
  0x73   : > { %4333 = dma.done.wait (%p5144_p6), [#allocation7], 10240   ;;  %p5145_p8 = pmov %p5144_p6 }
  0x74   : > { %p5146_p9 = pmov %p5144_p6 }
  0x75   : > { %4335 = vsyncadd (%p5145_p8), [#allocation7], 4294957056 }
  0x76   : > { %4337 = dma.done.wait (%p5146_p9), [#allocation10], 2048   ;;  %p5147_p2 = pmov %p5144_p6 }
  0x77   : > { %v4040_v0 = vld [vmem:[#allocation6 + $0x38] sm:$0xff]   ;;  %v4041_v1 = vld [vmem:[#allocation6 + $0x30] sm:$0xff]   ;;  %v4042_v2 = vld [vmem:[#allocation6 + $0x28] sm:$0xff]   ;;  %vm639_vm0 = vcmask 1043459   ;;  %vm640_vm1 = vsmask.f32 7950 }
  0x78   : > { %4339 = vsyncadd (%p5147_p2), [#allocation10], 4294965248  ;;  %3658 = vmatprep.subr.bf16.mxu0 %v4040_v0  ;;  %v4043_v3 = vld [vmem:[#allocation6 + $0x20] sm:$0xff]   ;;  %v438_v5 = vld [vmem:[%s4589_s18 + $0x8] sm:$0xff]  ;;  %v4369_v59 = vmov 0   ;;  %vm666_vm4 = vcmask 1040384  }
  0x79   : > { %3659 = vmatpush3.bf16.msra.mxu0 %v4040_v0  ;;  %v437_v4 = vld [vmem:[%s4589_s18] sm:$0xff]  ;;  %v3330_v6 = vld [vmem:[%s5114_s1] ss:$0 sm:$0xff]  ;;  %v4612_v10 = vld [vmem:[%s4589_s18 + $0x10] sm:$0xff]  ;;  %632 = vst [vmem:[#allocation2 + $0x4] sm:$0xf] %v4369_v59 }
  0x7a   : > { %3660 = vmatprep.subr.bf16.mxu0 %v4041_v1  ;;  %v452_v7 = vmul.f32 %v3330_v6, %v437_v4  ;;  %v453_v8 = vmul.f32 %v3330_v6, %v438_v5  ;;  %v3331_v9 = vld [vmem:[%s5115_s2] ss:$0 sm:$0xff]  ;;  %v4615_v11 = vld [vmem:[%s4589_s18 + $0x18] sm:$0xff]  ;;  %v454_v13 = vmul.f32 %v3330_v6, %v4612_v10  ;;  %v441_v16 = vld [vmem:[%s4589_s18 + $0x20] sm:$0xff]  ;;  %631 = vst [vmem:[#allocation2] sm:$0xf] %v4369_v59 }
  0x7b   : > { %v4044_v12 = vld [vmem:[#allocation6 + $0x18] sm:$0xff]   ;;  %v455_v14 = vmul.f32 %v3330_v6, %v4615_v11  ;;  %v2920_v15 = vpack.c.bf16 %v4615_v11, %v4612_v10  ;;  %v442_v17 = vld [vmem:[%s4589_s18 + $0x28] sm:$0xff]  ;;  %v443_v18 = vld [vmem:[%s4589_s18 + $0x30] sm:$0xff]  ;;  %v456_v21 = vmul.f32 %v3330_v6, %v441_v16  ;;  %633 = vst [vmem:[#allocation2 + $0x8] sm:$0xf] %v4369_v59  ;;  %s5053_s11 = scalar_lea.vmem [#allocation12], %s3324_s8 }
  0x7c   : > { %v467_v19 = vadd.f32 %v3331_v9, %v452_v7  ;;  %v468_v20 = vadd.f32 %v3331_v9, %v453_v8  ;;  %v457_v22 = vmul.f32 %v3330_v6, %v442_v17  ;;  %v444_v23 = vld [vmem:[%s4589_s18 + $0x38] sm:$0xff]  ;;  %v469_v24 = vadd.f32 %v3331_v9, %v454_v13  ;;  %v4049_v33 = vld [vmem:[#allocation8 + $0x70] sm:$0xff]   ;;  %v4051_v42 = vld [vmem:[#allocation8 + $0x68] sm:$0xff]   ;;  %635 = vst [vmem:[#allocation2 + $0x6c] sm:$0xf] %v4369_v59  ;;  %s3202_s8 = sshll.u32 %s5053_s11, 4  ;;  %s5062_s8 = int_to_ptr.vmem [resolvable:$true] %s3202_s8 }
  0x7d   : > { %3661 = vmatpush3.bf16.msra.mxu0 %v4041_v1  ;;  %v470_v25 = vadd.f32 %v3331_v9, %v455_v14  ;;  %v458_v26 = vmul.f32 %v3330_v6, %v443_v18  ;;  %v459_v27 = vmul.f32 %v3330_v6, %v444_v23  ;;  %v4048_v28 = vld [vmem:[#allocation8 + $0x78] sm:$0xff]   ;;  %v471_v31 = vadd.f32 %v3331_v9, %v456_v21  ;;  %v4045_v34 = vld [vmem:[#allocation6 + $0x10] sm:$0xff]   ;;  %v4046_v45 = vld [vmem:[#allocation6 + $0x8] sm:$0xff]   ;;  %s3513_s22 = sshll.u32 %s4449_s17, 10  ;;  %s3189_s21 = scalar_lea.sflag [#allocation5], %s4583_s7 }
  0x7e   : > { %3662 = vmatprep.subr.bf16.mxu0 %v4042_v2  ;;  %v475_v29 = vmax.f32 %v467_v19, 0.0  ;;  %v476_v30 = vmax.f32 %v468_v20, 0.0  ;;  %v472_v32 = vadd.f32 %v3331_v9, %v457_v22  ;;  %v477_v35 = vmax.f32 %v469_v24, 0.0  ;;  %3682 = vmatprep.subr.bf16.mxu1 %v4048_v28  ;;  %v4047_v46 = vld [vmem:[#allocation6] sm:$0xff]   ;;  %v4050_v47 = vld [vmem:[#allocation8 + $0x38] sm:$0xff]   ;;  %v4052_v51 = vld [vmem:[#allocation8 + $0x30] sm:$0xff]   ;;  %s5068_s19 = scalar_lea.hbm %s5123_s10, %s3513_s22 }
  0x7f   : > { %v473_v36 = vadd.f32 %v3331_v9, %v458_v26  ;;  %v474_v37 = vadd.f32 %v3331_v9, %v459_v27  ;;  %v478_v39 = vmax.f32 %v470_v25, 0.0  ;;  %v479_v40 = vmax.f32 %v471_v31, 0.0  ;;  %3683 = vmatpush3.bf16.msra.mxu1 %v4048_v28  ;;  %v4053_v52 = vld [vmem:[#allocation8 + $0x60] sm:$0xff]   ;;  %v4054_v53 = vld [vmem:[#allocation8 + $0x28] sm:$0xff]   ;;  %v4055_v54 = vld [vmem:[#allocation8 + $0x58] sm:$0xff]   ;;  %s4286_s17 = scalar_lea.vmem %s5062_s8, 1024 }
  0x80   : > { %v483_v38 = vpack.c.bf16 %v476_v30, %v475_v29  ;;  %v480_v41 = vmax.f32 %v472_v32, 0.0  ;;  %3684 = vmatprep.subr.bf16.mxu1 %v4049_v33  ;;  %v4056_v55 = vld [vmem:[#allocation8 + $0x20] sm:$0xff]   ;;  %v4057_v56 = vld [vmem:[#allocation8 + $0x50] sm:$0xff]   ;;  %vm4625_vm2 = vmand %vm639_vm0, %vm640_vm1  ;;  %636 = vst [vmem:[#allocation2 + $0x70] sm:$0xf] %v4369_v59  ;;  %p4287_p10 = scmp.ne.s32.totalorder %s5062_s8, %s4286_s17  ;;  %p5172_p12 = scmp.ne.s32.totalorder %s5140_s29, 0 }
  0x81   : > { %3663 = vmatpush3.bf16.msra.mxu0 %v4042_v2  ;;  %v481_v43 = vmax.f32 %v473_v36, 0.0  ;;  %v482_v44 = vmax.f32 %v474_v37, 0.0  ;;  %v484_v48 = vpack.c.bf16 %v478_v39, %v477_v35  ;;  %v648_v58 = vld [vmem:[#allocation2 + $0x24] sm:$0x8]  ;;  %637 = vst [vmem:[#allocation2 + $0x74] sm:$0xf] %v4369_v59 }
  0x82   : > { %3664 = vmatprep.subr.bf16.mxu0 %v4043_v3  ;;  %3674 = vmatprep.mubr.bf16.mxu0 %v483_v38  ;;  %v485_v49 = vpack.c.bf16 %v480_v41, %v479_v40  ;;  %vm667_vm3 = vsmask.f32 256  ;;  %v649_v60 = vsel %vm4625_vm2, 0, %v648_v58  ;;  %v642_v61 = vld [vmem:[#allocation2 + $0xc] sm:$0x8]  ;;  %v4058_v62 = vld [vmem:[#allocation8 + $0x18] sm:$0xff]   ;;  %p4288_p7 = pnand %p4287_p10, %p5172_p12 }
  0x83   : > { %3685 = vmatpush3.bf16.msra.mxu1 %v4049_v33  ;;  %v486_v50 = vpack.c.bf16 %v482_v44, %v481_v43  ;;  %650 = vst [vmem:[#allocation2 + $0x24] sm:$0x8] %v649_v60  ;;  %v643_v63 = vsel %vm4625_vm2, 0, %v642_v61  ;;  %vm4634_vm5 = vmand %vm666_vm4, %vm667_vm3  ;;  %v4059_v1 = vld [vmem:[#allocation8 + $0x48] sm:$0xff]   ;;  %v669_v2 = vld [vmem:[#allocation2 + $0x14] sm:$0x1] }
  0x84   : > { %3686 = vmatprep.subr.bf16.mxu1 %v4051_v42  ;;  %644 = vst [vmem:[#allocation2 + $0xc] sm:$0x8] %v643_v63  ;;  %v670_v4 = vsel %vm4634_vm5, 0, %v669_v2  ;;  %v645_v6 = vld [vmem:[#allocation2 + $0x18] sm:$0x8]  ;;  %v4060_v7 = vld [vmem:[#allocation8 + $0x10] sm:$0xff]   ;;  %p4289_p1 = pneg %p4288_p7 }
  0x85   : > { %3665 = vmatpush3.bf16.msra.mxu0 %v4043_v3  ;;  %v651_v3 = vld [vmem:[#allocation2 + $0x30] sm:$0x8]  ;;  %671 = vst [vmem:[#allocation2 + $0x14] sm:$0x1] %v670_v4  ;;  %v646_v8 = vsel %vm4625_vm2, 0, %v645_v6  ;;  %v4061_v9 = vld [vmem:[#allocation8 + $0x40] sm:$0xff]  }
  0x86   : > { %3666 = vmatprep.subr.bf16.mxu0 %v4044_v12  ;;  %v652_v5 = vsel %vm4625_vm2, 0, %v651_v3  ;;  %647 = vst [vmem:[#allocation2 + $0x18] sm:$0x8] %v646_v8  ;;  %v4063_v13 = vld [vmem:[#allocation8 + $0x8] sm:$0xff]   ;;  %v4644_v14 = vld [vmem:[#allocation8 + $0xb8] sm:$0xff]   ;;  %v4066_v17 = vld [vmem:[#allocation8] sm:$0xff]  }
  0x87   : > { %3687 = vmatpush3.bf16.msra.mxu1 %v4051_v42  ;;  %653 = vst [vmem:[#allocation2 + $0x30] sm:$0x8] %v652_v5  ;;  %v657_v18 = vld [vmem:[#allocation2 + $0x48] sm:$0x8]  ;;  %v660_v19 = vld [vmem:[#allocation2 + $0x54] sm:$0x8] }
  0x88   : > { %3688 = vmatprep.subr.bf16.mxu1 %v4053_v52  ;;  %v658_v20 = vsel %vm4625_vm2, 0, %v657_v18  ;;  %v661_v21 = vsel %vm4625_vm2, 0, %v660_v19  ;;  %v4653_v22 = vld [vmem:[#allocation8 + $0xf8] sm:$0xff]   ;;  %v672_v23 = vld [vmem:[#allocation2 + $0x20] sm:$0x1]  ;;  %s4370_s28 = smov [#allocation12]  }
  0x89   : > { %3667 = vmatpush3.bf16.msra.mxu0 %v4044_v12  ;;  %v654_v12 = vld [vmem:[#allocation2 + $0x3c] sm:$0x8]  ;;  %659 = vst [vmem:[#allocation2 + $0x48] sm:$0x8] %v658_v20  ;;  %662 = vst [vmem:[#allocation2 + $0x54] sm:$0x8] %v661_v21 }
  0x8a   : > { %3668 = vmatprep.subr.bf16.mxu0 %v4045_v34  ;;  %v655_v16 = vsel %vm4625_vm2, 0, %v654_v12  ;;  %v673_v24 = vsel %vm4634_vm5, 0, %v672_v23  ;;  %v675_v25 = vld [vmem:[#allocation2 + $0x2c] sm:$0x1]  ;;  %v678_v27 = vld [vmem:[#allocation2 + $0x38] sm:$0x1] }
  0x8b   : > { %3689 = vmatpush3.bf16.msra.mxu1 %v4053_v52  ;;  %656 = vst [vmem:[#allocation2 + $0x3c] sm:$0x8] %v655_v16  ;;  %674 = vst [vmem:[#allocation2 + $0x20] sm:$0x1] %v673_v24  ;;  %v676_v26 = vsel %vm4634_vm5, 0, %v675_v25  ;;  %v679_v28 = vsel %vm4634_vm5, 0, %v678_v27 }
  0x8c   : > { %3690 = vmatprep.subr.bf16.mxu1 %v4055_v54  ;;  %677 = vst [vmem:[#allocation2 + $0x2c] sm:$0x1] %v676_v26  ;;  %680 = vst [vmem:[#allocation2 + $0x38] sm:$0x1] %v679_v28  ;;  %v681_v29 = vld [vmem:[#allocation2 + $0x44] sm:$0x1] }
  0x8d   : > { %3669 = vmatpush3.bf16.msra.mxu0 %v4045_v34  ;;  %v682_v30 = vsel %vm4634_vm5, 0, %v681_v29  ;;  %v663_v31 = vld [vmem:[#allocation2 + $0x60] sm:$0x8]  ;;  %v684_v32 = vld [vmem:[#allocation2 + $0x50] sm:$0x1]  ;;  %s4290_s23 = sshll.u32 %s4370_s28, 4  ;;  %s4291_s23 = int_to_ptr.vmem [resolvable:$false] %s4290_s23 }
  0x8e   : > { %3670 = vmatprep.subr.bf16.mxu0 %v4046_v45  ;;  %683 = vst [vmem:[#allocation2 + $0x44] sm:$0x1] %v682_v30  ;;  %v687_v33 = vld [vmem:[#allocation2 + $0x5c] sm:$0x1]  ;;  %v664_v34 = vsel %vm4625_vm2, 0, %v663_v31  ;;  %v685_v35 = vsel %vm4634_vm5, 0, %v684_v32  ;;  %p4293_p13 = scmp.lt.s32.totalorder %s5062_s8, %s4291_s23 }
  0x8f   : > { %3691 = vmatpush3.bf16.msra.mxu1 %v4055_v54  ;;  %v688_v36 = vsel %vm4634_vm5, 0, %v687_v33  ;;  %665 = vst [vmem:[#allocation2 + $0x60] sm:$0x8] %v664_v34  ;;  %686 = vst [vmem:[#allocation2 + $0x50] sm:$0x1] %v685_v35  ;;  %s4292_s24 = scalar_lea.vmem %s4291_s23, 2048 }
  0x90   : > { %3692 = vmatprep.subr.bf16.mxu1 %v4057_v56  ;;  %689 = vst [vmem:[#allocation2 + $0x5c] sm:$0x1] %v688_v36  ;;  %v690_v37 = vld [vmem:[#allocation2 + $0x68] sm:$0x1]  ;;  %v4672_v39 = vld [vmem:[#allocation2 + $0x4] sm:$0xf]  ;;  %p4294_p0 = scmp.lt.s32.totalorder %s4292_s24, %s4286_s17 }
  0x91   : > { %3671 = vmatpush3.bf16.msra.mxu0 %v4046_v45  ;;  %v691_v38 = vsel %vm4634_vm5, 0, %v690_v37  ;;  %v1154_v40 = vld [vmem:[#allocation2 + $0x4] sm:$0xf]  ;;  %v4677_v41 = vld [vmem:[%s5117_s4] ss:$0 sm:$0xff]  ;;  %v757_v42 = vshrl.u32 %v4672_v39, 16 }
  0x92   : > { %3672 = vmatprep.subr.bf16.mxu0 %v4047_v46  ;;  %692 = vst [vmem:[#allocation2 + $0x68] sm:$0x1] %v691_v38  ;;  %v739_v43 = vld [vmem:[#allocation2 + $0x24] sm:$0x8]  ;;  %v1174_v44 = vshrl.u32 %v1154_v40, 16  ;;  %v1177_v45 = vshll.u32 %v1154_v40, 16  ;;  %p4295_p11 = por %p4294_p0, %p4293_p13 }
  0x93   : > { %3693 = vmatpush3.bf16.msra.mxu1 %v4057_v56  ;;  %v735_v52 = vld [vmem:[#allocation2 + $0xc] sm:$0x8]  ;;  %vm749_vm6 = vsmask.f32 4368  ;;  %v1155_v60 = vld [vmem:[#allocation2 + $0x8] sm:$0x1] }
  0x94   : > { %3694 = vmatprep.subr.bf16.mxu1 %v4059_v1  ;;  %v1176_v56 = vrot.slane %v1174_v44, 4  ;;  %v1179_v57 = vrot.slane %v1177_v45, 5  ;;  %v765_v0 = vshrl.u32 %v735_v52, 16  ;;  %v1157_v2 = vld [vmem:[#allocation2 + $0x14] sm:$0x1]  ;;  %v1183_v21 = vshll.u32 %v1155_v60, 16  ;;  %vm4715_vm9 = vmor %vm667_vm3, %vm749_vm6  ;;  %p4296_p5 = pnand %p4295_p11, %p4289_p1 }
  0x95   : > { %3673 = vmatpush3.bf16.msra.mxu0 %v4047_v46  ;;  %v741_v6 = vld [vmem:[#allocation2 + $0x30] sm:$0x8]  ;;  %v743_v16 = vld [vmem:[#allocation2 + $0x3c] sm:$0x8]  ;;  %v1197_v23 = vshll.u32 %v1157_v2, 16 }
  0x96   : > { %3706 = vmatprep.subr.bf16.mxu0 %v4050_v47  ;;  %v4692_v27 = vrot.slane %v765_v0, 11  ;;  %v1443_v28 = vld [vmem:[#allocation2 + $0x24] sm:$0x8]  ;;  %v804_v30 = vshrl.u32 %v741_v6, 16  ;;  %v817_v31 = vshrl.u32 %v743_v16, 16 }
  0x97   : > { %3695 = vmatpush3.bf16.msra.mxu1 %v4059_v1  ;;  %v737_v1 = vld [vmem:[#allocation2 + $0x18] sm:$0x8]  ;;  %v745_v32 = vld [vmem:[#allocation2 + $0x48] sm:$0x8]  ;;  %vm1170_vm7 = vsmask.f32 3328 }
  0x98   : > { %3675 = vmatmul.mubr.bf16.vlgmr.msra.gmra.mxu0 %v484_v48  ;;  %3696 = vmatprep.subr.bf16.mxu1 %v4061_v9  ;;  %v733_v48 = vld [vmem:[#allocation2] sm:$0x8]  ;;  %v778_v20 = vshrl.u32 %v737_v1, 16  ;;  %vm1171_vm8 = vsmask.f32 7440  ;;  %v4701_v44 = vrot.slane %v1197_v23, 5 }
  0x99   : > { %3678 = vmatprep.mubr.bf16.mxu0 %v485_v49  ;;  %3707 = vmatpush3.bf16.msra.mxu0 %v4050_v47  ;;  %v752_v59 = vshrl.u32 %v733_v48, 16  ;;  %v1482_v45 = vshrl.u32 %v1443_v28, 16  ;;  %vm4738_vm10 = vmor %vm1170_vm7, %vm1171_vm8 }
  0x9a   : > { %3708 = vmatprep.subr.bf16.mxu0 %v4052_v51 }
  0x9b   : > { %3697 = vmatpush3.bf16.msra.mxu1 %v4061_v9  ;;  %v4689_v19 = vrot.slane %v752_v59, 11  ;;  %v4723_v2 = vrot.slane %v1482_v45, 11 }
  0x9c   : > { %3730 = vmatprep.subr.bf16.mxu1 %v4644_v14 }
  0x9d   : > { %3709 = vmatpush3.bf16.msra.mxu0 %v4052_v51  ;;  %v760_v51 = vshll.u32 %v4672_v39, 16 }
  0x9e   : > { %3710 = vmatprep.subr.bf16.mxu0 %v4054_v53 }
  0xa0   : > { %3679 = vmatmul.mubr.bf16.gmra.mxu0 %v486_v50  ;;  %v759_v50 = vrot.slane %v757_v42, 7  ;;  %v4697_v42 = vrot.slane %v778_v20, 11 }
  0xa1   : > { %3711 = vmatpush3.bf16.msra.mxu0 %v4054_v53  ;;  %v791_v53 = vshrl.u32 %v739_v43, 16  ;;  %v4699_v43 = vrot.slane %v1183_v21, 5 }
  0xa2   : > { %3712 = vmatprep.subr.bf16.mxu0 %v4056_v55  ;;  %v4684_v4 = vor.u32 %v760_v51, %v759_v50  ;;  %v830_v50 = vshrl.u32 %v745_v32, 16 }
  0xa3   : > { %v4686_v5 = vrot.slane %v791_v53, 11  ;;  %v4704_v53 = vrot.slane %v804_v30, 11  ;;  %v4067_v30 = vld [vmem:[#allocation8 + $0xb0] sm:$0xff]  }
  0xa5   : > { %3713 = vmatpush3.bf16.msra.mxu0 %v4056_v55 }
  0xa6   : > { %3714 = vmatprep.subr.bf16.mxu0 %v4058_v62 }
  0xa9   : > { %3715 = vmatpush3.bf16.msra.mxu0 %v4058_v62 }
  0xaa   : > { %3716 = vmatprep.subr.bf16.mxu0 %v4060_v7 }
  0xad   : > { %3717 = vmatpush3.bf16.msra.mxu0 %v4060_v7  ;;  %v1439_v7 = vld [vmem:[#allocation2 + $0xc] sm:$0x8] }
  0xae   : > { %3718 = vmatprep.subr.bf16.mxu0 %v4063_v13  ;;  %v1456_v33 = vshrl.u32 %v1439_v7, 16  ;;  %v4725_v7 = vrot.slane %v830_v50, 11 }
  0xb1   : > { %3719 = vmatpush3.bf16.msra.mxu0 %v4063_v13  ;;  %v1180_v13 = vor.u32 %v1179_v57, %v1176_v56 }
  0xb2   : > { %3720 = vmatprep.subr.bf16.mxu0 %v4066_v17 }
  0xb3   : > { %v4695_v38 = vrot.slane %v1180_v13, 4 }
  0xb5   : > { %3721 = vmatpush3.bf16.msra.mxu0 %v4066_v17  ;;  %v1441_v17 = vld [vmem:[#allocation2 + $0x18] sm:$0x8] }
  0xb6   : > { %3754 = vmatprep.subr.bf16.mxu0 %v4653_v22  ;;  %v1469_v34 = vshrl.u32 %v1441_v17, 16 }
  0xb8   : > { %v4710_v56 = vrot.slane %v1469_v34, 11 }
 0x158   : > { %v3676_v46 = vpop.f32.mrf.mxu0 }
 0x159   : > { %v601_v47 = vadd.f32 %v3676_v46, %v4677_v41 }
 0x15a   : > { %v592_v49 = vpop.f32.mrf.mxu0 }
 0x15b   : > { %v625_v54 = vmax.f32 %v601_v47, 0.0  ;;  %v593_v55 = vadd.f32 %v4677_v41, %v592_v49  ;;  %v747_v49 = vld [vmem:[#allocation2 + $0x54] sm:$0x8] }
 0x15c   : > { %v3677_v58 = vpop.f32.mrf.mxu0  ;;  %v843_v1 = vshrl.u32 %v747_v49, 16 }
 0x15d   : > { %v3507_v61 = vpack.c.bf16 %v625_v54, %v625_v54  ;;  %v623_v62 = vmax.f32 %v593_v55, 0.0  ;;  %v604_v63 = vadd.f32 %v3677_v58, %v4677_v41  ;;  %v4706_v54 = vrot.slane %v817_v31, 11 }
 0x15e   : > { %v595_v3 = vpop.f32.mrf.mxu0  ;;  %v4708_v55 = vrot.slane %v1456_v33, 11 }
 0x15f   : > { %727 = vst [vmem:[#allocation2 + $0x28] sm:$0xf] %v3507_v61  ;;  %v3505_v8 = vpack.c.bf16 %v623_v62, %v623_v62  ;;  %v626_v9 = vmax.f32 %v604_v63, 0.0  ;;  %v596_v12 = vadd.f32 %v4677_v41, %v595_v3  ;;  %v763_v63 = vsel %vm4715_vm9, %v4689_v19, %v4684_v4 }
 0x160   : > { %v3680_v18 = vpop.f32.mrf.mxu0 }
 0x161   : > { %725 = vst [vmem:[#allocation2 + $0x10] sm:$0xf] %v3505_v8  ;;  %v3508_v24 = vpack.c.bf16 %v626_v9, %v626_v9  ;;  %v624_v25 = vmax.f32 %v596_v12, 0.0  ;;  %v617_v26 = vadd.f32 %v3680_v18, %v4677_v41 }
 0x162   : > { %v608_v29 = vpop.f32.mrf.mxu0 }
 0x163   : > { %728 = vst [vmem:[#allocation2 + $0x34] sm:$0xf] %v3508_v24  ;;  %v3506_v35 = vpack.c.bf16 %v624_v25, %v624_v25  ;;  %v629_v36 = vmax.f32 %v617_v26, 0.0  ;;  %v609_v37 = vadd.f32 %v4677_v41, %v608_v29  ;;  %v4730_v26 = vrot.slane %v843_v1, 11 }
 0x164   : > { %v3681_v40 = vpop.f32.mrf.mxu0 }
 0x165   : > { %726 = vst [vmem:[#allocation2 + $0x1c] sm:$0xf] %v3506_v35  ;;  %v3511_v46 = vpack.c.bf16 %v629_v36, %v629_v36  ;;  %v627_v47 = vmax.f32 %v609_v37, 0.0  ;;  %v620_v48 = vadd.f32 %v3681_v40, %v4677_v41 }
 0x166   : > { %v611_v51 = vpop.f32.mrf.mxu0  ;;  %v740_v52 = vld [vmem:[#allocation2 + $0x28] sm:$0xf] }
 0x167   : > { %731 = vst [vmem:[#allocation2 + $0x58] sm:$0xf] %v3511_v46  ;;  %v3509_v57 = vpack.c.bf16 %v627_v47, %v627_v47  ;;  %v630_v58 = vmax.f32 %v620_v48, 0.0  ;;  %v612_v59 = vadd.f32 %v4677_v41, %v611_v51  ;;  %v796_v60 = vshrl.u32 %v740_v52, 16  ;;  %v4139_v47 = vld [vmem:[#allocation11 + $0x18] sm:$0xff]  }
 0x168   : > { %v736_v62 = vld [vmem:[#allocation2 + $0x10] sm:$0xf]  ;;  %v799_v23 = vshll.u32 %v740_v52, 16  ;;  %v1186_v51 = vsel %vm4738_vm10, %v4695_v38, %v4699_v43 }
 0x169   : > { %v1156_v0 = vld [vmem:[#allocation2 + $0x10] sm:$0xf]  ;;  %729 = vst [vmem:[#allocation2 + $0x40] sm:$0xf] %v3509_v57  ;;  %v3512_v3 = vpack.c.bf16 %v630_v58, %v630_v58  ;;  %v628_v41 = vmax.f32 %v612_v59, 0.0  ;;  %v770_v6 = vshrl.u32 %v736_v62, 16  ;;  %v3357_v8 = vcombine.low %v4672_v39, %v736_v62 }
 0x16a   : > { %v798_v9 = vrot.slane %v796_v60, 7  ;;  %v742_v12 = vld [vmem:[#allocation2 + $0x34] sm:$0xf]  ;;  %v1188_v13 = vshrl.u32 %v1156_v0, 16  ;;  %v1191_v16 = vshll.u32 %v1156_v0, 16  ;;  %v773_v4 = vshll.u32 %v736_v62, 16 }
 0x16b   : > { %732 = vst [vmem:[#allocation2 + $0x64] sm:$0xf] %v3512_v3  ;;  %v3510_v17 = vpack.c.bf16 %v628_v41, %v628_v41  ;;  %v772_v18 = vrot.slane %v770_v6, 7  ;;  %v809_v19 = vshrl.u32 %v742_v12, 16  ;;  %v4728_v20 = vld [vmem:[#allocation2 + $0x10] sm:$0xf]  ;;  %3698 = vmatprep.mubr.bf16.mxu1 %v3357_v8 }
 0x16c   : > { %v738_v21 = vld [vmem:[#allocation2 + $0x1c] sm:$0xf]  ;;  %v1190_v24 = vrot.slane %v1188_v13, 4  ;;  %v1193_v25 = vrot.slane %v1191_v16, 5  ;;  %v812_v31 = vshll.u32 %v742_v12, 16  ;;  %v801_v32 = vor.u32 %v799_v23, %v798_v9  ;;  %v4070_v62 = vld [vmem:[#allocation8 + $0xa8] sm:$0xff]  }
 0x16d   : > { %730 = vst [vmem:[#allocation2 + $0x4c] sm:$0xf] %v3510_v17  ;;  %v775_v39 = vor.u32 %v773_v4, %v772_v18  ;;  %v783_v28 = vshrl.u32 %v738_v21, 16  ;;  %v3358_v29 = vcombine.low %v738_v21, %v740_v52  ;;  %v811_v33 = vrot.slane %v809_v19, 7  ;;  %v4747_v57 = vld [vmem:[#allocation2 + $0x1c] sm:$0xf] }
 0x16e   : > { %v748_v34 = vld [vmem:[#allocation2 + $0x58] sm:$0xf]  ;;  %v1194_v35 = vor.u32 %v1193_v25, %v1190_v24  ;;  %v1461_v36 = vshrl.u32 %v4728_v20, 16  ;;  %v786_v40 = vshll.u32 %v738_v21, 16  ;;  %v4749_v0 = vld [vmem:[#allocation2 + $0x28] sm:$0xf] }
 0x16f   : > { %v785_v37 = vrot.slane %v783_v28, 7  ;;  %3699 = vmatmul.mubr.bf16.vlgmr.msra.gmra.mxu1 %v3358_v29  ;;  %v776_v45 = vsel %vm4715_vm9, %v4692_v27, %v775_v39  ;;  %v848_v46 = vshrl.u32 %v748_v34, 16  ;;  %v851_v50 = vshll.u32 %v748_v34, 16  ;;  %v1158_v13 = vld [vmem:[#allocation2 + $0x1c] sm:$0xf] }
 0x170   : > { %3731 = vmatpush3.bf16.msra.mxu1 %v4644_v14  ;;  %v3369_v48 = vcombine.low %v763_v63, %v776_v45  ;;  %v744_v49 = vld [vmem:[#allocation2 + $0x40] sm:$0xf]  ;;  %v1195_v52 = vrot.slane %v1194_v35, 4  ;;  %v802_v14 = vsel %vm4715_vm9, %v4686_v5, %v801_v32  ;;  %v814_v1 = vor.u32 %v812_v31, %v811_v33  ;;  %v4073_v21 = vld [vmem:[#allocation8 + $0xa0] sm:$0xff]   ;;  %v4764_v28 = vld [vmem:[#allocation2 + $0x2c] sm:$0x1] }
 0x171   : > { %v788_v27 = vor.u32 %v786_v40, %v785_v37  ;;  %3732 = vmatprep.subr.bf16.mxu1 %v4067_v30  ;;  %v822_v58 = vshrl.u32 %v744_v49, 16  ;;  %v825_v59 = vshll.u32 %v744_v49, 16  ;;  %v3359_v60 = vcombine.low %v742_v12, %v744_v49  ;;  %v1159_v39 = vld [vmem:[#allocation2 + $0x20] sm:$0x1]  ;;  %v1162_v40 = vld [vmem:[#allocation2 + $0x34] sm:$0xf] }
 0x172   : > { %3722 = vmatprep.mubr.bf16.mxu0 %v3369_v48  ;;  %v850_v63 = vrot.slane %v848_v46, 7  ;;  %v1463_v3 = vrot.slane %v1461_v36, 7  ;;  %v1200_v41 = vsel %vm4738_vm10, %v1195_v52, %v4701_v44  ;;  %v1474_v6 = vshrl.u32 %v4747_v57, 16  ;;  %v1164_v33 = vld [vmem:[#allocation2 + $0x40] sm:$0xf]  ;;  %v4075_v46 = vld [vmem:[#allocation8 + $0x98] sm:$0xff]  }
 0x173   : > { %v824_v38 = vrot.slane %v822_v58, 7  ;;  %3702 = vmatprep.mubr.bf16.mxu1 %v3359_v60  ;;  %v789_v43 = vsel %vm4715_vm9, %v4697_v42, %v788_v27  ;;  %v1464_v5 = vshll.u32 %v4728_v20, 16  ;;  %v1216_v16 = vshrl.u32 %v4749_v0, 16  ;;  %v4072_v42 = vld [vmem:[#allocation8 + $0xf0] sm:$0xff]   ;;  %v4074_v35 = vld [vmem:[#allocation8 + $0xe8] sm:$0xff]  }
 0x174   : > { %3733 = vmatpush3.bf16.msra.mxu1 %v4067_v30  ;;  %v3370_v8 = vcombine.low %v789_v43, %v802_v14  ;;  %v746_v9 = vld [vmem:[#allocation2 + $0x4c] sm:$0xf]  ;;  %v853_v12 = vor.u32 %v851_v50, %v850_v63  ;;  %v3381_v44 = vcombine.low %v1186_v51, %v1200_v41  ;;  %v1476_v24 = vrot.slane %v1474_v6, 7  ;;  %v1445_v49 = vld [vmem:[#allocation2 + $0x30] sm:$0x8]  ;;  %v4076_v63 = vld [vmem:[#allocation8 + $0xe0] sm:$0xff]  }
 0x175   : > { %3734 = vmatprep.subr.bf16.mxu1 %v4070_v62  ;;  %v835_v17 = vshrl.u32 %v746_v9, 16  ;;  %v838_v18 = vshll.u32 %v746_v9, 16  ;;  %v3360_v4 = vcombine.low %v746_v9, %v748_v34  ;;  %v827_v19 = vor.u32 %v825_v59, %v824_v38  ;;  %v1163_v52 = vld [vmem:[#allocation2 + $0x38] sm:$0x1]  ;;  %v1165_v27 = vld [vmem:[#allocation2 + $0x44] sm:$0x1] }
 0x176   : > { %3723 = vmatmul.mubr.bf16.vlgmr.msra.gmra.mxu0 %v3370_v8  ;;  %v1466_v23 = vor.u32 %v1464_v5, %v1463_v3  ;;  %v1477_v25 = vshll.u32 %v4747_v57, 16  ;;  %v815_v30 = vsel %vm4715_vm9, %v4704_v53, %v814_v1  ;;  %v1202_v32 = vshrl.u32 %v1158_v13, 16  ;;  %v1447_v14 = vld [vmem:[#allocation2 + $0x3c] sm:$0x8]  ;;  %v4077_v43 = vld [vmem:[#allocation8 + $0x90] sm:$0xff]  }
 0x177   : > { %3755 = vmatpush3.bf16.msra.mxu0 %v4653_v22  ;;  %v837_v29 = vrot.slane %v835_v17, 7  ;;  %3703 = vmatmul.mubr.bf16.gmra.mxu1 %v3360_v4  ;;  %v828_v31 = vsel %vm4715_vm9, %v4706_v54, %v827_v19  ;;  %v1205_v37 = vshll.u32 %v1158_v13, 16  ;;  %v1219_v22 = vshll.u32 %v4749_v0, 16  ;;  %v1449_v9 = vld [vmem:[#allocation2 + $0x48] sm:$0x8]  ;;  %v4078_v19 = vld [vmem:[#allocation8 + $0xd8] sm:$0xff]  }
 0x178   : > { %3735 = vmatpush3.bf16.msra.mxu1 %v4070_v62  ;;  %3746 = vmatprep.mubr.bf16.mxu1 %v3381_v44  ;;  %v3371_v34 = vcombine.low %v815_v30, %v828_v31  ;;  %v1479_v36 = vor.u32 %v1477_v25, %v1476_v24  ;;  %v854_v53 = vsel %vm4715_vm9, %v4730_v26, %v853_v12  ;;  %v1211_v54 = vshll.u32 %v1159_v39, 16  ;;  %v1166_v13 = vld [vmem:[#allocation2 + $0x4c] sm:$0xf]  ;;  %v1167_v4 = vld [vmem:[#allocation2 + $0x50] sm:$0x1]  ;;  %v4079_v39 = vld [vmem:[#allocation8 + $0x88] sm:$0xff]  }
 0x179   : > { %3756 = vmatprep.subr.bf16.mxu0 %v4072_v42  ;;  %3736 = vmatprep.subr.bf16.mxu1 %v4073_v21  ;;  %v840_v45 = vor.u32 %v838_v18, %v837_v29  ;;  %v1225_v48 = vshll.u32 %v4764_v28, 16  ;;  %v1467_v50 = vsel %vm4715_vm9, %v4708_v55, %v1466_v23  ;;  %v1244_v58 = vshrl.u32 %v1164_v33, 16  ;;  %v1169_v24 = vld [vmem:[#allocation2 + $0x5c] sm:$0x1]  ;;  %v4793_v30 = vld [vmem:[#allocation2 + $0x34] sm:$0xf] }
 0x17a   : > { %3726 = vmatprep.mubr.bf16.mxu0 %v3371_v34  ;;  %v1480_v51 = vsel %vm4715_vm9, %v4710_v56, %v1479_v36  ;;  %v1247_v59 = vshll.u32 %v1164_v33, 16  ;;  %v1218_v60 = vrot.slane %v1216_v16, 4  ;;  %v1230_v62 = vshrl.u32 %v1162_v40, 16 }
 0x17b   : > { %3757 = vmatpush3.bf16.msra.mxu0 %v4072_v42  ;;  %v841_v26 = vsel %vm4715_vm9, %v4725_v7, %v840_v45  ;;  %v1233_v0 = vshll.u32 %v1162_v40, 16  ;;  %v1204_v1 = vrot.slane %v1202_v32, 4  ;;  %v1207_v3 = vrot.slane %v1205_v37, 5  ;;  %v1168_v42 = vld [vmem:[#allocation2 + $0x58] sm:$0xf] }
 0x17c   : > { %3737 = vmatpush3.bf16.msra.mxu1 %v4073_v21  ;;  %3758 = vmatprep.subr.bf16.mxu0 %v4074_v35  ;;  %v3372_v55 = vcombine.low %v841_v26, %v854_v53  ;;  %v1221_v56 = vrot.slane %v1219_v22, 5  ;;  %v3401_v38 = vcombine.low %v1467_v50, %v1480_v51  ;;  %v1239_v41 = vshll.u32 %v1163_v52, 16  ;;  %v4799_v37 = vld [vmem:[#allocation2 + $0x40] sm:$0xf]  ;;  %v4080_v22 = vld [vmem:[#allocation8 + $0xd0] sm:$0xff]  }
 0x17d   : > { %3738 = vmatprep.subr.bf16.mxu1 %v4075_v46  ;;  %v1246_v6 = vrot.slane %v1244_v58, 4  ;;  %v1249_v8 = vrot.slane %v1247_v59, 5  ;;  %v4787_v7 = vrot.slane %v1211_v54, 5  ;;  %v1253_v12 = vshll.u32 %v1165_v27, 16  ;;  %v4805_v50 = vld [vmem:[#allocation2 + $0x28] sm:$0xf] }
 0x17e   : > { %3727 = vmatmul.mubr.bf16.gmra.mxu0 %v3372_v55  ;;  %v1495_v5 = vshrl.u32 %v1445_v49, 16  ;;  %v1508_v16 = vshrl.u32 %v1447_v14, 16  ;;  %v1232_v17 = vrot.slane %v1230_v62, 4  ;;  %v1235_v18 = vrot.slane %v1233_v0, 5  ;;  %v4081_v27 = vld [vmem:[#allocation8 + $0x80] sm:$0xff]  }
 0x17f   : > { %3759 = vmatpush3.bf16.msra.mxu0 %v4074_v35  ;;  %3770 = vmatprep.mubr.bf16.mxu0 %v3401_v38  ;;  %v1208_v21 = vor.u32 %v1207_v3, %v1204_v1  ;;  %v1222_v44 = vor.u32 %v1221_v56, %v1218_v60  ;;  %v4789_v23 = vrot.slane %v1225_v48, 5  ;;  %v1521_v25 = vshrl.u32 %v1449_v9, 16  ;;  %v1877_v38 = vld [vmem:[#allocation2 + $0x1c] sm:$0xf] }
 0x180   : > { %3739 = vmatpush3.bf16.msra.mxu1 %v4075_v46  ;;  %3760 = vmatprep.subr.bf16.mxu0 %v4076_v63  ;;  %v4791_v28 = vrot.slane %v1239_v41, 5  ;;  %v1250_v29 = vor.u32 %v1249_v8, %v1246_v6  ;;  %v1258_v31 = vshrl.u32 %v1166_v13, 16  ;;  %v1261_v32 = vshll.u32 %v1166_v13, 16  ;;  %v4801_v46 = vld [vmem:[#allocation2 + $0x4c] sm:$0xf]  ;;  %v4083_v8 = vld [vmem:[#allocation8 + $0x138] sm:$0xff]  }
 0x181   : > { %3740 = vmatprep.subr.bf16.mxu1 %v4077_v43  ;;  %v4795_v33 = vrot.slane %v1253_v12, 5  ;;  %v4797_v34 = vrot.slane %v1495_v5, 11  ;;  %v1267_v35 = vshll.u32 %v1167_v4, 16  ;;  %v1272_v36 = vshrl.u32 %v1168_v42, 16 }
 0x182   : > { %v1236_v40 = vor.u32 %v1235_v18, %v1232_v17  ;;  %v1275_v45 = vshll.u32 %v1168_v42, 16  ;;  %v1281_v53 = vshll.u32 %v1169_v24, 16  ;;  %v4803_v54 = vrot.slane %v1508_v16, 11  ;;  %v4829_v18 = vld [vmem:[#allocation2 + $0x58] sm:$0xf] }
 0x183   : > { %3761 = vmatpush3.bf16.msra.mxu0 %v4076_v63  ;;  %v1209_v48 = vrot.slane %v1208_v21, 4  ;;  %v1223_v49 = vrot.slane %v1222_v44, 4  ;;  %v1500_v51 = vshrl.u32 %v4793_v30, 16  ;;  %v4808_v52 = vrot.slane %v1521_v25, 11  ;;  %v4832_v21 = vld [vmem:[#allocation2 + $0x64] sm:$0xf] }
 0x184   : > { %3741 = vmatpush3.bf16.msra.mxu1 %v4077_v43  ;;  %3762 = vmatprep.subr.bf16.mxu0 %v4078_v19  ;;  %v1251_v58 = vrot.slane %v1250_v29, 4  ;;  %v1260_v59 = vrot.slane %v1258_v31, 4  ;;  %v1263_v26 = vrot.slane %v1261_v32, 5  ;;  %v1513_v60 = vshrl.u32 %v4799_v37, 16  ;;  %v4082_v43 = vld [vmem:[#allocation8 + $0xc8] sm:$0xff]  }
 0x185   : > { %3742 = vmatprep.subr.bf16.mxu1 %v4079_v39  ;;  %v4811_v62 = vrot.slane %v1267_v35, 5  ;;  %v1274_v0 = vrot.slane %v1272_v36, 4  ;;  %v1277_v14 = vrot.slane %v1275_v45, 5  ;;  %v1526_v55 = vshrl.u32 %v4801_v46, 16  ;;  %v1453_v35 = vld [vmem:[#allocation2 + $0x60] sm:$0x8] }
 0x186   : > { %v1237_v63 = vrot.slane %v1236_v40, 4  ;;  %v1487_v1 = vshrl.u32 %v4805_v50, 16  ;;  %v1490_v3 = vshll.u32 %v4805_v50, 16  ;;  %v4816_v56 = vrot.slane %v1281_v53, 5  ;;  %v4084_v45 = vld [vmem:[#allocation8 + $0xc0] sm:$0xff]  }
 0x187   : > { %3763 = vmatpush3.bf16.msra.mxu0 %v4078_v19  ;;  %v1214_v41 = vsel %vm4738_vm10, %v1209_v48, %v4787_v7  ;;  %v1228_v6 = vsel %vm4738_vm10, %v1223_v49, %v4789_v23  ;;  %v1502_v9 = vrot.slane %v1500_v51, 7  ;;  %v1503_v12 = vshll.u32 %v4793_v30, 16  ;;  %v1875_v7 = vld [vmem:[#allocation2 + $0x10] sm:$0xf] }
 0x188   : > { %3743 = vmatpush3.bf16.msra.mxu1 %v4079_v39  ;;  %3764 = vmatprep.subr.bf16.mxu0 %v4080_v22  ;;  %v1256_v5 = vsel %vm4738_vm10, %v1251_v58, %v4795_v33  ;;  %v1264_v13 = vor.u32 %v1263_v26, %v1260_v59  ;;  %v1515_v16 = vrot.slane %v1513_v60, 7  ;;  %v1516_v17 = vshll.u32 %v4799_v37, 16  ;;  %v4837_v39 = vld [vmem:[#allocation2 + $0x20] sm:$0x1]  ;;  %v1451_v33 = vld [vmem:[#allocation2 + $0x54] sm:$0x8] }
 0x189   : > { %3744 = vmatprep.subr.bf16.mxu1 %v4081_v27  ;;  %v1278_v4 = vor.u32 %v1277_v14, %v1274_v0  ;;  %v1528_v42 = vrot.slane %v1526_v55, 7  ;;  %v1529_v19 = vshll.u32 %v4801_v46, 16  ;;  %v1906_v44 = vshrl.u32 %v1877_v38, 16 }
 0x18a   : > { %v3382_v23 = vcombine.low %v1214_v41, %v1228_v6  ;;  %v1242_v24 = vsel %vm4738_vm10, %v1237_v63, %v4791_v28  ;;  %v1489_v25 = vrot.slane %v1487_v1, 7  ;;  %v1909_v29 = vshll.u32 %v1877_v38, 16  ;;  %v4086_v63 = vld [vmem:[#allocation8 + $0x178] sm:$0xff]  }
 0x18b   : > { %3765 = vmatpush3.bf16.msra.mxu0 %v4080_v22  ;;  %v3383_v31 = vcombine.low %v1242_v24, %v1256_v5  ;;  %v1505_v32 = vor.u32 %v1503_v12, %v1502_v9  ;;  %v1892_v36 = vshrl.u32 %v1875_v7, 16  ;;  %v1895_v40 = vshll.u32 %v1875_v7, 16  ;;  %v4085_v22 = vld [vmem:[#allocation8 + $0x130] sm:$0xff]   ;;  %v1876_v38 = vld [vmem:[#allocation2 + $0x14] sm:$0x1] }
 0x18c   : > { %3745 = vmatpush3.bf16.msra.mxu1 %v4081_v27  ;;  %3766 = vmatprep.subr.bf16.mxu0 %v4082_v43  ;;  %v1265_v53 = vrot.slane %v1264_v13, 4  ;;  %v1518_v48 = vor.u32 %v1516_v17, %v1515_v16  ;;  %v1539_v49 = vshrl.u32 %v4829_v18, 16  ;;  %v1552_v28 = vshrl.u32 %v4832_v21, 16 }
 0x18d   : > { %3778 = vmatprep.subr.bf16.mxu1 %v4083_v8  ;;  %v1279_v51 = vrot.slane %v1278_v4, 4  ;;  %v1531_v58 = vor.u32 %v1529_v19, %v1528_v42  ;;  %v1908_v59 = vrot.slane %v1906_v44, 4  ;;  %v1911_v27 = vrot.slane %v1909_v29, 5 }
 0x18e   : > { %v1492_v26 = vor.u32 %v1490_v3, %v1489_v25  ;;  %v1534_v60 = vshrl.u32 %v1451_v33, 16  ;;  %v1547_v0 = vshrl.u32 %v1453_v35, 16  ;;  %v1915_v14 = vshll.u32 %v4837_v39, 16  ;;  %v4091_v35 = vld [vmem:[#allocation8 + $0x168] sm:$0xff]  }
 0x18f   : > { %3747 = vmatmul.mubr.bf16.vlgmr.msra.gmra.mxu1 %v3382_v23  ;;  %3767 = vmatpush3.bf16.msra.mxu0 %v4082_v43  ;;  %v1506_v55 = vsel %vm4715_vm9, %v4797_v34, %v1505_v32  ;;  %v1542_v1 = vshll.u32 %v4829_v18, 16  ;;  %v1894_v41 = vrot.slane %v1892_v36, 4  ;;  %v1897_v6 = vrot.slane %v1895_v40, 5  ;;  %v4087_v43 = vld [vmem:[#allocation8 + $0x128] sm:$0xff]   ;;  %v4092_v36 = vld [vmem:[#allocation8 + $0x118] sm:$0xff]  }
 0x190   : > { %3750 = vmatprep.mubr.bf16.mxu1 %v3383_v31  ;;  %3779 = vmatpush3.bf16.msra.mxu1 %v4083_v8  ;;  %v1270_v3 = vsel %vm4738_vm10, %v1265_v53, %v4811_v62  ;;  %v1541_v9 = vrot.slane %v1539_v49, 7  ;;  %v1554_v12 = vrot.slane %v1552_v28, 7  ;;  %v1555_v8 = vshll.u32 %v4832_v21, 16  ;;  %v4094_v53 = vld [vmem:[#allocation8 + $0x110] sm:$0xff]   ;;  %v4872_v28 = vld [vmem:[#allocation2 + $0x24] sm:$0x8] }
 0x191   : > { %3768 = vmatprep.subr.bf16.mxu0 %v4084_v45  ;;  %3780 = vmatprep.subr.bf16.mxu1 %v4085_v22  ;;  %v1284_v34 = vsel %vm4738_vm10, %v1279_v51, %v4816_v56  ;;  %v1519_v5 = vsel %vm4715_vm9, %v4803_v54, %v1518_v48  ;;  %v1532_v13 = vsel %vm4715_vm9, %v4808_v52, %v1531_v58  ;;  %v1901_v17 = vshll.u32 %v1876_v38, 16  ;;  %v4089_v54 = vld [vmem:[#allocation8 + $0x170] sm:$0xff]   ;;  %v4090_v52 = vld [vmem:[#allocation8 + $0x120] sm:$0xff]   ;;  %v1881_v48 = vld [vmem:[#allocation2 + $0x34] sm:$0xf] }
 0x192   : > { %v1912_v16 = vor.u32 %v1911_v27, %v1908_v59  ;;  %v1493_v62 = vsel %vm4715_vm9, %v4723_v2, %v1492_v26  ;;  %v3399_v4 = vrot.slane %v1534_v60, 11  ;;  %v3400_v56 = vrot.slane %v1547_v0, 11  ;;  %v1880_v49 = vld [vmem:[#allocation2 + $0x2c] sm:$0x1]  ;;  %v1882_v51 = vld [vmem:[#allocation2 + $0x38] sm:$0x1] }
 0x193   : > { %3769 = vmatpush3.bf16.msra.mxu0 %v4084_v45  ;;  %v3402_v7 = vcombine.low %v1493_v62, %v1506_v55  ;;  %v1898_v42 = vor.u32 %v1897_v6, %v1894_v41  ;;  %v3384_v19 = vcombine.low %v1270_v3, %v1284_v34  ;;  %v3403_v44 = vcombine.low %v1519_v5, %v1532_v13  ;;  %v1883_v58 = vld [vmem:[#allocation2 + $0x40] sm:$0xf]  ;;  %v1885_v59 = vld [vmem:[#allocation2 + $0x4c] sm:$0xf]  ;;  %v4095_v27 = vld [vmem:[#allocation8 + $0x158] sm:$0xff]  }
 0x194   : > { %3781 = vmatpush3.bf16.msra.mxu1 %v4085_v22  ;;  %3802 = vmatprep.subr.bf16.mxu0 %v4086_v63  ;;  %v1544_v23 = vor.u32 %v1542_v1, %v1541_v9  ;;  %v1557_v24 = vor.u32 %v1555_v8, %v1554_v12  ;;  %v1913_v25 = vrot.slane %v1912_v16, 4  ;;  %v1917_v39 = vrot.slane %v1915_v14, 5  ;;  %v4093_v22 = vld [vmem:[#allocation8 + $0x160] sm:$0xff]   ;;  %v4096_v26 = vld [vmem:[#allocation8 + $0x108] sm:$0xff]   ;;  %v1879_v60 = vld [vmem:[#allocation2 + $0x28] sm:$0xf] }
 0x195   : > { %3782 = vmatprep.subr.bf16.mxu1 %v4087_v43  ;;  %v3413_v2 = vcombine.low %v4728_v20, %v4747_v57  ;;  %v1899_v29 = vrot.slane %v1898_v42, 4  ;;  %v1903_v31 = vrot.slane %v1901_v17, 5  ;;  %v1934_v0 = vshrl.u32 %v1881_v48, 16  ;;  %v4097_v12 = vld [vmem:[#allocation8 + $0x150] sm:$0xff]   ;;  %v4098_v8 = vld [vmem:[#allocation8 + $0x100] sm:$0xff]  }
 0x196   : > { %3771 = vmatmul.mubr.bf16.vlgmr.msra.gmra.mxu0 %v3402_v7  ;;  %v1545_v32 = vsel %vm4715_vm9, %v3399_v4, %v1544_v23  ;;  %v1558_v33 = vsel %vm4715_vm9, %v3400_v56, %v1557_v24  ;;  %v1918_v40 = vsel %vm4738_vm10, %v1913_v25, %v1917_v39  ;;  %v1937_v14 = vshll.u32 %v1881_v48, 16  ;;  %v4875_v13 = vld [vmem:[#allocation2 + $0x1c] sm:$0xf]  ;;  %v1884_v16 = vld [vmem:[#allocation2 + $0x44] sm:$0x1]  ;;  %v4101_v39 = vld [vmem:[#allocation8 + $0x1b8] sm:$0xff]  }
 0x197   : > { %3751 = vmatmul.mubr.bf16.gmra.mxu1 %v3384_v19  ;;  %3774 = vmatprep.mubr.bf16.mxu0 %v3403_v44  ;;  %v3404_v20 = vcombine.low %v1545_v32, %v1558_v33  ;;  %v1904_v57 = vsel %vm4738_vm10, %v1899_v29, %v1903_v31  ;;  %v2188_v55 = vshrl.u32 %v4872_v28, 16  ;;  %v1951_v1 = vshll.u32 %v1883_v58, 16  ;;  %v4877_v62 = vld [vmem:[#allocation2 + $0x28] sm:$0xf]  ;;  %v1887_v17 = vld [vmem:[#allocation2 + $0x58] sm:$0xf] }
 0x198   : > { %3803 = vmatpush3.bf16.msra.mxu0 %v4086_v63  ;;  %3783 = vmatpush3.bf16.msra.mxu1 %v4087_v43  ;;  %v3425_v45 = vcombine.low %v1904_v57, %v1918_v40  ;;  %v1948_v63 = vshrl.u32 %v1883_v58, 16  ;;  %v1962_v38 = vshrl.u32 %v1885_v59, 16  ;;  %v1965_v41 = vshll.u32 %v1885_v59, 16  ;;  %v1889_v19 = vld [vmem:[#allocation2 + $0x64] sm:$0xf] }
 0x199   : > { %3794 = vmatprep.mubr.bf16.mxu1 %v3413_v2  ;;  %3804 = vmatprep.subr.bf16.mxu0 %v4089_v54  ;;  %v1920_v6 = vshrl.u32 %v1879_v60, 16  ;;  %v1923_v3 = vshll.u32 %v1879_v60, 16  ;;  %v1929_v43 = vshll.u32 %v1880_v49, 16  ;;  %v1943_v9 = vshll.u32 %v1882_v51, 16  ;;  %v1886_v24 = vld [vmem:[#allocation2 + $0x50] sm:$0x1] }
 0x19a   : > { %3784 = vmatprep.subr.bf16.mxu1 %v4090_v52  ;;  %v1936_v34 = vrot.slane %v1934_v0, 4  ;;  %v1939_v5 = vrot.slane %v1937_v14, 5  ;;  %v1950_v7 = vrot.slane %v1948_v63, 4  ;;  %v1953_v4 = vrot.slane %v1951_v1, 5  ;;  %v4099_v25 = vld [vmem:[#allocation8 + $0x148] sm:$0xff]   ;;  %v4104_v63 = vld [vmem:[#allocation8 + $0x1b0] sm:$0xff]  }
 0x19b   : > { %v1964_v56 = vrot.slane %v1962_v38, 4  ;;  %v1967_v42 = vrot.slane %v1965_v41, 5  ;;  %v1922_v44 = vrot.slane %v1920_v6, 4  ;;  %v4879_v23 = vrot.slane %v1929_v43, 5  ;;  %v2158_v31 = vld [vmem:[#allocation2 + $0x18] sm:$0x8] }
 0x19c   : > { %3805 = vmatpush3.bf16.msra.mxu0 %v4089_v54  ;;  %3785 = vmatpush3.bf16.msra.mxu1 %v4090_v52  ;;  %v1925_v54 = vrot.slane %v1923_v3, 5  ;;  %v2180_v52 = vshrl.u32 %v4875_v13, 16  ;;  %v1940_v2 = vor.u32 %v1939_v5, %v1936_v34  ;;  %v1945_v29 = vrot.slane %v1943_v9, 5  ;;  %v1888_v58 = vld [vmem:[#allocation2 + $0x5c] sm:$0x1] }
 0x19d   : > { %3806 = vmatprep.subr.bf16.mxu0 %v4091_v35  ;;  %3786 = vmatprep.subr.bf16.mxu1 %v4092_v36  ;;  %v2193_v32 = vshrl.u32 %v4877_v62, 16  ;;  %v1976_v33 = vshrl.u32 %v1887_v17, 16  ;;  %v1993_v40 = vshll.u32 %v1889_v19, 16  ;;  %v1957_v57 = vshll.u32 %v1884_v16, 16  ;;  %v1890_v14 = vld [vmem:[#allocation2 + $0x68] sm:$0x1] }
 0x19e   : > { %3775 = vmatmul.mubr.bf16.gmra.mxu0 %v3404_v20  ;;  %v1954_v20 = vor.u32 %v1953_v4, %v1950_v7  ;;  %v1926_v48 = vor.u32 %v1925_v54, %v1922_v44  ;;  %v2175_v49 = vshrl.u32 %v2158_v31, 16  ;;  %v2182_v51 = vrot.slane %v2180_v52, 7  ;;  %v4107_v7 = vld [vmem:[#allocation8 + $0x1a8] sm:$0xff]   ;;  %v4109_v31 = vld [vmem:[#allocation8 + $0x1a0] sm:$0xff]  }
 0x19f   : > { %3818 = vmatprep.mubr.bf16.mxu0 %v3425_v45  ;;  %v1968_v45 = vor.u32 %v1967_v42, %v1964_v56  ;;  %v3415_v59 = vcombine.low %v4799_v37, %v4801_v46  ;;  %v2183_v60 = vshll.u32 %v4875_v13, 16  ;;  %v2195_v0 = vrot.slane %v2193_v32, 7 }
 0x1a0   : > { %3807 = vmatpush3.bf16.msra.mxu0 %v4091_v35  ;;  %3787 = vmatpush3.bf16.msra.mxu1 %v4092_v36  ;;  %v1979_v35 = vshll.u32 %v1887_v17, 16  ;;  %v1990_v36 = vshrl.u32 %v1889_v19, 16  ;;  %v1978_v1 = vrot.slane %v1976_v33, 4  ;;  %v1959_v6 = vrot.slane %v1957_v57, 5  ;;  %v4113_v57 = vld [vmem:[#allocation8 + $0x1e0] sm:$0xff]  }
 0x1a1   : > { %3808 = vmatprep.subr.bf16.mxu0 %v4093_v22  ;;  %3788 = vmatprep.subr.bf16.mxu1 %v4094_v53  ;;  %v1969_v3 = vrot.slane %v1968_v45, 4  ;;  %v1927_v9 = vrot.slane %v1926_v48, 4  ;;  %v3437_v37 = vrot.slane %v2175_v49, 11  ;;  %v2185_v46 = vor.u32 %v2183_v60, %v2182_v51  ;;  %v4912_v45 = vld [vmem:[#allocation2 + $0x4c] sm:$0xf] }
 0x1a2   : > { %v1981_v38 = vrot.slane %v1979_v35, 5  ;;  %v1992_v41 = vrot.slane %v1990_v36, 4  ;;  %v3438_v34 = vrot.slane %v2188_v55, 11  ;;  %v1985_v5 = vshll.u32 %v1888_v58, 16  ;;  %v4110_v35 = vld [vmem:[#allocation8 + $0x1e8] sm:$0xff]   ;;  %v4111_v36 = vld [vmem:[#allocation8 + $0x198] sm:$0xff]  }
 0x1a3   : > { %v1999_v16 = vshll.u32 %v1890_v14, 16  ;;  %v1932_v28 = vsel %vm4738_vm10, %v1927_v9, %v4879_v23  ;;  %v2186_v55 = vsel %vm4715_vm9, %v3437_v37, %v2185_v46  ;;  %v4114_v48 = vld [vmem:[#allocation8 + $0x190] sm:$0xff]   ;;  %v4918_v49 = vld [vmem:[#allocation2 + $0x34] sm:$0xf]  ;;  %v2164_v51 = vld [vmem:[#allocation2 + $0x3c] sm:$0x8] }
 0x1a4   : > { %3809 = vmatpush3.bf16.msra.mxu0 %v4093_v22  ;;  %3789 = vmatpush3.bf16.msra.mxu1 %v4094_v53  ;;  %v1971_v22 = vshll.u32 %v1886_v24, 16  ;;  %v3414_v53 = vcombine.low %v4805_v50, %v4793_v30  ;;  %v1995_v30 = vrot.slane %v1993_v40, 5  ;;  %v1955_v50 = vrot.slane %v1954_v20, 4  ;;  %v4910_v40 = vld [vmem:[#allocation2 + $0x40] sm:$0xf]  ;;  %v4115_v14 = vld [vmem:[#allocation8 + $0x1d8] sm:$0xff]  }
 0x1a5   : > { %3810 = vmatprep.subr.bf16.mxu0 %v4095_v27  ;;  %3790 = vmatprep.subr.bf16.mxu1 %v4096_v26  ;;  %v1982_v56 = vor.u32 %v1981_v38, %v1978_v1  ;;  %v3416_v24 = vcombine.low %v4829_v18, %v4832_v21  ;;  %v1987_v52 = vrot.slane %v1985_v5, 5  ;;  %v2219_v58 = vshrl.u32 %v4910_v40, 16  ;;  %v4116_v1 = vld [vmem:[#allocation8 + $0x188] sm:$0xff]   ;;  %v2596_v9 = vld [vmem:[#allocation2 + $0x28] sm:$0xf] }
 0x1a6   : > { %v1973_v43 = vrot.slane %v1971_v22, 5  ;;  %v1996_v42 = vor.u32 %v1995_v30, %v1992_v41  ;;  %v1960_v19 = vsel %vm4738_vm10, %v1955_v50, %v1959_v6  ;;  %v4914_v22 = vld [vmem:[#allocation2 + $0x58] sm:$0xf]  ;;  %v2232_v60 = vshrl.u32 %v4912_v45, 16  ;;  %v4924_v30 = vld [vmem:[#allocation2 + $0x70] sm:$0xf] }
 0x1a7   : > { %v1983_v32 = vrot.slane %v1982_v56, 4  ;;  %v2221_v50 = vrot.slane %v2219_v58, 7  ;;  %v2222_v6 = vshll.u32 %v4910_v40, 16  ;;  %v4117_v5 = vld [vmem:[#allocation8 + $0x1d0] sm:$0xff]   ;;  %v4118_v56 = vld [vmem:[#allocation8 + $0x180] sm:$0xff]  }
 0x1a8   : > { %3811 = vmatpush3.bf16.msra.mxu0 %v4095_v27  ;;  %3791 = vmatpush3.bf16.msra.mxu1 %v4096_v26  ;;  %v4103_v27 = vld [vmem:[#allocation8 + $0x140] sm:$0xff]   ;;  %v1941_v26 = vrot.slane %v1940_v2, 4  ;;  %v1974_v44 = vsel %vm4738_vm10, %v1969_v3, %v1973_v43  ;;  %v1997_v23 = vrot.slane %v1996_v42, 4  ;;  %v2235_v3 = vshll.u32 %v4912_v45, 16 }
 0x1a9   : > { %3812 = vmatprep.subr.bf16.mxu0 %v4097_v12  ;;  %3792 = vmatprep.subr.bf16.mxu1 %v4098_v8  ;;  %v1988_v18 = vsel %vm4738_vm10, %v1983_v32, %v1987_v52  ;;  %v2248_v43 = vshll.u32 %v4914_v22, 16  ;;  %v2234_v37 = vrot.slane %v2232_v60, 7  ;;  %v2172_v52 = vld [vmem:[#allocation2 + $0x6c] sm:$0x8]  ;;  %v4119_v32 = vld [vmem:[#allocation8 + $0x1c8] sm:$0xff]  }
 0x1aa   : > { %v1946_v17 = vsel %vm4738_vm10, %v1941_v26, %v1945_v29  ;;  %v4108_v29 = vld [vmem:[#allocation8 + $0x1f0] sm:$0xff]   ;;  %v2162_v26 = vld [vmem:[#allocation2 + $0x30] sm:$0x8] }
 0x1ab   : > { %v3426_v54 = vcombine.low %v1932_v28, %v1946_v17  ;;  %v2628_v28 = vshll.u32 %v2596_v9, 16 }
 0x1ac   : > { %3813 = vmatpush3.bf16.msra.mxu0 %v4097_v12  ;;  %3793 = vmatpush3.bf16.msra.mxu1 %v4098_v8  ;;  %v2196_v12 = vshll.u32 %v4877_v62, 16  ;;  %v4105_v8 = vld [vmem:[#allocation8 + $0x1f8] sm:$0xff]  }
 0x1ad   : > { %3814 = vmatprep.subr.bf16.mxu0 %v4099_v25  ;;  %3826 = vmatprep.subr.bf16.mxu1 %v4101_v39 }
 0x1ae   : > { %v2198_v4 = vor.u32 %v2196_v12, %v2195_v0  ;;  %v2245_v0 = vshrl.u32 %v4914_v22, 16  ;;  %v4929_v12 = vld [vmem:[#allocation2 + $0x64] sm:$0xf] }
 0x1af   : > { %3795 = vmatmul.mubr.bf16.vlgmr.msra.gmra.mxu1 %v3414_v53  ;;  %v3457_v53 = vcombine.low %v4875_v13, %v4877_v62  ;;  %v2206_v13 = vshrl.u32 %v4918_v49, 16  ;;  %v2214_v62 = vshrl.u32 %v2164_v51, 16  ;;  %v2261_v58 = vshll.u32 %v4929_v12, 16 }
 0x1b0   : > { %3815 = vmatpush3.bf16.msra.mxu0 %v4099_v25  ;;  %3798 = vmatprep.mubr.bf16.mxu1 %v3415_v59  ;;  %v2001_v25 = vrot.slane %v1999_v16, 5  ;;  %v2199_v2 = vsel %vm4715_vm9, %v3438_v34, %v2198_v4  ;;  %v2166_v59 = vld [vmem:[#allocation2 + $0x48] sm:$0x8]  ;;  %v2247_v46 = vrot.slane %v2245_v0, 7  ;;  %v2201_v16 = vshrl.u32 %v2162_v26, 16 }
 0x1b1   : > { %3827 = vmatpush3.bf16.msra.mxu1 %v4101_v39  ;;  %3816 = vmatprep.subr.bf16.mxu0 %v4103_v27  ;;  %v3427_v39 = vcombine.low %v1960_v19, %v1974_v44  ;;  %v3445_v33 = vcombine.low %v2186_v55, %v2199_v2  ;;  %v2227_v38 = vshrl.u32 %v2166_v59, 16  ;;  %v2208_v17 = vrot.slane %v2206_v13, 7  ;;  %v2170_v19 = vld [vmem:[#allocation2 + $0x60] sm:$0x8] }
 0x1b2   : > { %3828 = vmatprep.subr.bf16.mxu1 %v4104_v63  ;;  %v2002_v21 = vsel %vm4738_vm10, %v1997_v23, %v2001_v25  ;;  %v2271_v4 = vshrl.u32 %v4924_v30, 16  ;;  %v2625_v44 = vshrl.u32 %v2596_v9, 16  ;;  %v2209_v55 = vshll.u32 %v4918_v49, 16 }
 0x1b3   : > { %v3428_v20 = vcombine.low %v1988_v18, %v2002_v21  ;;  %v3441_v42 = vrot.slane %v2227_v38, 11  ;;  %v2258_v25 = vshrl.u32 %v4929_v12, 16  ;;  %v2250_v2 = vor.u32 %v2248_v43, %v2247_v46  ;;  %v2595_v18 = vld [vmem:[#allocation2 + $0x20] sm:$0x1]  ;;  %v4120_v21 = vld [vmem:[#allocation8 + $0x238] sm:$0xff]  }
 0x1b4   : > { %3817 = vmatpush3.bf16.msra.mxu0 %v4103_v27  ;;  %v2168_v27 = vld [vmem:[#allocation2 + $0x54] sm:$0x8]  ;;  %v3439_v23 = vrot.slane %v2201_v16, 11  ;;  %v2274_v59 = vshll.u32 %v4924_v30, 16 }
 0x1b5   : > { %3829 = vmatpush3.bf16.msra.mxu1 %v4104_v63  ;;  %3850 = vmatprep.subr.bf16.mxu0 %v4105_v8  ;;  %v2594_v63 = vld [vmem:[#allocation2 + $0x1c] sm:$0xf]  ;;  %v2240_v41 = vshrl.u32 %v2168_v27, 16  ;;  %v2260_v51 = vrot.slane %v2258_v25, 7  ;;  %v2597_v27 = vld [vmem:[#allocation2 + $0x2c] sm:$0x1] }
 0x1b6   : > { %3830 = vmatprep.subr.bf16.mxu1 %v4107_v7  ;;  %v2614_v34 = vshll.u32 %v2594_v63, 16 }
 0x1b7   : > { %3819 = vmatmul.mubr.bf16.vlgmr.msra.gmra.mxu0 %v3426_v54  ;;  %3799 = vmatmul.mubr.bf16.gmra.mxu1 %v3416_v24  ;;  %v2224_v54 = vor.u32 %v2222_v6, %v2221_v50  ;;  %v3442_v24 = vrot.slane %v2240_v41, 11  ;;  %v2634_v50 = vshll.u32 %v2597_v27, 16 }
 0x1b8   : > { %3822 = vmatprep.mubr.bf16.mxu0 %v3427_v39  ;;  %3851 = vmatpush3.bf16.msra.mxu0 %v4105_v8  ;;  %v2611_v8 = vshrl.u32 %v2594_v63, 16  ;;  %v2237_v39 = vor.u32 %v2235_v3, %v2234_v37  ;;  %v4121_v63 = vld [vmem:[#allocation8 + $0x1c0] sm:$0xff]   ;;  %v2263_v3 = vor.u32 %v2261_v58, %v2260_v51  ;;  %v2603_v58 = vld [vmem:[#allocation2 + $0x50] sm:$0x1] }
 0x1b9   : > { %3831 = vmatpush3.bf16.msra.mxu1 %v4107_v7  ;;  %3842 = vmatprep.mubr.bf16.mxu1 %v3445_v33  ;;  %v3440_v7 = vrot.slane %v2214_v62, 11  ;;  %v2211_v33 = vor.u32 %v2209_v55, %v2208_v17  ;;  %v2251_v60 = vsel %vm4715_vm9, %v3442_v24, %v2250_v2  ;;  %v2602_v55 = vld [vmem:[#allocation2 + $0x4c] sm:$0xf]  ;;  %v3460_v2 = vcombine.low %v4929_v12, %v4924_v30  ;;  %v4130_v30 = vld [vmem:[#allocation8 + $0x208] sm:$0xff]   ;;  %v2599_v12 = vld [vmem:[#allocation2 + $0x38] sm:$0x1] }
 0x1ba   : > { %3852 = vmatprep.subr.bf16.mxu0 %v4108_v29  ;;  %3832 = vmatprep.subr.bf16.mxu1 %v4109_v31  ;;  %v2238_v26 = vsel %vm4715_vm9, %v3441_v42, %v2237_v39  ;;  %v3459_v42 = vcombine.low %v4912_v45, %v4914_v22  ;;  %v2667_v45 = vshrl.u32 %v2602_v55, 16  ;;  %v2670_v22 = vshll.u32 %v2602_v55, 16 }
 0x1bb   : > { %v2212_v13 = vsel %vm4715_vm9, %v3439_v23, %v2211_v33  ;;  %v3447_v6 = vcombine.low %v2238_v26, %v2251_v60  ;;  %v2601_v23 = vld [vmem:[#allocation2 + $0x44] sm:$0x1] }
 0x1bc   : > { %3853 = vmatpush3.bf16.msra.mxu0 %v4108_v29  ;;  %v2613_v29 = vrot.slane %v2611_v8, 4  ;;  %v4125_v8 = vld [vmem:[#allocation8 + $0x228] sm:$0xff]  }
 0x1bd   : > { %3833 = vmatpush3.bf16.msra.mxu1 %v4109_v31  ;;  %3854 = vmatprep.subr.bf16.mxu0 %v4110_v35  ;;  %v2616_v31 = vrot.slane %v2614_v34, 5 }
 0x1be   : > { %3834 = vmatprep.subr.bf16.mxu1 %v4111_v36 }
 0x1bf   : > { %3823 = vmatmul.mubr.bf16.gmra.mxu0 %v3428_v20  ;;  %v2273_v20 = vrot.slane %v2271_v4, 7  ;;  %v2617_v0 = vor.u32 %v2616_v31, %v2613_v29  ;;  %v3458_v4 = vcombine.low %v4918_v49, %v4910_v40  ;;  %v4128_v40 = vld [vmem:[#allocation8 + $0x218] sm:$0xff]  }
 0x1c0   : > { %3855 = vmatpush3.bf16.msra.mxu0 %v4110_v35  ;;  %3866 = vmatprep.mubr.bf16.mxu0 %v3457_v53  ;;  %v2253_v35 = vshrl.u32 %v2170_v19, 16  ;;  %v2630_v53 = vrot.slane %v2628_v28, 5  ;;  %v2600_v28 = vld [vmem:[#allocation2 + $0x40] sm:$0xf]  ;;  %v2598_v49 = vld [vmem:[#allocation2 + $0x34] sm:$0xf] }
 0x1c1   : > { %3835 = vmatpush3.bf16.msra.mxu1 %v4111_v36  ;;  %3856 = vmatprep.subr.bf16.mxu0 %v4113_v57  ;;  %v2266_v36 = vshrl.u32 %v2172_v52, 16  ;;  %v2276_v9 = vor.u32 %v2274_v59, %v2273_v20  ;;  %v2618_v37 = vrot.slane %v2617_v0, 4  ;;  %v2653_v24 = vshrl.u32 %v2600_v28, 16  ;;  %v2605_v59 = vld [vmem:[#allocation2 + $0x5c] sm:$0x1] }
 0x1c2   : > { %3836 = vmatprep.subr.bf16.mxu1 %v4114_v48  ;;  %v3443_v38 = vrot.slane %v2253_v35, 11  ;;  %v2656_v52 = vshll.u32 %v2600_v28, 16  ;;  %v2639_v29 = vshrl.u32 %v2598_v49, 16  ;;  %v2642_v31 = vshll.u32 %v2598_v49, 16 }
 0x1c3   : > { %v3444_v43 = vrot.slane %v2266_v36, 11  ;;  %v2655_v33 = vrot.slane %v2653_v24, 4  ;;  %v2672_v36 = vrot.slane %v2670_v22, 5  ;;  %v2662_v0 = vshll.u32 %v2601_v23, 16  ;;  %v4133_v23 = vld [vmem:[#allocation11 + $0x30] sm:$0xff]  }
 0x1c4   : > { %3857 = vmatpush3.bf16.msra.mxu0 %v4113_v57  ;;  %v2627_v57 = vrot.slane %v2625_v44, 4  ;;  %v2264_v16 = vsel %vm4715_vm9, %v3443_v38, %v2263_v3  ;;  %v4126_v44 = vld [vmem:[#allocation8 + $0x220] sm:$0xff]   ;;  %v2658_v35 = vrot.slane %v2656_v52, 5  ;;  %v2644_v51 = vrot.slane %v2642_v31, 5 }
 0x1c5   : > { %3837 = vmatpush3.bf16.msra.mxu1 %v4114_v48  ;;  %3858 = vmatprep.subr.bf16.mxu0 %v4115_v14  ;;  %v2225_v48 = vsel %vm4715_vm9, %v3440_v7, %v2224_v54  ;;  %v2277_v17 = vsel %vm4715_vm9, %v3444_v43, %v2276_v9  ;;  %v2604_v54 = vld [vmem:[#allocation2 + $0x58] sm:$0xf]  ;;  %v2690_v38 = vshll.u32 %v2605_v59, 16 }
 0x1c6   : > { %3838 = vmatprep.subr.bf16.mxu1 %v4116_v1  ;;  %v3446_v62 = vcombine.low %v2212_v13, %v2225_v48  ;;  %v2631_v41 = vor.u32 %v2630_v53, %v2627_v57  ;;  %v2681_v25 = vshrl.u32 %v2604_v54, 16  ;;  %v2684_v39 = vshll.u32 %v2604_v54, 16  ;;  %v2606_v53 = vld [vmem:[#allocation2 + $0x64] sm:$0xf]  ;;  %v4145_v59 = vld [vmem:[#allocation11] sm:$0xff]  }
 0x1c7   : > { %v2641_v48 = vrot.slane %v2639_v29, 4  ;;  %v2659_v60 = vor.u32 %v2658_v35, %v2655_v33  ;;  %v2698_v13 = vshll.u32 %v2606_v53, 16  ;;  %v4134_v33 = vld [vmem:[#allocation9 + $0x38] sm:$0xff]   ;;  %v4135_v35 = vld [vmem:[#allocation11 + $0x28] sm:$0xff]  }
 0x1c8   : > { %3859 = vmatpush3.bf16.msra.mxu0 %v4115_v14  ;;  %v2620_v14 = vshll.u32 %v2595_v18, 16  ;;  %v2632_v34 = vrot.slane %v2631_v41, 4  ;;  %v2608_v18 = vld [vmem:[#allocation2 + $0x70] sm:$0xf]  ;;  %v2683_v20 = vrot.slane %v2681_v25, 4  ;;  %v2686_v57 = vrot.slane %v2684_v39, 5 }
 0x1c9   : > { %3839 = vmatpush3.bf16.msra.mxu1 %v4116_v1  ;;  %3860 = vmatprep.subr.bf16.mxu0 %v4117_v5  ;;  %v4122_v1 = vld [vmem:[#allocation8 + $0x230] sm:$0xff]   ;;  %v2709_v27 = vshrl.u32 %v2608_v18, 16  ;;  %v2712_v26 = vshll.u32 %v2608_v18, 16  ;;  %v2645_v41 = vor.u32 %v2644_v51, %v2641_v48  ;;  %v2660_v9 = vrot.slane %v2659_v60, 4  ;;  %v4143_v48 = vld [vmem:[#allocation11 + $0x8] sm:$0xff]  }
 0x1ca   : > { %3840 = vmatprep.subr.bf16.mxu1 %v4118_v56  ;;  %v2622_v46 = vrot.slane %v2620_v14, 5  ;;  %v2695_v14 = vshrl.u32 %v2606_v53, 16  ;;  %v4136_v18 = vld [vmem:[#allocation9 + $0x30] sm:$0xff]   ;;  %v4142_v53 = vld [vmem:[#allocation9 + $0x18] sm:$0xff]  }
 0x1cb   : > { %v2711_v3 = vrot.slane %v2709_v27, 4  ;;  %v2714_v43 = vrot.slane %v2712_v26, 5  ;;  %v4149_v27 = vld [vmem:[%s4589_s18 + $0x8] sm:$0xff] }
 0x1cc   : > { %3861 = vmatpush3.bf16.msra.mxu0 %v4117_v5  ;;  %v2636_v5 = vrot.slane %v2634_v50, 5  ;;  %v2623_v7 = vsel %vm4738_vm10, %v2618_v37, %v2622_v46  ;;  %v2648_v50 = vshll.u32 %v2599_v12, 16  ;;  %v2664_v37 = vrot.slane %v2662_v0, 5  ;;  %v2607_v46 = vld [vmem:[#allocation2 + $0x68] sm:$0x1]  ;;  %v4148_v12 = vld [vmem:[%s4589_s18] sm:$0xff] }
 0x1cd   : > { %3841 = vmatpush3.bf16.msra.mxu1 %v4118_v56  ;;  %3862 = vmatprep.subr.bf16.mxu0 %v4119_v32  ;;  %v3448_v56 = vcombine.low %v2264_v16, %v2277_v17  ;;  %v2704_v28 = vshll.u32 %v2607_v46, 16  ;;  %v2919_v26 = vpack.c.bf16 %v4149_v27, %v4148_v12  ;;  %v4147_v0 = vld [vmem:[#allocation9] sm:$0xff]  }
 0x1ce   : > { %3874 = vmatprep.subr.bf16.mxu1 %v4120_v21  ;;  %v2637_v19 = vsel %vm4738_vm10, %v2632_v34, %v2636_v5  ;;  %v2700_v34 = vrot.slane %v2698_v13, 5  ;;  %v4150_v13 = vld [vmem:[%s4589_s18 + $0x20] sm:$0xff] }
 0x1cf   : > { %v3469_v61 = vcombine.low %v2623_v7, %v2637_v19  ;;  %v2692_v7 = vrot.slane %v2690_v38, 5  ;;  %v2715_v19 = vor.u32 %v2714_v43, %v2711_v3  ;;  %v2706_v25 = vrot.slane %v2704_v28, 5  ;;  %v4152_v38 = vld [vmem:[%s4589_s18 + $0x30] sm:$0xff] }
 0x1d0   : > { %3843 = vmatmul.mubr.bf16.vlgmr.msra.gmra.mxu1 %v3446_v62  ;;  %3863 = vmatpush3.bf16.msra.mxu0 %v4119_v32  ;;  %v4129_v32 = vld [vmem:[#allocation8 + $0x210] sm:$0xff]  }
 0x1d1   : > { %3846 = vmatprep.mubr.bf16.mxu1 %v3447_v6  ;;  %3875 = vmatpush3.bf16.msra.mxu1 %v4120_v21  ;;  %v2669_v21 = vrot.slane %v2667_v45, 4  ;;  %v4131_v6 = vld [vmem:[#allocation8 + $0x200] sm:$0xff]   ;;  %v2716_v52 = vrot.slane %v2715_v19, 4 }
 0x1d2   : > { %3864 = vmatprep.subr.bf16.mxu0 %v4121_v63  ;;  %3876 = vmatprep.subr.bf16.mxu1 %v4122_v1 }
 0x1d3   : > { %v2673_v62 = vor.u32 %v2672_v36, %v2669_v21  ;;  %v4137_v21 = vld [vmem:[#allocation11 + $0x20] sm:$0xff]   ;;  %v4138_v36 = vld [vmem:[#allocation9 + $0x28] sm:$0xff]  }
 0x1d4   : > { %3865 = vmatpush3.bf16.msra.mxu0 %v4121_v63  ;;  %v2676_v63 = vshll.u32 %v2603_v58, 16  ;;  %v4144_v58 = vld [vmem:[#allocation9 + $0x10] sm:$0xff]  }
 0x1d5   : > { %3877 = vmatpush3.bf16.msra.mxu1 %v4122_v1  ;;  %v2687_v1 = vor.u32 %v2686_v57, %v2683_v20  ;;  %v2674_v5 = vrot.slane %v2673_v62, 4  ;;  %v4140_v20 = vld [vmem:[#allocation9 + $0x20] sm:$0xff]   ;;  %v4141_v57 = vld [vmem:[#allocation11 + $0x10] sm:$0xff]   ;;  %v4151_v62 = vld [vmem:[%s4589_s18 + $0x28] sm:$0xff] }
 0x1d6   : > { %3878 = vmatprep.subr.bf16.mxu1 %v4125_v8  ;;  %v2678_v16 = vrot.slane %v2676_v63, 5  ;;  %v2921_v63 = vpack.c.bf16 %v4151_v62, %v4150_v13 }
 0x1d7   : > { %3867 = vmatmul.mubr.bf16.vlgmr.msra.gmra.mxu0 %v3458_v4  ;;  %v2688_v17 = vrot.slane %v2687_v1, 4  ;;  %v2609_v4 = vld [vmem:[#allocation2 + $0x74] sm:$0x1] }
 0x1d8   : > { %3847 = vmatmul.mubr.bf16.gmra.mxu1 %v3448_v56  ;;  %3870 = vmatprep.mubr.bf16.mxu0 %v3459_v42  ;;  %v2646_v56 = vrot.slane %v2645_v41, 4  ;;  %v2650_v42 = vrot.slane %v2648_v50, 5  ;;  %v2718_v55 = vshll.u32 %v2609_v4, 16  ;;  %v2679_v54 = vsel %vm4738_vm10, %v2674_v5, %v2678_v16  ;;  %v4153_v41 = vld [vmem:[%s4589_s18 + $0x38] sm:$0xff] }
 0x1d9   : > { %3879 = vmatpush3.bf16.msra.mxu1 %v4125_v8  ;;  %3890 = vmatprep.mubr.bf16.mxu1 %v3469_v61  ;;  %v2697_v8 = vrot.slane %v2695_v14, 4  ;;  %v2922_v50 = vpack.c.bf16 %v4153_v41, %v4152_v38 }
 0x1da   : > { %3880 = vmatprep.subr.bf16.mxu1 %v4126_v44  ;;  %v2651_v49 = vsel %vm4738_vm10, %v2646_v56, %v2650_v42  ;;  %v2720_v39 = vrot.slane %v2718_v55, 5 }
 0x1db   : > { %v2701_v61 = vor.u32 %v2700_v34, %v2697_v8 }
 0x1dc   : > { %v2721_v29 = vsel %vm4738_vm10, %v2716_v52, %v2720_v39 }
 0x1dd   : > { %3881 = vmatpush3.bf16.msra.mxu1 %v4126_v44  ;;  %v2665_v44 = vsel %vm4738_vm10, %v2660_v9, %v2664_v37  ;;  %v2702_v22 = vrot.slane %v2701_v61, 4 }
 0x1de   : > { %3882 = vmatprep.subr.bf16.mxu1 %v4128_v40  ;;  %v3470_v24 = vcombine.low %v2651_v49, %v2665_v44 }
 0x1df   : > { %3871 = vmatmul.mubr.bf16.gmra.mxu0 %v3460_v2  ;;  %v2707_v2 = vsel %vm4738_vm10, %v2702_v22, %v2706_v25 }
 0x1e0   : > { %v3472_v31 = vcombine.low %v2707_v2, %v2721_v29  ;;  %3914 = vmatprep.mubr.bf16.mxu0 %v2919_v26 }
 0x1e1   : > { %3883 = vmatpush3.bf16.msra.mxu1 %v4128_v40  ;;  %v2693_v40 = vsel %vm4738_vm10, %v2688_v17, %v2692_v7 }
 0x1e2   : > { %3884 = vmatprep.subr.bf16.mxu1 %v4129_v32  ;;  %v3471_v45 = vcombine.low %v2679_v54, %v2693_v40 }
 0x1e5   : > { %3885 = vmatpush3.bf16.msra.mxu1 %v4129_v32  ;;  %v4132_v32 = vld [vmem:[#allocation11 + $0x38] sm:$0xff]  }
 0x1e6   : > { %3886 = vmatprep.subr.bf16.mxu1 %v4130_v30  ;;  %3898 = vmatprep.subr.bf16.mxu0 %v4132_v32 }
 0x1e7   : > { %3899 = vmatpush3.bf16.msra.mxu0 %v4132_v32 }
 0x1e8   : > { %3900 = vmatprep.subr.bf16.mxu0 %v4133_v23 }
 0x1e9   : > { %3887 = vmatpush3.bf16.msra.mxu1 %v4130_v30  ;;  %v4146_v30 = vld [vmem:[#allocation9 + $0x8] sm:$0xff]  }
 0x1ea   : > { %3888 = vmatprep.subr.bf16.mxu1 %v4131_v6 }
 0x1eb   : > { %3901 = vmatpush3.bf16.msra.mxu0 %v4133_v23 }
 0x1ec   : > { %3902 = vmatprep.subr.bf16.mxu0 %v4135_v35 }
 0x1ed   : > { %3889 = vmatpush3.bf16.msra.mxu1 %v4131_v6 }
 0x1ee   : > { %3922 = vmatprep.subr.bf16.mxu1 %v4134_v33 }
 0x1ef   : > { %3903 = vmatpush3.bf16.msra.mxu0 %v4135_v35 }
 0x1f0   : > { %3891 = vmatmul.mubr.bf16.vlgmr.msra.gmra.mxu1 %v3470_v24  ;;  %3904 = vmatprep.subr.bf16.mxu0 %v4137_v21 }
 0x1f1   : > { %3894 = vmatprep.mubr.bf16.mxu1 %v3471_v45  ;;  %3923 = vmatpush3.bf16.msra.mxu1 %v4134_v33 }
 0x1f2   : > { %3924 = vmatprep.subr.bf16.mxu1 %v4136_v18 }
 0x1f3   : > { %3905 = vmatpush3.bf16.msra.mxu0 %v4137_v21 }
 0x1f4   : > { %3906 = vmatprep.subr.bf16.mxu0 %v4139_v47 }
 0x1f5   : > { %3925 = vmatpush3.bf16.msra.mxu1 %v4136_v18 }
 0x1f6   : > { %3926 = vmatprep.subr.bf16.mxu1 %v4138_v36 }
 0x1f7   : > { %3907 = vmatpush3.bf16.msra.mxu0 %v4139_v47 }
 0x1f8   : > { %3895 = vmatmul.mubr.bf16.gmra.mxu1 %v3472_v31  ;;  %3908 = vmatprep.subr.bf16.mxu0 %v4141_v57 }
 0x1f9   : > { %3927 = vmatpush3.bf16.msra.mxu1 %v4138_v36 }
 0x1fa   : > { %3928 = vmatprep.subr.bf16.mxu1 %v4140_v20 }
 0x1fb   : > { %3909 = vmatpush3.bf16.msra.mxu0 %v4141_v57 }
 0x1fc   : > { %3910 = vmatprep.subr.bf16.mxu0 %v4143_v48 }
 0x1fd   : > { %3929 = vmatpush3.bf16.msra.mxu1 %v4140_v20 }
 0x1fe   : > { %3930 = vmatprep.subr.bf16.mxu1 %v4142_v53 }
 0x1ff   : > { %3911 = vmatpush3.bf16.msra.mxu0 %v4143_v48 }
 0x200   : > { %3912 = vmatprep.subr.bf16.mxu0 %v4145_v59 }
 0x201   : > { %3931 = vmatpush3.bf16.msra.mxu1 %v4142_v53 }
 0x202   : > { %3932 = vmatprep.subr.bf16.mxu1 %v4144_v58 }
 0x203   : > { %3913 = vmatpush3.bf16.msra.mxu0 %v4145_v59 }
 0x205   : > { %3933 = vmatpush3.bf16.msra.mxu1 %v4144_v58 }
 0x206   : > { %3934 = vmatprep.subr.bf16.mxu1 %v4146_v30  ;;  %3915 = vmatmul.mubr.bf16.vlgmr.msra.gmra.mxu0 %v2920_v15 }
 0x207   : > { %3918 = vmatprep.mubr.bf16.mxu0 %v2921_v63 }
 0x209   : > { %3935 = vmatpush3.bf16.msra.mxu1 %v4146_v30 }
 0x20a   : > { %3936 = vmatprep.subr.bf16.mxu1 %v4147_v0 }
 0x20d   : > { %3937 = vmatpush3.bf16.msra.mxu1 %v4147_v0 }
 0x20e   : > { %3919 = vmatmul.mubr.bf16.gmra.mxu0 %v2922_v50 }
 0x22f   : > { %v4970_v51 = vpop.f32.mrf.mxu1 }
 0x231   : > { %v4974_v60 = vpop.f32.mrf.mxu1 }
 0x233   : > { %v4979_v14 = vpop.f32.mrf.mxu1 }
 0x235   : > { %v997_v6 = vpop.f32.mrf.mxu1 }
 0x236   : > { %v3724_v1 = vpop.f32.mrf.mxu0 }
 0x237   : > { %v4985_v43 = vpop.f32.mrf.mxu1  ;;  %v1132_v26 = vadd.f32 %v3724_v1, %v4970_v51 }
 0x238   : > { %v1123_v3 = vpop.f32.mrf.mxu0 }
 0x239   : > { %v4987_v11 = vpop.f32.mrf.mxu1  ;;  %v1124_v27 = vadd.f32 %v1123_v3, %v4974_v60 }
 0x23a   : > { %v3725_v10 = vpop.f32.mrf.mxu0 }
 0x23b   : > { %v4989_v9 = vpop.f32.mrf.mxu1  ;;  %v1135_v62 = vadd.f32 %v3725_v10, %v4979_v14 }
 0x23c   : > { %v1126_v15 = vpop.f32.mrf.mxu0 }
 0x23d   : > { %v4993_v46 = vpop.f32.mrf.mxu1  ;;  %v1127_v41 = vadd.f32 %v1126_v15, %v997_v6 }
 0x23e   : > { %v4991_v37 = vpop.f32.mrf.mxu0 }
 0x23f   : > { %v1148_v14 = vadd.f32 %v4991_v37, %v4985_v43 }
 0x240   : > { %v1139_v34 = vpop.f32.mrf.mxu0 }
 0x241   : > { %v1140_v60 = vadd.f32 %v1139_v34, %v4987_v11 }
 0x242   : > { %v3729_v16 = vpop.f32.mrf.mxu0 }
 0x243   : > { %v1151_v10 = vadd.f32 %v3729_v16, %v4989_v9 }
 0x244   : > { %v4995_v7 = vpop.f32.mrf.mxu0 }
 0x24f   : > { %v3748_v8 = vpop.f32.mrf.mxu1 }
 0x250   : > { %v1433_v38 = vadd.f32 %v3748_v8, %v1132_v26 }
 0x251   : > { %v1400_v5 = vpop.f32.mrf.mxu1 }
 0x252   : > { %v1431_v63 = vadd.f32 %v1400_v5, %v1124_v27 }
 0x253   : > { %v3749_v17 = vpop.f32.mrf.mxu1 }
 0x254   : > { %v1434_v50 = vadd.f32 %v3749_v17, %v1135_v62 }
 0x255   : > { %v1403_v4 = vpop.f32.mrf.mxu1 }
 0x256   : > { %v3772_v56 = vpop.f32.mrf.mxu0 }
 0x257   : > { %v4997_v42 = vpop.f32.mrf.mxu1 }
 0x258   : > { %v1674_v19 = vpop.f32.mrf.mxu0  ;;  %v1437_v11 = vadd.f32 %v4997_v42, %v1148_v14 }
 0x259   : > { %v1416_v44 = vpop.f32.mrf.mxu1 }
 0x25a   : > { %v3773_v61 = vpop.f32.mrf.mxu0  ;;  %v1435_v5 = vadd.f32 %v1416_v44, %v1140_v60 }
 0x25b   : > { %v3753_v28 = vpop.f32.mrf.mxu1 }
 0x25c   : > { %v1677_v55 = vpop.f32.mrf.mxu0  ;;  %v1438_v34 = vadd.f32 %v3753_v28, %v1151_v10 }
 0x25d   : > { %v4999_v54 = vpop.f32.mrf.mxu1 }
 0x25e   : > { %v5001_v40 = vpop.f32.mrf.mxu0 }
 0x25f   : > { %v1711_v16 = vadd.f32 %v5001_v40, %v1437_v11 }
 0x260   : > { %v1690_v24 = vpop.f32.mrf.mxu0 }
 0x262   : > { %v5003_v45 = vpop.f32.mrf.mxu0 }
 0x263   : > { %v1712_v44 = vadd.f32 %v5003_v45, %v1438_v34  ;;  %v3481_v45 = vld [vmem:[%s5119_s6] ss:$0 sm:$0xff] }
 0x264   : > { %v5005_v25 = vpop.f32.mrf.mxu0 }
 0x26f   : > { %v3796_v49 = vpop.f32.mrf.mxu1 }
 0x271   : > { %v1836_v52 = vpop.f32.mrf.mxu1 }
 0x273   : > { %v3797_v22 = vpop.f32.mrf.mxu1 }
 0x275   : > { %v1839_v39 = vpop.f32.mrf.mxu1 }
 0x277   : > { %v3820_v2 = vpop.f32.mrf.mxu0  ;;  %v5007_v29 = vpop.f32.mrf.mxu1 }
 0x278   : > { %5156 = vst [vmem:[#allocation17_spill] sm:$0xff] %v5007_v29 }
 0x279   : > { %v2118_v31 = vpop.f32.mrf.mxu0  ;;  %v1852_v32 = vpop.f32.mrf.mxu1 }
 0x27b   : > { %v3821_v23 = vpop.f32.mrf.mxu0  ;;  %v5009_v33 = vpop.f32.mrf.mxu1 }
 0x27c   : > { %5157 = vst [vmem:[#allocation18_spill] sm:$0xff] %v5009_v33  ;;  %v1708_v33 = vadd.f32 %v3773_v61, %v1434_v50 }
 0x27d   : > { %v2121_v35 = vpop.f32.mrf.mxu0  ;;  %v5011_v18 = vpop.f32.mrf.mxu1 }
 0x27e   : > { %5158 = vst [vmem:[#allocation19_spill] sm:$0xff] %v5011_v18  ;;  %v1870_v51 = vadd.f32 %v3797_v22, %v1708_v33 }
 0x27f   : > { %v5013_v21 = vpop.f32.mrf.mxu0 }
 0x280   : > { %5159 = vst [vmem:[#allocation20_spill] sm:$0xff] %v5013_v21  ;;  %v1707_v21 = vadd.f32 %v3772_v56, %v1433_v38  ;;  %v2152_v56 = vadd.f32 %v3821_v23, %v1870_v51 }
 0x281   : > { %v5015_v47 = vpop.f32.mrf.mxu0 }
 0x282   : > { %5160 = vst [vmem:[#allocation21_spill] sm:$0xff] %v5015_v47  ;;  %v1432_v47 = vadd.f32 %v1403_v4, %v1127_v41  ;;  %v1869_v29 = vadd.f32 %v3796_v49, %v1707_v21  ;;  %v1709_v49 = vadd.f32 %v1690_v24, %v1435_v5 }
 0x283   : > { %v5017_v57 = vpop.f32.mrf.mxu0  ;;  %v5165_v23 = vld [vmem:[#allocation18_spill] sm:$0xff] }
 0x284   : > { %5161 = vst [vmem:[#allocation22_spill] sm:$0xff] %v5017_v57  ;;  %v1705_v57 = vadd.f32 %v1674_v19, %v1431_v63  ;;  %v1706_v3 = vadd.f32 %v1677_v55, %v1432_v47  ;;  %v2151_v6 = vadd.f32 %v3820_v2, %v1869_v29  ;;  %v1143_v19 = vadd.f32 %v4995_v7, %v4993_v46 }
 0x285   : > { %v5019_v48 = vpop.f32.mrf.mxu0  ;;  %v1871_v29 = vadd.f32 %v1852_v32, %v1709_v49  ;;  %v1874_v33 = vadd.f32 %v5165_v23, %v1712_v44  ;;  %v5167_v32 = vld [vmem:[#allocation19_spill] sm:$0xff] }
 0x286   : > { %5162 = vst [vmem:[#allocation23_spill] sm:$0xff] %v5019_v48  ;;  %v1868_v17 = vadd.f32 %v1839_v39, %v1706_v3  ;;  %v1436_v9 = vadd.f32 %v4999_v54, %v1143_v19 }
 0x288   : > { %v1710_v28 = vadd.f32 %v5005_v25, %v1436_v9 }
 0x289   : > { %v5166_v54 = vld [vmem:[#allocation21_spill] sm:$0xff] }
 0x28d   : > { %v5170_v62 = vld [vmem:[#allocation23_spill] sm:$0xff] }
 0x290   : > { %v3844_v36 = vpop.f32.mrf.mxu1 }
 0x291   : > { %v2426_v61 = vadd.f32 %v3844_v36, %v2151_v6  ;;  %v2153_v36 = vadd.f32 %v5166_v54, %v1871_v29 }
 0x292   : > { %v2393_v20 = vpop.f32.mrf.mxu1 }
 0x294   : > { %v3845_v53 = vpop.f32.mrf.mxu1 }
 0x295   : > { %v2427_v43 = vadd.f32 %v3845_v53, %v2152_v56 }
 0x296   : > { %v2396_v58 = vpop.f32.mrf.mxu1 }
 0x297   : > { %v3868_v59 = vpop.f32.mrf.mxu0 }
 0x298   : > { %v5021_v30 = vpop.f32.mrf.mxu1  ;;  %v2588_v22 = vadd.f32 %v3868_v59, %v2426_v61 }
 0x299   : > { %5163 = vst [vmem:[#allocation24_spill] sm:$0xff] %v5021_v30  ;;  %v2555_v12 = vpop.f32.mrf.mxu0  ;;  %v1867_v30 = vadd.f32 %v1836_v52, %v1705_v57  ;;  %v2150_v52 = vadd.f32 %v2121_v35, %v1868_v17  ;;  %v5168_v57 = vld [vmem:[#allocation20_spill] sm:$0xff] }
 0x29a   : > { %v2409_v0 = vpop.f32.mrf.mxu1 }
 0x29b   : > { %v3869_v13 = vpop.f32.mrf.mxu0  ;;  %v2149_v1 = vadd.f32 %v2118_v31, %v1867_v30  ;;  %v2425_v46 = vadd.f32 %v2396_v58, %v2150_v52  ;;  %v5164_v31 = vld [vmem:[#allocation17_spill] sm:$0xff]  ;;  %v5169_v58 = vld [vmem:[#allocation22_spill] sm:$0xff] }
 0x29c   : > { %v3849_v48 = vpop.f32.mrf.mxu1  ;;  %v2589_v7 = vadd.f32 %v3869_v13, %v2427_v43  ;;  %v1873_v24 = vadd.f32 %v5164_v31, %v1711_v16  ;;  %v2156_v25 = vadd.f32 %v5169_v58, %v1874_v33 }
 0x29d   : > { %v2558_v18 = vpop.f32.mrf.mxu0  ;;  %v2424_v4 = vadd.f32 %v2393_v20, %v2149_v1  ;;  %v1872_v20 = vadd.f32 %v5167_v32, %v1710_v28 }
 0x29e   : > { %v2412_v15 = vpop.f32.mrf.mxu1  ;;  %v2587_v40 = vadd.f32 %v2558_v18, %v2425_v46  ;;  %v2155_v53 = vadd.f32 %v5168_v57, %v1873_v24  ;;  %v2431_v60 = vadd.f32 %v3849_v48, %v2156_v25  ;;  %v3498_v24 = vld [vmem:[%s5122_s9] ss:$0 sm:$0xff] }
 0x29f   : > { %v3872_v8 = vpop.f32.mrf.mxu0  ;;  %v2586_v37 = vadd.f32 %v2555_v12, %v2424_v4  ;;  %v2428_v12 = vadd.f32 %v2409_v0, %v2153_v36  ;;  %v2154_v63 = vadd.f32 %v5170_v62, %v1872_v20 }
 0x2a0   : > { %v5171_v18 = vld [vmem:[#allocation24_spill] sm:$0xff] }
 0x2a1   : > { %v2571_v39 = vpop.f32.mrf.mxu0  ;;  %v2430_v38 = vadd.f32 %v5171_v18, %v2155_v53  ;;  %v2429_v1 = vadd.f32 %v2412_v15, %v2154_v63 }
 0x2a2   : > { %v2590_v3 = vadd.f32 %v2571_v39, %v2428_v12 }
 0x2a3   : > { %v3873_v59 = vpop.f32.mrf.mxu0  ;;  %v2592_v14 = vadd.f32 %v3872_v8, %v2430_v38 }
 0x2a4   : > { %v2593_v17 = vadd.f32 %v3873_v59, %v2431_v60 }
 0x2a5   : > { %v2574_v10 = vpop.f32.mrf.mxu0 }
 0x2a6   : > { %v2591_v61 = vadd.f32 %v2574_v10, %v2429_v1 }
 0x2b0   : > { %v3892_v55 = vpop.f32.mrf.mxu1 }
 0x2b1   : > { %v2870_v35 = vadd.f32 %v3892_v55, %v2588_v22 }
 0x2b2   : > { %v2837_v2 = vpop.f32.mrf.mxu1 }
 0x2b3   : > { %v2868_v42 = vadd.f32 %v2837_v2, %v2586_v37  ;;  %v2885_v41 = vadd.f32 %v3481_v45, %v2870_v35 }
 0x2b4   : > { %v3893_v21 = vpop.f32.mrf.mxu1 }
 0x2b5   : > { %v2871_v47 = vadd.f32 %v3893_v21, %v2589_v7  ;;  %v2883_v27 = vadd.f32 %v3481_v45, %v2868_v42  ;;  %v2893_v19 = vmax.f32 %v2885_v41, 0.0 }
 0x2b6   : > { %v2840_v30 = vpop.f32.mrf.mxu1 }
 0x2b7   : > { %v2886_v26 = vadd.f32 %v3481_v45, %v2871_v47  ;;  %v2869_v13 = vadd.f32 %v2840_v30, %v2587_v40  ;;  %v2891_v56 = vmax.f32 %v2883_v27, 0.0 }
 0x2b8   : > { %v3896_v50 = vpop.f32.mrf.mxu1 }
 0x2b9   : > { %v2884_v51 = vadd.f32 %v3481_v45, %v2869_v13  ;;  %v2894_v6 = vmax.f32 %v2886_v26, 0.0  ;;  %v2874_v11 = vadd.f32 %v3896_v50, %v2592_v14 }
 0x2ba   : > { %v2853_v5 = vpop.f32.mrf.mxu1 }
 0x2bb   : > { %v2892_v0 = vmax.f32 %v2884_v51, 0.0  ;;  %v2872_v4 = vadd.f32 %v2853_v5, %v2590_v3  ;;  %v2900_v52 = vpack.c.bf16 %v2894_v6, %v2893_v19  ;;  %v2889_v15 = vadd.f32 %v3481_v45, %v2874_v11 }
 0x2bc   : > { %v3897_v34 = vpop.f32.mrf.mxu1 }
 0x2bd   : > { %v2875_v55 = vadd.f32 %v3897_v34, %v2593_v17  ;;  %v2899_v49 = vpack.c.bf16 %v2892_v0, %v2891_v56  ;;  %v2887_v48 = vadd.f32 %v3481_v45, %v2872_v4  ;;  %v2897_v39 = vmax.f32 %v2889_v15, 0.0 }
 0x2be   : > { %v2856_v43 = vpop.f32.mrf.mxu1 }
 0x2bf   : > { %v2890_v37 = vadd.f32 %v3481_v45, %v2875_v55  ;;  %v2873_v9 = vadd.f32 %v2856_v43, %v2591_v61  ;;  %3938 = vmatprep.mubr.bf16.mxu1 %v2899_v49  ;;  %v2895_v44 = vmax.f32 %v2887_v48, 0.0 }
 0x2c0   : > { %3939 = vmatmul.mubr.bf16.vlgmr.msra.gmra.mxu1 %v2900_v52 }
 0x2c1   : > { %v2888_v8 = vadd.f32 %v3481_v45, %v2873_v9  ;;  %v2898_v16 = vmax.f32 %v2890_v37, 0.0 }
 0x2c3   : > { %v2896_v22 = vmax.f32 %v2888_v8, 0.0  ;;  %v2902_v29 = vpack.c.bf16 %v2898_v16, %v2897_v39 }
 0x2c5   : > { %v2901_v2 = vpack.c.bf16 %v2896_v22, %v2895_v44 }
 0x2c6   : > { %v3916_v46 = vpop.f32.mrf.mxu0 }
 0x2c7   : > { %3942 = vmatprep.mubr.bf16.mxu1 %v2901_v2 }
 0x2c8   : > { %3943 = vmatmul.mubr.bf16.gmra.mxu1 %v2902_v29  ;;  %v3021_v7 = vpop.f32.mrf.mxu0 }
 0x2ca   : > { %v3917_v42 = vpop.f32.mrf.mxu0 }
 0x2cc   : > { %v3024_v28 = vpop.f32.mrf.mxu0 }
 0x2ce   : > { %v3920_v33 = vpop.f32.mrf.mxu0 }
 0x2d0   : > { %v3037_v47 = vpop.f32.mrf.mxu0 }
 0x2d2   : > { %v3921_v59 = vpop.f32.mrf.mxu0 }
 0x2d4   : > { %v3040_v63 = vpop.f32.mrf.mxu0 }
 0x380   : > { %v3940_v31 = vpop.f32.mrf.mxu1 }
 0x381   : > { %v3143_v23 = vadd.f32 %v3940_v31, %v3916_v46 }
 0x382   : > { %v3134_v35 = vpop.f32.mrf.mxu1 }
 0x383   : > { %v3174_v21 = vadd.f32 %v3498_v24, %v3143_v23  ;;  %v3135_v54 = vadd.f32 %v3134_v35, %v3021_v7 }
 0x384   : > { %v3941_v36 = vpop.f32.mrf.mxu1 }
 0x385   : > { %3182 = vst [vmem:[%s5053_s11 + $0x10] sm:$0xff] %v3174_v21  ;;  %v3172_v40 = vadd.f32 %v3498_v24, %v3135_v54  ;;  %v3146_v45 = vadd.f32 %v3941_v36, %v3917_v42 }
 0x386   : > { %v3137_v32 = vpop.f32.mrf.mxu1 }
 0x387   : > { %3180 = vst [vmem:[%s5053_s11] sm:$0xff] %v3172_v40  ;;  %v3175_v20 = vadd.f32 %v3498_v24, %v3146_v45  ;;  %v3138_v57 = vadd.f32 %v3137_v32, %v3024_v28 }
 0x388   : > { %v3944_v53 = vpop.f32.mrf.mxu1 }
 0x389   : > { %3183 = vst [vmem:[%s5053_s11 + $0x18] sm:$0xff] %v3175_v20  ;;  %v3173_v58 = vadd.f32 %v3498_v24, %v3138_v57  ;;  %v3159_v25 = vadd.f32 %v3944_v53, %v3920_v33 }
 0x38a   : > { %v3150_v30 = vpop.f32.mrf.mxu1 }
 0x38b   : > { %3181 = vst [vmem:[%s5053_s11 + $0x8] sm:$0xff] %v3173_v58  ;;  %v3178_v12 = vadd.f32 %v3498_v24, %v3159_v25  ;;  %v3151_v27 = vadd.f32 %v3150_v30, %v3037_v47 }
 0x38c   : > { %v3945_v26 = vpop.f32.mrf.mxu1 }
 0x38d   : > { %3186 = vst [vmem:[%s5053_s11 + $0x30] sm:$0xff] %v3178_v12  ;;  %v3176_v13 = vadd.f32 %v3498_v24, %v3151_v27  ;;  %v3162_v62 = vadd.f32 %v3945_v26, %v3921_v59 }
 0x38e   : > { %v3153_v18 = vpop.f32.mrf.mxu1 }
 0x38f   : > { %3184 = vst [vmem:[%s5053_s11 + $0x20] sm:$0xff] %v3176_v13  ;;  %v3179_v38 = vadd.f32 %v3498_v24, %v3162_v62  ;;  %v3154_v41 = vadd.f32 %v3153_v18, %v3040_v63 }
 0x391   : > { %3187 = vst [vmem:[%s5053_s11 + $0x38] sm:$0xff] %v3179_v38  ;;  %v3177_v50 = vadd.f32 %v3498_v24, %v3154_v41 }
 0x393   : > { %3185 = vst [vmem:[%s5053_s11 + $0x28] sm:$0xff] %v3177_v50 }
 0x394   : > { %4299 = shalt.err (!%p4296_p5)
}
 0x395   : > { %s4300_s25 = scalar_lea.hbm %s5068_s19, 1024  ;;  %s4304_s5 = scalar_lea.hbm %s5123_s10, 2048 }
 0x396   : > { %p4301_p3 = scmp.ne.s32.totalorder %s5068_s19, %s4300_s25  ;;  %p4305_p8 = scmp.lt.s32.totalorder %s5068_s19, %s5123_s10 }
 0x397   : > { %p4306_p9 = scmp.lt.s32.totalorder %s4304_s5, %s4300_s25 }
 0x398   : > { %p4302_p4 = pnand %p4301_p3, %p5172_p12 }
 0x399   : > { %p4307_p2 = por %p4306_p9, %p4305_p8 }
 0x39a   : > { %p4303_p6 = pneg %p4302_p4 }
 0x39c   : > { %p4308_p10 = pnand %p4307_p2, %p4303_p6 }
 0x39e   : > { %4311 = shalt.err (!%p4308_p10)
}
 0x39f   : > { %s4371_s18 = smov 128   ;;  %s4372_s3 = smov 8  }
 0x3a0   : > { %3964 = dma.vmem_to_hbm [thread:$0]  (%p5172_p12), %s5062_s8, 1024, %s5068_s19, %s3189_s21, %s4371_s18, %s4371_s18, %s4372_s3  }
 0x3a1 PF: > { %s3217_s17 = sand.u32 1, %s4346_s13   ;;  %p5173_p7 = scmp.ne.s32.totalorder %s5133_s20, 0 }
 0x3a2   : > { %p5174_p1 = scmp.ge.s32.totalorder %s4358_s16, 2  ;;  %s3218_s28 = scalar_lea.sflag [#allocation5], %s3217_s17 }
 0x3a4   : > { %p3984_p13 = pnand %p5174_p1, %p5173_p7 }
 0x3a6   : > { %p3985_p0 = pneg %p3984_p13 }
 0x3a8   : > { %4341 = dma.done.wait (%p3985_p0), %s3218_s28, 1024  }
 0x3a9   : > { %4343 = vsyncadd (%p3985_p0), %s3218_s28, 4294966272  ;;  %p25_p11 = scmp.ge.s32.totalorder %s4528_s27, 4   ;;  %s5175_s13 = smov %s4350_s14 }
 0x3aa   : > { %s5176_s14 = smov %s4354_s15  ;;  %s5177_s15 = smov %s4544_s12 }
 0x3ab   : > { %s5178_s16 = smov %s4528_s27  ;;  %27 = sbr.rel (!%p25_p11) target bundleno = 12 (0xc), region = 132 }
 0x3b0   :  { %3223 = vsyncpa [#allocation4], 1 }
 0x3b1   :  { %3225 = vsyncpa [#allocation4 + $0x1], 1 }
 0x3b2   :  { %3226 = vsyncpa [#allocation7], 1 }
 0x3b3   :  { %3227 = vsyncpa [#allocation10], 1 }
 0x3b4   :  { %3228 = vsyncpa [#allocation5], 1 }
 0x3b5   :  { %3230 = vsyncpa [#allocation5 + $0x1], 1 }

// kernel: tpu_custom_call.1
= control target key start
LH: loop header
LB: loop body
LE: loop exit
PB: predicated region body
PF: predicated region fallthrough
CT: control target
= control target key end

     0   :  { %s5113_s0 = inlined_call_operand.hbm [shape: f32[2,8,8,128], index: 0, kind: input, shape index: {}]   ;;  %s5114_s1 = inlined_call_operand.vmem [shape: f32[1,128], index: 1, kind: input, shape index: {}]   ;;  %s5115_s2 = inlined_call_operand.vmem [shape: f32[1,128], index: 2, kind: input, shape index: {}]   ;;  %s5116_s3 = inlined_call_operand.hbm [shape: bf16[128,128], index: 3, kind: input, shape index: {}]   ;;  %s5117_s4 = inlined_call_operand.vmem [shape: f32[1,128], index: 4, kind: input, shape index: {}]   ;;  %s5118_s5 = inlined_call_operand.hbm [shape: bf16[9,128,128], index: 5, kind: input, shape index: {}]   ;;  %s5119_s6 = inlined_call_operand.vmem [shape: f32[1,128], index: 6, kind: input, shape index: {}]   ;;  %s5120_s7 = inlined_call_operand.hbm [shape: bf16[128,128], index: 7, kind: input, shape index: {}]   ;;  %s5121_s8 = inlined_call_operand.hbm [shape: bf16[128,128], index: 8, kind: input, shape index: {}]   ;;  %s5122_s9 = inlined_call_operand.vmem [shape: f32[1,128], index: 9, kind: input, shape index: {}]   ;;  %s5123_s10 = inlined_call_operand.hbm [shape: f32[2,64,128], index: 10, kind: output, shape index: {}]  }
   0x1   :  { %5128 = sst [smem:[#allocation25_spill]] %s5116_s3 }
   0x2   :  { %5129 = sst [smem:[#allocation26_spill]] %s5118_s5 }
   0x3   :  { %5130 = sst [smem:[#allocation27_spill]] %s5120_s7 }
   0x4   :  { %5131 = sst [smem:[#allocation28_spill]] %s5121_s8 }
   0x5   :  { %15 = vsyncpa [#allocation4], 0 }
   0x6   :  { %17 = vsyncpa [#allocation4 + $0x1], 0 }
   0x7   :  { %18 = vsyncpa [#allocation7], 0 }
   0x8   :  { %19 = vsyncpa [#allocation10], 0 }
   0x9   :  { %20 = vsyncpa [#allocation5], 0 }
   0xa   :  { %22 = vsyncpa [#allocation5 + $0x1], 0  ;;  %s4428_s13 = smov 0   ;;  %s4430_s14 = smov 0  }
   0xb   :  { %s4432_s15 = smov 0   ;;  %s4434_s16 = smov 0  }
   0xc LB: > { %s4449_s17 = sadd.s32 4294967295, %s4358_s16   ;;  %s3313_s18 = sadd.s32 4294967294, %s4358_s16   ;;  %s4358_s16 = sphi %s4434_s16, %s5178_s16   ;;  %s4354_s15 = sphi %s4432_s15, %s5177_s15   ;;  %s4350_s14 = sphi %s4430_s14, %s5176_s14   ;;  %s4346_s13 = sphi %s4428_s13, %s5175_s13  }
   0xd   : > { %p48_p0 = scmp.ne.s32.totalorder %s4350_s14, %s4346_s13  ;;  %p5124_p1 = scmp.eq.s32.totalorder %s4449_s17, 0 }
   0xe   : > { %p261_p2 = scmp.eq.s32.totalorder %s4449_s17, 1  ;;  %p267_p3 = scmp.eq.s32.totalorder %s3313_s18, 1 }
   0xf   : > { %p4458_p4 = por %p5124_p1, %p48_p0  ;;  %p3314_p5 = scmp.ge.s32.totalorder %s4358_s16, 1 }
  0x10   : > { %p4463_p6 = por %p267_p3, %p48_p0  ;;  %p274_p7 = scmp.lt.s32.totalorder %s4358_s16, 3 }
  0x11   : > { %s5132_s19 = scalar_select %p4458_p4, 1, 0 }
  0x12   : > { %s5133_s20 = scalar_select %p4463_p6, 1, 0 }
  0x13   : > { %p4468_p8 = pnand %p3314_p5, %p274_p7  ;;  %s4360_s22 = smov [#allocation6]  }
  0x14   : > { %s292_s23 = sshll.u32 %s4360_s22, 4  ;;  %s4361_s25 = smov [#allocation9]   ;;  %s293_s23 = int_to_ptr.vmem [resolvable:$true] %s292_s23 }
  0x15   : > { %s5134_s21 = scalar_select %p4468_p8, 1, 0 }
  0x16   : > { %p3966_p9 = pneg %p4468_p8  ;;  %s324_s26 = sshll.u32 %s4361_s25, 4  ;;  %s325_s26 = int_to_ptr.vmem [resolvable:$true] %s324_s26 }
  0x17   : > { %s4362_s27 = smov [#allocation8]   ;;  %s4165_s29 = scalar_lea.vmem %s293_s23, 1024 }
  0x18   : > { %p4477_p11 = pnand %p3966_p9, %p5124_p1  ;;  %s308_s28 = sshll.u32 %s4362_s27, 4  ;;  %s309_s28 = int_to_ptr.vmem [resolvable:$true] %s308_s28 }
  0x19   : > { %p4166_p13 = scmp.ne.s32.totalorder %s293_s23, %s4165_s29  ;;  %p4173_p5 = scmp.lt.s32.totalorder %s293_s23, %s293_s23 }
  0x1a   : > { %p4156_p12 = pneg %p4477_p11  ;;  %p4174_p7 = scmp.lt.s32.totalorder %s4165_s29, %s4165_s29 }
  0x1c   : > { %p4168_p0 = pnand %p4166_p13, %p4156_p12  ;;  %p4175_p9 = por %p4174_p7, %p4173_p5 }
  0x1e   : > { %p4169_p3 = pneg %p4168_p0 }
  0x20   : > { %p4176_p10 = pnand %p4175_p9, %p4169_p3 }
  0x22   : > { %4179 = shalt.err (!%p4176_p10)
}
  0x23   : > { %s4363_s30 = smov 64   ;;  %s4364_s11 = smov 4  }
  0x24   : > { %s5136_s3 = sld [smem:[#allocation25_spill]]  ;;  %s4191_s22 = scalar_lea.vmem %s325_s26, 1024 }
  0x25   : > { %p4192_p13 = scmp.ne.s32.totalorder %s325_s26, %s4191_s22  ;;  %p4199_p3 = scmp.lt.s32.totalorder %s325_s26, %s325_s26 }
  0x26   : > { %p4200_p10 = scmp.lt.s32.totalorder %s4191_s22, %s4191_s22 }
  0x27   : > { %p4194_p0 = pnand %p4192_p13, %p4156_p12 }
  0x28   : > { %p4201_p7 = por %p4200_p10, %p4199_p3 }
  0x29   : > { %p4195_p5 = pneg %p4194_p0 }
  0x2a   : > { %3969 = dma.hbm_to_vmem [thread:$0]  (!%p4477_p11), %s5136_s3, 1024, %s293_s23, [#allocation7], %s4363_s30, %s4363_s30, %s4364_s11  }
  0x2b   : > { %p4202_p9 = pnand %p4201_p7, %p4195_p5 }
  0x2d   : > { %4205 = shalt.err (!%p4202_p9)
}
  0x2e   : > { %s5137_s7 = sld [smem:[#allocation27_spill]]  ;;  %s4217_s23 = scalar_lea.vmem %s309_s28, 9216 }
  0x2f   : > { %p4218_p1 = scmp.ne.s32.totalorder %s309_s28, %s4217_s23  ;;  %p4225_p3 = scmp.lt.s32.totalorder %s309_s28, %s309_s28 }
  0x30   : > { %p4226_p5 = scmp.lt.s32.totalorder %s4217_s23, %s4217_s23 }
  0x31   : > { %p4220_p13 = pnand %p4218_p1, %p4156_p12 }
  0x32   : > { %p4227_p10 = por %p4226_p5, %p4225_p3 }
  0x33   : > { %p4221_p0 = pneg %p4220_p13 }
  0x34   : > { %3975 = dma.hbm_to_vmem [thread:$0]  (!%p4477_p11), %s5137_s7, 1024, %s325_s26, [#allocation10], %s4363_s30, %s4363_s30, %s4364_s11  }
  0x35   : > { %p4228_p7 = pnand %p4227_p10, %p4221_p0 }
  0x37   : > { %4231 = shalt.err (!%p4228_p7)
}
  0x38   : > { %s5138_s5 = sld [smem:[#allocation26_spill]]  ;;  %s4365_s26 = smov [#allocation11]  }
  0x39   : > { %s337_s18 = sshll.u32 %s4365_s26, 4  ;;  %s338_s18 = int_to_ptr.vmem [resolvable:$true] %s337_s18 }
  0x3a   : > { %s4243_s22 = scalar_lea.vmem %s338_s18, 1024  ;;  %p4251_p0 = scmp.lt.s32.totalorder %s338_s18, %s338_s18 }
  0x3b   : > { %p4244_p1 = scmp.ne.s32.totalorder %s338_s18, %s4243_s22  ;;  %p4252_p3 = scmp.lt.s32.totalorder %s4243_s22, %s4243_s22 }
  0x3d   : > { %p4246_p9 = pnand %p4244_p1, %p4156_p12  ;;  %p4253_p5 = por %p4252_p3, %p4251_p0 }
  0x3e   : > { %3972 = dma.hbm_to_vmem [thread:$0]  (!%p4477_p11), %s5138_s5, 9216, %s309_s28, [#allocation7], %s4363_s30, %s4363_s30, %s4364_s11  }
  0x3f   : > { %p4247_p13 = pneg %p4246_p9 }
  0x41   : > { %p4254_p10 = pnand %p4253_p5, %p4247_p13 }
  0x43   : > { %4257 = shalt.err (!%p4254_p10)
}
  0x44   : > { %s5139_s8 = sld [smem:[#allocation28_spill]]  ;;  %s4528_s27 = sadd.s32 1, %s4358_s16  }
  0x45   : > { %s35_s24 = sadd.s32 1, %s4354_s15  ;;  %s32_s23 = ssub.s32 %s4358_s16, %s4528_s27 }
  0x46   : > { %p42_p12 = scmp.ne.s32.totalorder %s4354_s15, %s4350_s14  ;;  %p33_p7 = scmp.eq.s32.totalorder %s32_s23, 0 }
  0x47   : > { %p43_p1 = scmp.eq.s32.totalorder %s4358_s16, 0  ;;  %p3991_p13 = scmp.lt.s32.totalorder %s4358_s16, 2 }
  0x48   : > { %p4538_p9 = por %p261_p2, %p42_p12  ;;  %s354_s26 = sand.u32 1, %s4354_s15  }
  0x49   : > { %s4544_s12 = scalar_select %p33_p7, %s4354_s15, %s35_s24  }
  0x4a   : > { %3978 = dma.hbm_to_vmem [thread:$0]  (!%p4477_p11), %s5139_s8, 1024, %s338_s18, [#allocation10], %s4363_s30, %s4363_s30, %s4364_s11  }
  0x4b   : > { %s5140_s29 = scalar_select %p4538_p9, 1, 0 }
  0x4c   : > { %p44_p0 = por %p43_p1, %p42_p12  ;;  %s3320_s22 = sshll.u32 %s354_s26, 6 }
  0x4d   : > { %s3504_s30 = sshll.u32 %s4358_s16, 10  ;;  %s358_s25 = scalar_lea.vmem [#allocation3], %s3320_s22 }
  0x4e   : > { %s4551_s28 = scalar_lea.hbm %s5113_s0, %s3504_s30  ;;  %s365_s23 = sshll.u32 %s358_s25, 4  ;;  %s4553_s23 = int_to_ptr.vmem [resolvable:$true] %s365_s23 }
  0x4f   : > { %p4555_p2 = pnand %p3991_p13, %p44_p0  ;;  %s4559_s24 = scalar_lea.sflag [#allocation4], %s354_s26 }
  0x50   : > { %s4258_s5 = scalar_lea.hbm %s4551_s28, 1024  ;;  %s4263_s22 = scalar_lea.hbm %s5113_s0, 2048 }
  0x51   : > { %p4259_p11 = scmp.ne.s32.totalorder %s4551_s28, %s4258_s5  ;;  %p4260_p3 = pneg %p4555_p2 }
  0x52   : > { %p4264_p12 = scmp.lt.s32.totalorder %s4551_s28, %s5113_s0  ;;  %p4265_p7 = scmp.lt.s32.totalorder %s4263_s22, %s4258_s5 }
  0x53   : > { %p4261_p5 = pnand %p4260_p3, %p4259_p11 }
  0x54   : > { %p4266_p1 = por %p4265_p7, %p4264_p12 }
  0x55   : > { %p4262_p10 = pneg %p4261_p5 }
  0x57   : > { %p4267_p13 = pnand %p4266_p1, %p4262_p10 }
  0x59   : > { %4270 = shalt.err (!%p4267_p13)
}
  0x5a   : > { %s4271_s26 = scalar_lea.vmem %s4553_s23, 1024  ;;  %s4366_s7 = smov [#allocation3]  }
  0x5b   : > { %p4272_p0 = scmp.ne.s32.totalorder %s4553_s23, %s4271_s26  ;;  %s4276_s8 = sshll.u32 %s4366_s7, 4  ;;  %s4277_s8 = int_to_ptr.vmem [resolvable:$false] %s4276_s8 }
  0x5c   : > { %s4278_s30 = scalar_lea.vmem %s4277_s8, 2048  ;;  %p4279_p5 = scmp.lt.s32.totalorder %s4553_s23, %s4277_s8 }
  0x5d   : > { %p4274_p6 = pnand %p4272_p0, %p4260_p3  ;;  %p4280_p9 = scmp.lt.s32.totalorder %s4278_s30, %s4271_s26 }
  0x5f   : > { %p4275_p11 = pneg %p4274_p6  ;;  %p4281_p4 = por %p4280_p9, %p4279_p5 }
  0x61   : > { %p4282_p8 = pnand %p4281_p4, %p4275_p11 }
  0x63   : > { %4285 = shalt.err (!%p4282_p8)
}
  0x64   : > { %s4367_s5 = smov 128   ;;  %s4368_s11 = smov 8  }
  0x65   : > { %3982 = dma.hbm_to_vmem [thread:$0]  (!%p4555_p2), %s4551_s28, 1024, %s4553_s23, %s4559_s24, %s4367_s5, %s4367_s5, %s4368_s11  }
  0x66   : > { %p5142_p3 = scmp.ne.s32.totalorder %s5134_s21, 0 }
  0x68   : > { %377 = sbr.rel (%p5142_p3) target bundleno = 929 (0x3a1), region = 60 }
  0x6d   : > { %s4583_s7 = sand.u32 1, %s4350_s14   ;;  %p5143_p4 = scmp.ne.s32.totalorder %s5132_s19, 0 }
  0x6e   : > { %s3324_s8 = sshll.u32 %s4583_s7, 6  ;;  %s380_s22 = scalar_lea.sflag [#allocation4], %s4583_s7 }
  0x6f   : > { %s4589_s18 = scalar_lea.vmem [#allocation3], %s3324_s8 }
  0x70   : > { %4329 = dma.done.wait (%p5143_p4), %s380_s22, 1024  }
  0x71   : > { %4331 = vsyncadd (%p5143_p4), %s380_s22, 4294966272  ;;  %p5144_p6 = scmp.eq.s32.totalorder %s4449_s17, 0 }
  0x73   : > { %4333 = dma.done.wait (%p5144_p6), [#allocation7], 10240   ;;  %p5145_p8 = pmov %p5144_p6 }
  0x74   : > { %p5146_p9 = pmov %p5144_p6 }
  0x75   : > { %4335 = vsyncadd (%p5145_p8), [#allocation7], 4294957056 }
  0x76   : > { %4337 = dma.done.wait (%p5146_p9), [#allocation10], 2048   ;;  %p5147_p2 = pmov %p5144_p6 }
  0x77   : > { %v4040_v0 = vld [vmem:[#allocation6 + $0x38] sm:$0xff]   ;;  %v4041_v1 = vld [vmem:[#allocation6 + $0x30] sm:$0xff]   ;;  %v4042_v2 = vld [vmem:[#allocation6 + $0x28] sm:$0xff]   ;;  %vm639_vm0 = vcmask 1043459   ;;  %vm640_vm1 = vsmask.f32 7950 }
  0x78   : > { %4339 = vsyncadd (%p5147_p2), [#allocation10], 4294965248  ;;  %3658 = vmatprep.subr.bf16.mxu0 %v4040_v0  ;;  %v4043_v3 = vld [vmem:[#allocation6 + $0x20] sm:$0xff]   ;;  %v438_v5 = vld [vmem:[%s4589_s18 + $0x8] sm:$0xff]  ;;  %v4369_v59 = vmov 0   ;;  %vm666_vm4 = vcmask 1040384  }
  0x79   : > { %3659 = vmatpush3.bf16.msra.mxu0 %v4040_v0  ;;  %v437_v4 = vld [vmem:[%s4589_s18] sm:$0xff]  ;;  %v3330_v6 = vld [vmem:[%s5114_s1] ss:$0 sm:$0xff]  ;;  %v4612_v10 = vld [vmem:[%s4589_s18 + $0x10] sm:$0xff]  ;;  %632 = vst [vmem:[#allocation2 + $0x4] sm:$0xf] %v4369_v59 }
  0x7a   : > { %3660 = vmatprep.subr.bf16.mxu0 %v4041_v1  ;;  %v452_v7 = vmul.f32 %v3330_v6, %v437_v4  ;;  %v453_v8 = vmul.f32 %v3330_v6, %v438_v5  ;;  %v3331_v9 = vld [vmem:[%s5115_s2] ss:$0 sm:$0xff]  ;;  %v4615_v11 = vld [vmem:[%s4589_s18 + $0x18] sm:$0xff]  ;;  %v454_v13 = vmul.f32 %v3330_v6, %v4612_v10  ;;  %v441_v16 = vld [vmem:[%s4589_s18 + $0x20] sm:$0xff]  ;;  %631 = vst [vmem:[#allocation2] sm:$0xf] %v4369_v59 }
  0x7b   : > { %v4044_v12 = vld [vmem:[#allocation6 + $0x18] sm:$0xff]   ;;  %v455_v14 = vmul.f32 %v3330_v6, %v4615_v11  ;;  %v2920_v15 = vpack.c.bf16 %v4615_v11, %v4612_v10  ;;  %v442_v17 = vld [vmem:[%s4589_s18 + $0x28] sm:$0xff]  ;;  %v443_v18 = vld [vmem:[%s4589_s18 + $0x30] sm:$0xff]  ;;  %v456_v21 = vmul.f32 %v3330_v6, %v441_v16  ;;  %633 = vst [vmem:[#allocation2 + $0x8] sm:$0xf] %v4369_v59  ;;  %s5053_s11 = scalar_lea.vmem [#allocation12], %s3324_s8 }
  0x7c   : > { %v467_v19 = vadd.f32 %v3331_v9, %v452_v7  ;;  %v468_v20 = vadd.f32 %v3331_v9, %v453_v8  ;;  %v457_v22 = vmul.f32 %v3330_v6, %v442_v17  ;;  %v444_v23 = vld [vmem:[%s4589_s18 + $0x38] sm:$0xff]  ;;  %v469_v24 = vadd.f32 %v3331_v9, %v454_v13  ;;  %v4049_v33 = vld [vmem:[#allocation8 + $0x70] sm:$0xff]   ;;  %v4051_v42 = vld [vmem:[#allocation8 + $0x68] sm:$0xff]   ;;  %635 = vst [vmem:[#allocation2 + $0x6c] sm:$0xf] %v4369_v59  ;;  %s3202_s8 = sshll.u32 %s5053_s11, 4  ;;  %s5062_s8 = int_to_ptr.vmem [resolvable:$true] %s3202_s8 }
  0x7d   : > { %3661 = vmatpush3.bf16.msra.mxu0 %v4041_v1  ;;  %v470_v25 = vadd.f32 %v3331_v9, %v455_v14  ;;  %v458_v26 = vmul.f32 %v3330_v6, %v443_v18  ;;  %v459_v27 = vmul.f32 %v3330_v6, %v444_v23  ;;  %v4048_v28 = vld [vmem:[#allocation8 + $0x78] sm:$0xff]   ;;  %v471_v31 = vadd.f32 %v3331_v9, %v456_v21  ;;  %v4045_v34 = vld [vmem:[#allocation6 + $0x10] sm:$0xff]   ;;  %v4046_v45 = vld [vmem:[#allocation6 + $0x8] sm:$0xff]   ;;  %s3513_s22 = sshll.u32 %s4449_s17, 10  ;;  %s3189_s21 = scalar_lea.sflag [#allocation5], %s4583_s7 }
  0x7e   : > { %3662 = vmatprep.subr.bf16.mxu0 %v4042_v2  ;;  %v475_v29 = vmax.f32 %v467_v19, 0.0  ;;  %v476_v30 = vmax.f32 %v468_v20, 0.0  ;;  %v472_v32 = vadd.f32 %v3331_v9, %v457_v22  ;;  %v477_v35 = vmax.f32 %v469_v24, 0.0  ;;  %3682 = vmatprep.subr.bf16.mxu1 %v4048_v28  ;;  %v4047_v46 = vld [vmem:[#allocation6] sm:$0xff]   ;;  %v4050_v47 = vld [vmem:[#allocation8 + $0x38] sm:$0xff]   ;;  %v4052_v51 = vld [vmem:[#allocation8 + $0x30] sm:$0xff]   ;;  %s5068_s19 = scalar_lea.hbm %s5123_s10, %s3513_s22 }
  0x7f   : > { %v473_v36 = vadd.f32 %v3331_v9, %v458_v26  ;;  %v474_v37 = vadd.f32 %v3331_v9, %v459_v27  ;;  %v478_v39 = vmax.f32 %v470_v25, 0.0  ;;  %v479_v40 = vmax.f32 %v471_v31, 0.0  ;;  %3683 = vmatpush3.bf16.msra.mxu1 %v4048_v28  ;;  %v4053_v52 = vld [vmem:[#allocation8 + $0x60] sm:$0xff]   ;;  %v4054_v53 = vld [vmem:[#allocation8 + $0x28] sm:$0xff]   ;;  %v4055_v54 = vld [vmem:[#allocation8 + $0x58] sm:$0xff]   ;;  %s4286_s17 = scalar_lea.vmem %s5062_s8, 1024 }
  0x80   : > { %v483_v38 = vpack.c.bf16 %v476_v30, %v475_v29  ;;  %v480_v41 = vmax.f32 %v472_v32, 0.0  ;;  %3684 = vmatprep.subr.bf16.mxu1 %v4049_v33  ;;  %v4056_v55 = vld [vmem:[#allocation8 + $0x20] sm:$0xff]   ;;  %v4057_v56 = vld [vmem:[#allocation8 + $0x50] sm:$0xff]   ;;  %vm4625_vm2 = vmand %vm639_vm0, %vm640_vm1  ;;  %636 = vst [vmem:[#allocation2 + $0x70] sm:$0xf] %v4369_v59  ;;  %p4287_p10 = scmp.ne.s32.totalorder %s5062_s8, %s4286_s17  ;;  %p5172_p12 = scmp.ne.s32.totalorder %s5140_s29, 0 }
  0x81   : > { %3663 = vmatpush3.bf16.msra.mxu0 %v4042_v2  ;;  %v481_v43 = vmax.f32 %v473_v36, 0.0  ;;  %v482_v44 = vmax.f32 %v474_v37, 0.0  ;;  %v484_v48 = vpack.c.bf16 %v478_v39, %v477_v35  ;;  %v648_v58 = vld [vmem:[#allocation2 + $0x24] sm:$0x8]  ;;  %637 = vst [vmem:[#allocation2 + $0x74] sm:$0xf] %v4369_v59 }
  0x82   : > { %3664 = vmatprep.subr.bf16.mxu0 %v4043_v3  ;;  %3674 = vmatprep.mubr.bf16.mxu0 %v483_v38  ;;  %v485_v49 = vpack.c.bf16 %v480_v41, %v479_v40  ;;  %vm667_vm3 = vsmask.f32 256  ;;  %v649_v60 = vsel %vm4625_vm2, 0, %v648_v58  ;;  %v642_v61 = vld [vmem:[#allocation2 + $0xc] sm:$0x8]  ;;  %v4058_v62 = vld [vmem:[#allocation8 + $0x18] sm:$0xff]   ;;  %p4288_p7 = pnand %p4287_p10, %p5172_p12 }
  0x83   : > { %3685 = vmatpush3.bf16.msra.mxu1 %v4049_v33  ;;  %v486_v50 = vpack.c.bf16 %v482_v44, %v481_v43  ;;  %650 = vst [vmem:[#allocation2 + $0x24] sm:$0x8] %v649_v60  ;;  %v643_v63 = vsel %vm4625_vm2, 0, %v642_v61  ;;  %vm4634_vm5 = vmand %vm666_vm4, %vm667_vm3  ;;  %v4059_v1 = vld [vmem:[#allocation8 + $0x48] sm:$0xff]   ;;  %v669_v2 = vld [vmem:[#allocation2 + $0x14] sm:$0x1] }
  0x84   : > { %3686 = vmatprep.subr.bf16.mxu1 %v4051_v42  ;;  %644 = vst [vmem:[#allocation2 + $0xc] sm:$0x8] %v643_v63  ;;  %v670_v4 = vsel %vm4634_vm5, 0, %v669_v2  ;;  %v645_v6 = vld [vmem:[#allocation2 + $0x18] sm:$0x8]  ;;  %v4060_v7 = vld [vmem:[#allocation8 + $0x10] sm:$0xff]   ;;  %p4289_p1 = pneg %p4288_p7 }
  0x85   : > { %3665 = vmatpush3.bf16.msra.mxu0 %v4043_v3  ;;  %v651_v3 = vld [vmem:[#allocation2 + $0x30] sm:$0x8]  ;;  %671 = vst [vmem:[#allocation2 + $0x14] sm:$0x1] %v670_v4  ;;  %v646_v8 = vsel %vm4625_vm2, 0, %v645_v6  ;;  %v4061_v9 = vld [vmem:[#allocation8 + $0x40] sm:$0xff]  }
  0x86   : > { %3666 = vmatprep.subr.bf16.mxu0 %v4044_v12  ;;  %v652_v5 = vsel %vm4625_vm2, 0, %v651_v3  ;;  %647 = vst [vmem:[#allocation2 + $0x18] sm:$0x8] %v646_v8  ;;  %v4063_v13 = vld [vmem:[#allocation8 + $0x8] sm:$0xff]   ;;  %v4644_v14 = vld [vmem:[#allocation8 + $0xb8] sm:$0xff]   ;;  %v4066_v17 = vld [vmem:[#allocation8] sm:$0xff]  }
  0x87   : > { %3687 = vmatpush3.bf16.msra.mxu1 %v4051_v42  ;;  %653 = vst [vmem:[#allocation2 + $0x30] sm:$0x8] %v652_v5  ;;  %v657_v18 = vld [vmem:[#allocation2 + $0x48] sm:$0x8]  ;;  %v660_v19 = vld [vmem:[#allocation2 + $0x54] sm:$0x8] }
  0x88   : > { %3688 = vmatprep.subr.bf16.mxu1 %v4053_v52  ;;  %v658_v20 = vsel %vm4625_vm2, 0, %v657_v18  ;;  %v661_v21 = vsel %vm4625_vm2, 0, %v660_v19  ;;  %v4653_v22 = vld [vmem:[#allocation8 + $0xf8] sm:$0xff]   ;;  %v672_v23 = vld [vmem:[#allocation2 + $0x20] sm:$0x1]  ;;  %s4370_s28 = smov [#allocation12]  }
  0x89   : > { %3667 = vmatpush3.bf16.msra.mxu0 %v4044_v12  ;;  %v654_v12 = vld [vmem:[#allocation2 + $0x3c] sm:$0x8]  ;;  %659 = vst [vmem:[#allocation2 + $0x48] sm:$0x8] %v658_v20  ;;  %662 = vst [vmem:[#allocation2 + $0x54] sm:$0x8] %v661_v21 }
  0x8a   : > { %3668 = vmatprep.subr.bf16.mxu0 %v4045_v34  ;;  %v655_v16 = vsel %vm4625_vm2, 0, %v654_v12  ;;  %v673_v24 = vsel %vm4634_vm5, 0, %v672_v23  ;;  %v675_v25 = vld [vmem:[#allocation2 + $0x2c] sm:$0x1]  ;;  %v678_v27 = vld [vmem:[#allocation2 + $0x38] sm:$0x1] }
  0x8b   : > { %3689 = vmatpush3.bf16.msra.mxu1 %v4053_v52  ;;  %656 = vst [vmem:[#allocation2 + $0x3c] sm:$0x8] %v655_v16  ;;  %674 = vst [vmem:[#allocation2 + $0x20] sm:$0x1] %v673_v24  ;;  %v676_v26 = vsel %vm4634_vm5, 0, %v675_v25  ;;  %v679_v28 = vsel %vm4634_vm5, 0, %v678_v27 }
  0x8c   : > { %3690 = vmatprep.subr.bf16.mxu1 %v4055_v54  ;;  %677 = vst [vmem:[#allocation2 + $0x2c] sm:$0x1] %v676_v26  ;;  %680 = vst [vmem:[#allocation2 + $0x38] sm:$0x1] %v679_v28  ;;  %v681_v29 = vld [vmem:[#allocation2 + $0x44] sm:$0x1] }
  0x8d   : > { %3669 = vmatpush3.bf16.msra.mxu0 %v4045_v34  ;;  %v682_v30 = vsel %vm4634_vm5, 0, %v681_v29  ;;  %v663_v31 = vld [vmem:[#allocation2 + $0x60] sm:$0x8]  ;;  %v684_v32 = vld [vmem:[#allocation2 + $0x50] sm:$0x1]  ;;  %s4290_s23 = sshll.u32 %s4370_s28, 4  ;;  %s4291_s23 = int_to_ptr.vmem [resolvable:$false] %s4290_s23 }
  0x8e   : > { %3670 = vmatprep.subr.bf16.mxu0 %v4046_v45  ;;  %683 = vst [vmem:[#allocation2 + $0x44] sm:$0x1] %v682_v30  ;;  %v687_v33 = vld [vmem:[#allocation2 + $0x5c] sm:$0x1]  ;;  %v664_v34 = vsel %vm4625_vm2, 0, %v663_v31  ;;  %v685_v35 = vsel %vm4634_vm5, 0, %v684_v32  ;;  %p4293_p13 = scmp.lt.s32.totalorder %s5062_s8, %s4291_s23 }
  0x8f   : > { %3691 = vmatpush3.bf16.msra.mxu1 %v4055_v54  ;;  %v688_v36 = vsel %vm4634_vm5, 0, %v687_v33  ;;  %665 = vst [vmem:[#allocation2 + $0x60] sm:$0x8] %v664_v34  ;;  %686 = vst [vmem:[#allocation2 + $0x50] sm:$0x1] %v685_v35  ;;  %s4292_s24 = scalar_lea.vmem %s4291_s23, 2048 }
  0x90   : > { %3692 = vmatprep.subr.bf16.mxu1 %v4057_v56  ;;  %689 = vst [vmem:[#allocation2 + $0x5c] sm:$0x1] %v688_v36  ;;  %v690_v37 = vld [vmem:[#allocation2 + $0x68] sm:$0x1]  ;;  %v4672_v39 = vld [vmem:[#allocation2 + $0x4] sm:$0xf]  ;;  %p4294_p0 = scmp.lt.s32.totalorder %s4292_s24, %s4286_s17 }
  0x91   : > { %3671 = vmatpush3.bf16.msra.mxu0 %v4046_v45  ;;  %v691_v38 = vsel %vm4634_vm5, 0, %v690_v37  ;;  %v1154_v40 = vld [vmem:[#allocation2 + $0x4] sm:$0xf]  ;;  %v4677_v41 = vld [vmem:[%s5117_s4] ss:$0 sm:$0xff]  ;;  %v757_v42 = vshrl.u32 %v4672_v39, 16 }
  0x92   : > { %3672 = vmatprep.subr.bf16.mxu0 %v4047_v46  ;;  %692 = vst [vmem:[#allocation2 + $0x68] sm:$0x1] %v691_v38  ;;  %v739_v43 = vld [vmem:[#allocation2 + $0x24] sm:$0x8]  ;;  %v1174_v44 = vshrl.u32 %v1154_v40, 16  ;;  %v1177_v45 = vshll.u32 %v1154_v40, 16  ;;  %p4295_p11 = por %p4294_p0, %p4293_p13 }
  0x93   : > { %3693 = vmatpush3.bf16.msra.mxu1 %v4057_v56  ;;  %v735_v52 = vld [vmem:[#allocation2 + $0xc] sm:$0x8]  ;;  %vm749_vm6 = vsmask.f32 4368  ;;  %v1155_v60 = vld [vmem:[#allocation2 + $0x8] sm:$0x1] }
  0x94   : > { %3694 = vmatprep.subr.bf16.mxu1 %v4059_v1  ;;  %v1176_v56 = vrot.slane %v1174_v44, 4  ;;  %v1179_v57 = vrot.slane %v1177_v45, 5  ;;  %v765_v0 = vshrl.u32 %v735_v52, 16  ;;  %v1157_v2 = vld [vmem:[#allocation2 + $0x14] sm:$0x1]  ;;  %v1183_v21 = vshll.u32 %v1155_v60, 16  ;;  %vm4715_vm9 = vmor %vm667_vm3, %vm749_vm6  ;;  %p4296_p5 = pnand %p4295_p11, %p4289_p1 }
  0x95   : > { %3673 = vmatpush3.bf16.msra.mxu0 %v4047_v46  ;;  %v741_v6 = vld [vmem:[#allocation2 + $0x30] sm:$0x8]  ;;  %v743_v16 = vld [vmem:[#allocation2 + $0x3c] sm:$0x8]  ;;  %v1197_v23 = vshll.u32 %v1157_v2, 16 }
  0x96   : > { %3706 = vmatprep.subr.bf16.mxu0 %v4050_v47  ;;  %v4692_v27 = vrot.slane %v765_v0, 11  ;;  %v1443_v28 = vld [vmem:[#allocation2 + $0x24] sm:$0x8]  ;;  %v804_v30 = vshrl.u32 %v741_v6, 16  ;;  %v817_v31 = vshrl.u32 %v743_v16, 16 }
  0x97   : > { %3695 = vmatpush3.bf16.msra.mxu1 %v4059_v1  ;;  %v737_v1 = vld [vmem:[#allocation2 + $0x18] sm:$0x8]  ;;  %v745_v32 = vld [vmem:[#allocation2 + $0x48] sm:$0x8]  ;;  %vm1170_vm7 = vsmask.f32 3328 }
  0x98   : > { %3675 = vmatmul.mubr.bf16.vlgmr.msra.gmra.mxu0 %v484_v48  ;;  %3696 = vmatprep.subr.bf16.mxu1 %v4061_v9  ;;  %v733_v48 = vld [vmem:[#allocation2] sm:$0x8]  ;;  %v778_v20 = vshrl.u32 %v737_v1, 16  ;;  %vm1171_vm8 = vsmask.f32 7440  ;;  %v4701_v44 = vrot.slane %v1197_v23, 5 }
  0x99   : > { %3678 = vmatprep.mubr.bf16.mxu0 %v485_v49  ;;  %3707 = vmatpush3.bf16.msra.mxu0 %v4050_v47  ;;  %v752_v59 = vshrl.u32 %v733_v48, 16  ;;  %v1482_v45 = vshrl.u32 %v1443_v28, 16  ;;  %vm4738_vm10 = vmor %vm1170_vm7, %vm1171_vm8 }
  0x9a   : > { %3708 = vmatprep.subr.bf16.mxu0 %v4052_v51 }
  0x9b   : > { %3697 = vmatpush3.bf16.msra.mxu1 %v4061_v9  ;;  %v4689_v19 = vrot.slane %v752_v59, 11  ;;  %v4723_v2 = vrot.slane %v1482_v45, 11 }
  0x9c   : > { %3730 = vmatprep.subr.bf16.mxu1 %v4644_v14 }
  0x9d   : > { %3709 = vmatpush3.bf16.msra.mxu0 %v4052_v51  ;;  %v760_v51 = vshll.u32 %v4672_v39, 16 }
  0x9e   : > { %3710 = vmatprep.subr.bf16.mxu0 %v4054_v53 }
  0xa0   : > { %3679 = vmatmul.mubr.bf16.gmra.mxu0 %v486_v50  ;;  %v759_v50 = vrot.slane %v757_v42, 7  ;;  %v4697_v42 = vrot.slane %v778_v20, 11 }
  0xa1   : > { %3711 = vmatpush3.bf16.msra.mxu0 %v4054_v53  ;;  %v791_v53 = vshrl.u32 %v739_v43, 16  ;;  %v4699_v43 = vrot.slane %v1183_v21, 5 }
  0xa2   : > { %3712 = vmatprep.subr.bf16.mxu0 %v4056_v55  ;;  %v4684_v4 = vor.u32 %v760_v51, %v759_v50  ;;  %v830_v50 = vshrl.u32 %v745_v32, 16 }
  0xa3   : > { %v4686_v5 = vrot.slane %v791_v53, 11  ;;  %v4704_v53 = vrot.slane %v804_v30, 11  ;;  %v4067_v30 = vld [vmem:[#allocation8 + $0xb0] sm:$0xff]  }
  0xa5   : > { %3713 = vmatpush3.bf16.msra.mxu0 %v4056_v55 }
  0xa6   : > { %3714 = vmatprep.subr.bf16.mxu0 %v4058_v62 }
  0xa9   : > { %3715 = vmatpush3.bf16.msra.mxu0 %v4058_v62 }
  0xaa   : > { %3716 = vmatprep.subr.bf16.mxu0 %v4060_v7 }
  0xad   : > { %3717 = vmatpush3.bf16.msra.mxu0 %v4060_v7  ;;  %v1439_v7 = vld [vmem:[#allocation2 + $0xc] sm:$0x8] }
  0xae   : > { %3718 = vmatprep.subr.bf16.mxu0 %v4063_v13  ;;  %v1456_v33 = vshrl.u32 %v1439_v7, 16  ;;  %v4725_v7 = vrot.slane %v830_v50, 11 }
  0xb1   : > { %3719 = vmatpush3.bf16.msra.mxu0 %v4063_v13  ;;  %v1180_v13 = vor.u32 %v1179_v57, %v1176_v56 }
  0xb2   : > { %3720 = vmatprep.subr.bf16.mxu0 %v4066_v17 }
  0xb3   : > { %v4695_v38 = vrot.slane %v1180_v13, 4 }
  0xb5   : > { %3721 = vmatpush3.bf16.msra.mxu0 %v4066_v17  ;;  %v1441_v17 = vld [vmem:[#allocation2 + $0x18] sm:$0x8] }
  0xb6   : > { %3754 = vmatprep.subr.bf16.mxu0 %v4653_v22  ;;  %v1469_v34 = vshrl.u32 %v1441_v17, 16 }
  0xb8   : > { %v4710_v56 = vrot.slane %v1469_v34, 11 }
 0x158   : > { %v3676_v46 = vpop.f32.mrf.mxu0 }
 0x159   : > { %v601_v47 = vadd.f32 %v3676_v46, %v4677_v41 }
 0x15a   : > { %v592_v49 = vpop.f32.mrf.mxu0 }
 0x15b   : > { %v625_v54 = vmax.f32 %v601_v47, 0.0  ;;  %v593_v55 = vadd.f32 %v4677_v41, %v592_v49  ;;  %v747_v49 = vld [vmem:[#allocation2 + $0x54] sm:$0x8] }
 0x15c   : > { %v3677_v58 = vpop.f32.mrf.mxu0  ;;  %v843_v1 = vshrl.u32 %v747_v49, 16 }
 0x15d   : > { %v3507_v61 = vpack.c.bf16 %v625_v54, %v625_v54  ;;  %v623_v62 = vmax.f32 %v593_v55, 0.0  ;;  %v604_v63 = vadd.f32 %v3677_v58, %v4677_v41  ;;  %v4706_v54 = vrot.slane %v817_v31, 11 }
 0x15e   : > { %v595_v3 = vpop.f32.mrf.mxu0  ;;  %v4708_v55 = vrot.slane %v1456_v33, 11 }
 0x15f   : > { %727 = vst [vmem:[#allocation2 + $0x28] sm:$0xf] %v3507_v61  ;;  %v3505_v8 = vpack.c.bf16 %v623_v62, %v623_v62  ;;  %v626_v9 = vmax.f32 %v604_v63, 0.0  ;;  %v596_v12 = vadd.f32 %v4677_v41, %v595_v3  ;;  %v763_v63 = vsel %vm4715_vm9, %v4689_v19, %v4684_v4 }
 0x160   : > { %v3680_v18 = vpop.f32.mrf.mxu0 }
 0x161   : > { %725 = vst [vmem:[#allocation2 + $0x10] sm:$0xf] %v3505_v8  ;;  %v3508_v24 = vpack.c.bf16 %v626_v9, %v626_v9  ;;  %v624_v25 = vmax.f32 %v596_v12, 0.0  ;;  %v617_v26 = vadd.f32 %v3680_v18, %v4677_v41 }
 0x162   : > { %v608_v29 = vpop.f32.mrf.mxu0 }
 0x163   : > { %728 = vst [vmem:[#allocation2 + $0x34] sm:$0xf] %v3508_v24  ;;  %v3506_v35 = vpack.c.bf16 %v624_v25, %v624_v25  ;;  %v629_v36 = vmax.f32 %v617_v26, 0.0  ;;  %v609_v37 = vadd.f32 %v4677_v41, %v608_v29  ;;  %v4730_v26 = vrot.slane %v843_v1, 11 }
 0x164   : > { %v3681_v40 = vpop.f32.mrf.mxu0 }
 0x165   : > { %726 = vst [vmem:[#allocation2 + $0x1c] sm:$0xf] %v3506_v35  ;;  %v3511_v46 = vpack.c.bf16 %v629_v36, %v629_v36  ;;  %v627_v47 = vmax.f32 %v609_v37, 0.0  ;;  %v620_v48 = vadd.f32 %v3681_v40, %v4677_v41 }
 0x166   : > { %v611_v51 = vpop.f32.mrf.mxu0  ;;  %v740_v52 = vld [vmem:[#allocation2 + $0x28] sm:$0xf] }
 0x167   : > { %731 = vst [vmem:[#allocation2 + $0x58] sm:$0xf] %v3511_v46  ;;  %v3509_v57 = vpack.c.bf16 %v627_v47, %v627_v47  ;;  %v630_v58 = vmax.f32 %v620_v48, 0.0  ;;  %v612_v59 = vadd.f32 %v4677_v41, %v611_v51  ;;  %v796_v60 = vshrl.u32 %v740_v52, 16  ;;  %v4139_v47 = vld [vmem:[#allocation11 + $0x18] sm:$0xff]  }
 0x168   : > { %v736_v62 = vld [vmem:[#allocation2 + $0x10] sm:$0xf]  ;;  %v799_v23 = vshll.u32 %v740_v52, 16  ;;  %v1186_v51 = vsel %vm4738_vm10, %v4695_v38, %v4699_v43 }
 0x169   : > { %v1156_v0 = vld [vmem:[#allocation2 + $0x10] sm:$0xf]  ;;  %729 = vst [vmem:[#allocation2 + $0x40] sm:$0xf] %v3509_v57  ;;  %v3512_v3 = vpack.c.bf16 %v630_v58, %v630_v58  ;;  %v628_v41 = vmax.f32 %v612_v59, 0.0  ;;  %v770_v6 = vshrl.u32 %v736_v62, 16  ;;  %v3357_v8 = vcombine.low %v4672_v39, %v736_v62 }
 0x16a   : > { %v798_v9 = vrot.slane %v796_v60, 7  ;;  %v742_v12 = vld [vmem:[#allocation2 + $0x34] sm:$0xf]  ;;  %v1188_v13 = vshrl.u32 %v1156_v0, 16  ;;  %v1191_v16 = vshll.u32 %v1156_v0, 16  ;;  %v773_v4 = vshll.u32 %v736_v62, 16 }
 0x16b   : > { %732 = vst [vmem:[#allocation2 + $0x64] sm:$0xf] %v3512_v3  ;;  %v3510_v17 = vpack.c.bf16 %v628_v41, %v628_v41  ;;  %v772_v18 = vrot.slane %v770_v6, 7  ;;  %v809_v19 = vshrl.u32 %v742_v12, 16  ;;  %v4728_v20 = vld [vmem:[#allocation2 + $0x10] sm:$0xf]  ;;  %3698 = vmatprep.mubr.bf16.mxu1 %v3357_v8 }
 0x16c   : > { %v738_v21 = vld [vmem:[#allocation2 + $0x1c] sm:$0xf]  ;;  %v1190_v24 = vrot.slane %v1188_v13, 4  ;;  %v1193_v25 = vrot.slane %v1191_v16, 5  ;;  %v812_v31 = vshll.u32 %v742_v12, 16  ;;  %v801_v32 = vor.u32 %v799_v23, %v798_v9  ;;  %v4070_v62 = vld [vmem:[#allocation8 + $0xa8] sm:$0xff]  }
 0x16d   : > { %730 = vst [vmem:[#allocation2 + $0x4c] sm:$0xf] %v3510_v17  ;;  %v775_v39 = vor.u32 %v773_v4, %v772_v18  ;;  %v783_v28 = vshrl.u32 %v738_v21, 16  ;;  %v3358_v29 = vcombine.low %v738_v21, %v740_v52  ;;  %v811_v33 = vrot.slane %v809_v19, 7  ;;  %v4747_v57 = vld [vmem:[#allocation2 + $0x1c] sm:$0xf] }
 0x16e   : > { %v748_v34 = vld [vmem:[#allocation2 + $0x58] sm:$0xf]  ;;  %v1194_v35 = vor.u32 %v1193_v25, %v1190_v24  ;;  %v1461_v36 = vshrl.u32 %v4728_v20, 16  ;;  %v786_v40 = vshll.u32 %v738_v21, 16  ;;  %v4749_v0 = vld [vmem:[#allocation2 + $0x28] sm:$0xf] }
 0x16f   : > { %v785_v37 = vrot.slane %v783_v28, 7  ;;  %3699 = vmatmul.mubr.bf16.vlgmr.msra.gmra.mxu1 %v3358_v29  ;;  %v776_v45 = vsel %vm4715_vm9, %v4692_v27, %v775_v39  ;;  %v848_v46 = vshrl.u32 %v748_v34, 16  ;;  %v851_v50 = vshll.u32 %v748_v34, 16  ;;  %v1158_v13 = vld [vmem:[#allocation2 + $0x1c] sm:$0xf] }
 0x170   : > { %3731 = vmatpush3.bf16.msra.mxu1 %v4644_v14  ;;  %v3369_v48 = vcombine.low %v763_v63, %v776_v45  ;;  %v744_v49 = vld [vmem:[#allocation2 + $0x40] sm:$0xf]  ;;  %v1195_v52 = vrot.slane %v1194_v35, 4  ;;  %v802_v14 = vsel %vm4715_vm9, %v4686_v5, %v801_v32  ;;  %v814_v1 = vor.u32 %v812_v31, %v811_v33  ;;  %v4073_v21 = vld [vmem:[#allocation8 + $0xa0] sm:$0xff]   ;;  %v4764_v28 = vld [vmem:[#allocation2 + $0x2c] sm:$0x1] }
 0x171   : > { %v788_v27 = vor.u32 %v786_v40, %v785_v37  ;;  %3732 = vmatprep.subr.bf16.mxu1 %v4067_v30  ;;  %v822_v58 = vshrl.u32 %v744_v49, 16  ;;  %v825_v59 = vshll.u32 %v744_v49, 16  ;;  %v3359_v60 = vcombine.low %v742_v12, %v744_v49  ;;  %v1159_v39 = vld [vmem:[#allocation2 + $0x20] sm:$0x1]  ;;  %v1162_v40 = vld [vmem:[#allocation2 + $0x34] sm:$0xf] }
 0x172   : > { %3722 = vmatprep.mubr.bf16.mxu0 %v3369_v48  ;;  %v850_v63 = vrot.slane %v848_v46, 7  ;;  %v1463_v3 = vrot.slane %v1461_v36, 7  ;;  %v1200_v41 = vsel %vm4738_vm10, %v1195_v52, %v4701_v44  ;;  %v1474_v6 = vshrl.u32 %v4747_v57, 16  ;;  %v1164_v33 = vld [vmem:[#allocation2 + $0x40] sm:$0xf]  ;;  %v4075_v46 = vld [vmem:[#allocation8 + $0x98] sm:$0xff]  }
 0x173   : > { %v824_v38 = vrot.slane %v822_v58, 7  ;;  %3702 = vmatprep.mubr.bf16.mxu1 %v3359_v60  ;;  %v789_v43 = vsel %vm4715_vm9, %v4697_v42, %v788_v27  ;;  %v1464_v5 = vshll.u32 %v4728_v20, 16  ;;  %v1216_v16 = vshrl.u32 %v4749_v0, 16  ;;  %v4072_v42 = vld [vmem:[#allocation8 + $0xf0] sm:$0xff]   ;;  %v4074_v35 = vld [vmem:[#allocation8 + $0xe8] sm:$0xff]  }
 0x174   : > { %3733 = vmatpush3.bf16.msra.mxu1 %v4067_v30  ;;  %v3370_v8 = vcombine.low %v789_v43, %v802_v14  ;;  %v746_v9 = vld [vmem:[#allocation2 + $0x4c] sm:$0xf]  ;;  %v853_v12 = vor.u32 %v851_v50, %v850_v63  ;;  %v3381_v44 = vcombine.low %v1186_v51, %v1200_v41  ;;  %v1476_v24 = vrot.slane %v1474_v6, 7  ;;  %v1445_v49 = vld [vmem:[#allocation2 + $0x30] sm:$0x8]  ;;  %v4076_v63 = vld [vmem:[#allocation8 + $0xe0] sm:$0xff]  }
 0x175   : > { %3734 = vmatprep.subr.bf16.mxu1 %v4070_v62  ;;  %v835_v17 = vshrl.u32 %v746_v9, 16  ;;  %v838_v18 = vshll.u32 %v746_v9, 16  ;;  %v3360_v4 = vcombine.low %v746_v9, %v748_v34  ;;  %v827_v19 = vor.u32 %v825_v59, %v824_v38  ;;  %v1163_v52 = vld [vmem:[#allocation2 + $0x38] sm:$0x1]  ;;  %v1165_v27 = vld [vmem:[#allocation2 + $0x44] sm:$0x1] }
 0x176   : > { %3723 = vmatmul.mubr.bf16.vlgmr.msra.gmra.mxu0 %v3370_v8  ;;  %v1466_v23 = vor.u32 %v1464_v5, %v1463_v3  ;;  %v1477_v25 = vshll.u32 %v4747_v57, 16  ;;  %v815_v30 = vsel %vm4715_vm9, %v4704_v53, %v814_v1  ;;  %v1202_v32 = vshrl.u32 %v1158_v13, 16  ;;  %v1447_v14 = vld [vmem:[#allocation2 + $0x3c] sm:$0x8]  ;;  %v4077_v43 = vld [vmem:[#allocation8 + $0x90] sm:$0xff]  }
 0x177   : > { %3755 = vmatpush3.bf16.msra.mxu0 %v4653_v22  ;;  %v837_v29 = vrot.slane %v835_v17, 7  ;;  %3703 = vmatmul.mubr.bf16.gmra.mxu1 %v3360_v4  ;;  %v828_v31 = vsel %vm4715_vm9, %v4706_v54, %v827_v19  ;;  %v1205_v37 = vshll.u32 %v1158_v13, 16  ;;  %v1219_v22 = vshll.u32 %v4749_v0, 16  ;;  %v1449_v9 = vld [vmem:[#allocation2 + $0x48] sm:$0x8]  ;;  %v4078_v19 = vld [vmem:[#allocation8 + $0xd8] sm:$0xff]  }
 0x178   : > { %3735 = vmatpush3.bf16.msra.mxu1 %v4070_v62  ;;  %3746 = vmatprep.mubr.bf16.mxu1 %v3381_v44  ;;  %v3371_v34 = vcombine.low %v815_v30, %v828_v31  ;;  %v1479_v36 = vor.u32 %v1477_v25, %v1476_v24  ;;  %v854_v53 = vsel %vm4715_vm9, %v4730_v26, %v853_v12  ;;  %v1211_v54 = vshll.u32 %v1159_v39, 16  ;;  %v1166_v13 = vld [vmem:[#allocation2 + $0x4c] sm:$0xf]  ;;  %v1167_v4 = vld [vmem:[#allocation2 + $0x50] sm:$0x1]  ;;  %v4079_v39 = vld [vmem:[#allocation8 + $0x88] sm:$0xff]  }
 0x179   : > { %3756 = vmatprep.subr.bf16.mxu0 %v4072_v42  ;;  %3736 = vmatprep.subr.bf16.mxu1 %v4073_v21  ;;  %v840_v45 = vor.u32 %v838_v18, %v837_v29  ;;  %v1225_v48 = vshll.u32 %v4764_v28, 16  ;;  %v1467_v50 = vsel %vm4715_vm9, %v4708_v55, %v1466_v23  ;;  %v1244_v58 = vshrl.u32 %v1164_v33, 16  ;;  %v1169_v24 = vld [vmem:[#allocation2 + $0x5c] sm:$0x1]  ;;  %v4793_v30 = vld [vmem:[#allocation2 + $0x34] sm:$0xf] }
 0x17a   : > { %3726 = vmatprep.mubr.bf16.mxu0 %v3371_v34  ;;  %v1480_v51 = vsel %vm4715_vm9, %v4710_v56, %v1479_v36  ;;  %v1247_v59 = vshll.u32 %v1164_v33, 16  ;;  %v1218_v60 = vrot.slane %v1216_v16, 4  ;;  %v1230_v62 = vshrl.u32 %v1162_v40, 16 }
 0x17b   : > { %3757 = vmatpush3.bf16.msra.mxu0 %v4072_v42  ;;  %v841_v26 = vsel %vm4715_vm9, %v4725_v7, %v840_v45  ;;  %v1233_v0 = vshll.u32 %v1162_v40, 16  ;;  %v1204_v1 = vrot.slane %v1202_v32, 4  ;;  %v1207_v3 = vrot.slane %v1205_v37, 5  ;;  %v1168_v42 = vld [vmem:[#allocation2 + $0x58] sm:$0xf] }
 0x17c   : > { %3737 = vmatpush3.bf16.msra.mxu1 %v4073_v21  ;;  %3758 = vmatprep.subr.bf16.mxu0 %v4074_v35  ;;  %v3372_v55 = vcombine.low %v841_v26, %v854_v53  ;;  %v1221_v56 = vrot.slane %v1219_v22, 5  ;;  %v3401_v38 = vcombine.low %v1467_v50, %v1480_v51  ;;  %v1239_v41 = vshll.u32 %v1163_v52, 16  ;;  %v4799_v37 = vld [vmem:[#allocation2 + $0x40] sm:$0xf]  ;;  %v4080_v22 = vld [vmem:[#allocation8 + $0xd0] sm:$0xff]  }
 0x17d   : > { %3738 = vmatprep.subr.bf16.mxu1 %v4075_v46  ;;  %v1246_v6 = vrot.slane %v1244_v58, 4  ;;  %v1249_v8 = vrot.slane %v1247_v59, 5  ;;  %v4787_v7 = vrot.slane %v1211_v54, 5  ;;  %v1253_v12 = vshll.u32 %v1165_v27, 16  ;;  %v4805_v50 = vld [vmem:[#allocation2 + $0x28] sm:$0xf] }
 0x17e   : > { %3727 = vmatmul.mubr.bf16.gmra.mxu0 %v3372_v55  ;;  %v1495_v5 = vshrl.u32 %v1445_v49, 16  ;;  %v1508_v16 = vshrl.u32 %v1447_v14, 16  ;;  %v1232_v17 = vrot.slane %v1230_v62, 4  ;;  %v1235_v18 = vrot.slane %v1233_v0, 5  ;;  %v4081_v27 = vld [vmem:[#allocation8 + $0x80] sm:$0xff]  }
 0x17f   : > { %3759 = vmatpush3.bf16.msra.mxu0 %v4074_v35  ;;  %3770 = vmatprep.mubr.bf16.mxu0 %v3401_v38  ;;  %v1208_v21 = vor.u32 %v1207_v3, %v1204_v1  ;;  %v1222_v44 = vor.u32 %v1221_v56, %v1218_v60  ;;  %v4789_v23 = vrot.slane %v1225_v48, 5  ;;  %v1521_v25 = vshrl.u32 %v1449_v9, 16  ;;  %v1877_v38 = vld [vmem:[#allocation2 + $0x1c] sm:$0xf] }
 0x180   : > { %3739 = vmatpush3.bf16.msra.mxu1 %v4075_v46  ;;  %3760 = vmatprep.subr.bf16.mxu0 %v4076_v63  ;;  %v4791_v28 = vrot.slane %v1239_v41, 5  ;;  %v1250_v29 = vor.u32 %v1249_v8, %v1246_v6  ;;  %v1258_v31 = vshrl.u32 %v1166_v13, 16  ;;  %v1261_v32 = vshll.u32 %v1166_v13, 16  ;;  %v4801_v46 = vld [vmem:[#allocation2 + $0x4c] sm:$0xf]  ;;  %v4083_v8 = vld [vmem:[#allocation8 + $0x138] sm:$0xff]  }
 0x181   : > { %3740 = vmatprep.subr.bf16.mxu1 %v4077_v43  ;;  %v4795_v33 = vrot.slane %v1253_v12, 5  ;;  %v4797_v34 = vrot.slane %v1495_v5, 11  ;;  %v1267_v35 = vshll.u32 %v1167_v4, 16  ;;  %v1272_v36 = vshrl.u32 %v1168_v42, 16 }
 0x182   : > { %v1236_v40 = vor.u32 %v1235_v18, %v1232_v17  ;;  %v1275_v45 = vshll.u32 %v1168_v42, 16  ;;  %v1281_v53 = vshll.u32 %v1169_v24, 16  ;;  %v4803_v54 = vrot.slane %v1508_v16, 11  ;;  %v4829_v18 = vld [vmem:[#allocation2 + $0x58] sm:$0xf] }
 0x183   : > { %3761 = vmatpush3.bf16.msra.mxu0 %v4076_v63  ;;  %v1209_v48 = vrot.slane %v1208_v21, 4  ;;  %v1223_v49 = vrot.slane %v1222_v44, 4  ;;  %v1500_v51 = vshrl.u32 %v4793_v30, 16  ;;  %v4808_v52 = vrot.slane %v1521_v25, 11  ;;  %v4832_v21 = vld [vmem:[#allocation2 + $0x64] sm:$0xf] }
 0x184   : > { %3741 = vmatpush3.bf16.msra.mxu1 %v4077_v43  ;;  %3762 = vmatprep.subr.bf16.mxu0 %v4078_v19  ;;  %v1251_v58 = vrot.slane %v1250_v29, 4  ;;  %v1260_v59 = vrot.slane %v1258_v31, 4  ;;  %v1263_v26 = vrot.slane %v1261_v32, 5  ;;  %v1513_v60 = vshrl.u32 %v4799_v37, 16  ;;  %v4082_v43 = vld [vmem:[#allocation8 + $0xc8] sm:$0xff]  }
 0x185   : > { %3742 = vmatprep.subr.bf16.mxu1 %v4079_v39  ;;  %v4811_v62 = vrot.slane %v1267_v35, 5  ;;  %v1274_v0 = vrot.slane %v1272_v36, 4  ;;  %v1277_v14 = vrot.slane %v1275_v45, 5  ;;  %v1526_v55 = vshrl.u32 %v4801_v46, 16  ;;  %v1453_v35 = vld [vmem:[#allocation2 + $0x60] sm:$0x8] }
 0x186   : > { %v1237_v63 = vrot.slane %v1236_v40, 4  ;;  %v1487_v1 = vshrl.u32 %v4805_v50, 16  ;;  %v1490_v3 = vshll.u32 %v4805_v50, 16  ;;  %v4816_v56 = vrot.slane %v1281_v53, 5  ;;  %v4084_v45 = vld [vmem:[#allocation8 + $0xc0] sm:$0xff]  }
 0x187   : > { %3763 = vmatpush3.bf16.msra.mxu0 %v4078_v19  ;;  %v1214_v41 = vsel %vm4738_vm10, %v1209_v48, %v4787_v7  ;;  %v1228_v6 = vsel %vm4738_vm10, %v1223_v49, %v4789_v23  ;;  %v1502_v9 = vrot.slane %v1500_v51, 7  ;;  %v1503_v12 = vshll.u32 %v4793_v30, 16  ;;  %v1875_v7 = vld [vmem:[#allocation2 + $0x10] sm:$0xf] }
 0x188   : > { %3743 = vmatpush3.bf16.msra.mxu1 %v4079_v39  ;;  %3764 = vmatprep.subr.bf16.mxu0 %v4080_v22  ;;  %v1256_v5 = vsel %vm4738_vm10, %v1251_v58, %v4795_v33  ;;  %v1264_v13 = vor.u32 %v1263_v26, %v1260_v59  ;;  %v1515_v16 = vrot.slane %v1513_v60, 7  ;;  %v1516_v17 = vshll.u32 %v4799_v37, 16  ;;  %v4837_v39 = vld [vmem:[#allocation2 + $0x20] sm:$0x1]  ;;  %v1451_v33 = vld [vmem:[#allocation2 + $0x54] sm:$0x8] }
 0x189   : > { %3744 = vmatprep.subr.bf16.mxu1 %v4081_v27  ;;  %v1278_v4 = vor.u32 %v1277_v14, %v1274_v0  ;;  %v1528_v42 = vrot.slane %v1526_v55, 7  ;;  %v1529_v19 = vshll.u32 %v4801_v46, 16  ;;  %v1906_v44 = vshrl.u32 %v1877_v38, 16 }
 0x18a   : > { %v3382_v23 = vcombine.low %v1214_v41, %v1228_v6  ;;  %v1242_v24 = vsel %vm4738_vm10, %v1237_v63, %v4791_v28  ;;  %v1489_v25 = vrot.slane %v1487_v1, 7  ;;  %v1909_v29 = vshll.u32 %v1877_v38, 16  ;;  %v4086_v63 = vld [vmem:[#allocation8 + $0x178] sm:$0xff]  }
 0x18b   : > { %3765 = vmatpush3.bf16.msra.mxu0 %v4080_v22  ;;  %v3383_v31 = vcombine.low %v1242_v24, %v1256_v5  ;;  %v1505_v32 = vor.u32 %v1503_v12, %v1502_v9  ;;  %v1892_v36 = vshrl.u32 %v1875_v7, 16  ;;  %v1895_v40 = vshll.u32 %v1875_v7, 16  ;;  %v4085_v22 = vld [vmem:[#allocation8 + $0x130] sm:$0xff]   ;;  %v1876_v38 = vld [vmem:[#allocation2 + $0x14] sm:$0x1] }
 0x18c   : > { %3745 = vmatpush3.bf16.msra.mxu1 %v4081_v27  ;;  %3766 = vmatprep.subr.bf16.mxu0 %v4082_v43  ;;  %v1265_v53 = vrot.slane %v1264_v13, 4  ;;  %v1518_v48 = vor.u32 %v1516_v17, %v1515_v16  ;;  %v1539_v49 = vshrl.u32 %v4829_v18, 16  ;;  %v1552_v28 = vshrl.u32 %v4832_v21, 16 }
 0x18d   : > { %3778 = vmatprep.subr.bf16.mxu1 %v4083_v8  ;;  %v1279_v51 = vrot.slane %v1278_v4, 4  ;;  %v1531_v58 = vor.u32 %v1529_v19, %v1528_v42  ;;  %v1908_v59 = vrot.slane %v1906_v44, 4  ;;  %v1911_v27 = vrot.slane %v1909_v29, 5 }
 0x18e   : > { %v1492_v26 = vor.u32 %v1490_v3, %v1489_v25  ;;  %v1534_v60 = vshrl.u32 %v1451_v33, 16  ;;  %v1547_v0 = vshrl.u32 %v1453_v35, 16  ;;  %v1915_v14 = vshll.u32 %v4837_v39, 16  ;;  %v4091_v35 = vld [vmem:[#allocation8 + $0x168] sm:$0xff]  }
 0x18f   : > { %3747 = vmatmul.mubr.bf16.vlgmr.msra.gmra.mxu1 %v3382_v23  ;;  %3767 = vmatpush3.bf16.msra.mxu0 %v4082_v43  ;;  %v1506_v55 = vsel %vm4715_vm9, %v4797_v34, %v1505_v32  ;;  %v1542_v1 = vshll.u32 %v4829_v18, 16  ;;  %v1894_v41 = vrot.slane %v1892_v36, 4  ;;  %v1897_v6 = vrot.slane %v1895_v40, 5  ;;  %v4087_v43 = vld [vmem:[#allocation8 + $0x128] sm:$0xff]   ;;  %v4092_v36 = vld [vmem:[#allocation8 + $0x118] sm:$0xff]  }
 0x190   : > { %3750 = vmatprep.mubr.bf16.mxu1 %v3383_v31  ;;  %3779 = vmatpush3.bf16.msra.mxu1 %v4083_v8  ;;  %v1270_v3 = vsel %vm4738_vm10, %v1265_v53, %v4811_v62  ;;  %v1541_v9 = vrot.slane %v1539_v49, 7  ;;  %v1554_v12 = vrot.slane %v1552_v28, 7  ;;  %v1555_v8 = vshll.u32 %v4832_v21, 16  ;;  %v4094_v53 = vld [vmem:[#allocation8 + $0x110] sm:$0xff]   ;;  %v4872_v28 = vld [vmem:[#allocation2 + $0x24] sm:$0x8] }
 0x191   : > { %3768 = vmatprep.subr.bf16.mxu0 %v4084_v45  ;;  %3780 = vmatprep.subr.bf16.mxu1 %v4085_v22  ;;  %v1284_v34 = vsel %vm4738_vm10, %v1279_v51, %v4816_v56  ;;  %v1519_v5 = vsel %vm4715_vm9, %v4803_v54, %v1518_v48  ;;  %v1532_v13 = vsel %vm4715_vm9, %v4808_v52, %v1531_v58  ;;  %v1901_v17 = vshll.u32 %v1876_v38, 16  ;;  %v4089_v54 = vld [vmem:[#allocation8 + $0x170] sm:$0xff]   ;;  %v4090_v52 = vld [vmem:[#allocation8 + $0x120] sm:$0xff]   ;;  %v1881_v48 = vld [vmem:[#allocation2 + $0x34] sm:$0xf] }
 0x192   : > { %v1912_v16 = vor.u32 %v1911_v27, %v1908_v59  ;;  %v1493_v62 = vsel %vm4715_vm9, %v4723_v2, %v1492_v26  ;;  %v3399_v4 = vrot.slane %v1534_v60, 11  ;;  %v3400_v56 = vrot.slane %v1547_v0, 11  ;;  %v1880_v49 = vld [vmem:[#allocation2 + $0x2c] sm:$0x1]  ;;  %v1882_v51 = vld [vmem:[#allocation2 + $0x38] sm:$0x1] }
 0x193   : > { %3769 = vmatpush3.bf16.msra.mxu0 %v4084_v45  ;;  %v3402_v7 = vcombine.low %v1493_v62, %v1506_v55  ;;  %v1898_v42 = vor.u32 %v1897_v6, %v1894_v41  ;;  %v3384_v19 = vcombine.low %v1270_v3, %v1284_v34  ;;  %v3403_v44 = vcombine.low %v1519_v5, %v1532_v13  ;;  %v1883_v58 = vld [vmem:[#allocation2 + $0x40] sm:$0xf]  ;;  %v1885_v59 = vld [vmem:[#allocation2 + $0x4c] sm:$0xf]  ;;  %v4095_v27 = vld [vmem:[#allocation8 + $0x158] sm:$0xff]  }
 0x194   : > { %3781 = vmatpush3.bf16.msra.mxu1 %v4085_v22  ;;  %3802 = vmatprep.subr.bf16.mxu0 %v4086_v63  ;;  %v1544_v23 = vor.u32 %v1542_v1, %v1541_v9  ;;  %v1557_v24 = vor.u32 %v1555_v8, %v1554_v12  ;;  %v1913_v25 = vrot.slane %v1912_v16, 4  ;;  %v1917_v39 = vrot.slane %v1915_v14, 5  ;;  %v4093_v22 = vld [vmem:[#allocation8 + $0x160] sm:$0xff]   ;;  %v4096_v26 = vld [vmem:[#allocation8 + $0x108] sm:$0xff]   ;;  %v1879_v60 = vld [vmem:[#allocation2 + $0x28] sm:$0xf] }
 0x195   : > { %3782 = vmatprep.subr.bf16.mxu1 %v4087_v43  ;;  %v3413_v2 = vcombine.low %v4728_v20, %v4747_v57  ;;  %v1899_v29 = vrot.slane %v1898_v42, 4  ;;  %v1903_v31 = vrot.slane %v1901_v17, 5  ;;  %v1934_v0 = vshrl.u32 %v1881_v48, 16  ;;  %v4097_v12 = vld [vmem:[#allocation8 + $0x150] sm:$0xff]   ;;  %v4098_v8 = vld [vmem:[#allocation8 + $0x100] sm:$0xff]  }
 0x196   : > { %3771 = vmatmul.mubr.bf16.vlgmr.msra.gmra.mxu0 %v3402_v7  ;;  %v1545_v32 = vsel %vm4715_vm9, %v3399_v4, %v1544_v23  ;;  %v1558_v33 = vsel %vm4715_vm9, %v3400_v56, %v1557_v24  ;;  %v1918_v40 = vsel %vm4738_vm10, %v1913_v25, %v1917_v39  ;;  %v1937_v14 = vshll.u32 %v1881_v48, 16  ;;  %v4875_v13 = vld [vmem:[#allocation2 + $0x1c] sm:$0xf]  ;;  %v1884_v16 = vld [vmem:[#allocation2 + $0x44] sm:$0x1]  ;;  %v4101_v39 = vld [vmem:[#allocation8 + $0x1b8] sm:$0xff]  }
 0x197   : > { %3751 = vmatmul.mubr.bf16.gmra.mxu1 %v3384_v19  ;;  %3774 = vmatprep.mubr.bf16.mxu0 %v3403_v44  ;;  %v3404_v20 = vcombine.low %v1545_v32, %v1558_v33  ;;  %v1904_v57 = vsel %vm4738_vm10, %v1899_v29, %v1903_v31  ;;  %v2188_v55 = vshrl.u32 %v4872_v28, 16  ;;  %v1951_v1 = vshll.u32 %v1883_v58, 16  ;;  %v4877_v62 = vld [vmem:[#allocation2 + $0x28] sm:$0xf]  ;;  %v1887_v17 = vld [vmem:[#allocation2 + $0x58] sm:$0xf] }
 0x198   : > { %3803 = vmatpush3.bf16.msra.mxu0 %v4086_v63  ;;  %3783 = vmatpush3.bf16.msra.mxu1 %v4087_v43  ;;  %v3425_v45 = vcombine.low %v1904_v57, %v1918_v40  ;;  %v1948_v63 = vshrl.u32 %v1883_v58, 16  ;;  %v1962_v38 = vshrl.u32 %v1885_v59, 16  ;;  %v1965_v41 = vshll.u32 %v1885_v59, 16  ;;  %v1889_v19 = vld [vmem:[#allocation2 + $0x64] sm:$0xf] }
 0x199   : > { %3794 = vmatprep.mubr.bf16.mxu1 %v3413_v2  ;;  %3804 = vmatprep.subr.bf16.mxu0 %v4089_v54  ;;  %v1920_v6 = vshrl.u32 %v1879_v60, 16  ;;  %v1923_v3 = vshll.u32 %v1879_v60, 16  ;;  %v1929_v43 = vshll.u32 %v1880_v49, 16  ;;  %v1943_v9 = vshll.u32 %v1882_v51, 16  ;;  %v1886_v24 = vld [vmem:[#allocation2 + $0x50] sm:$0x1] }
 0x19a   : > { %3784 = vmatprep.subr.bf16.mxu1 %v4090_v52  ;;  %v1936_v34 = vrot.slane %v1934_v0, 4  ;;  %v1939_v5 = vrot.slane %v1937_v14, 5  ;;  %v1950_v7 = vrot.slane %v1948_v63, 4  ;;  %v1953_v4 = vrot.slane %v1951_v1, 5  ;;  %v4099_v25 = vld [vmem:[#allocation8 + $0x148] sm:$0xff]   ;;  %v4104_v63 = vld [vmem:[#allocation8 + $0x1b0] sm:$0xff]  }
 0x19b   : > { %v1964_v56 = vrot.slane %v1962_v38, 4  ;;  %v1967_v42 = vrot.slane %v1965_v41, 5  ;;  %v1922_v44 = vrot.slane %v1920_v6, 4  ;;  %v4879_v23 = vrot.slane %v1929_v43, 5  ;;  %v2158_v31 = vld [vmem:[#allocation2 + $0x18] sm:$0x8] }
 0x19c   : > { %3805 = vmatpush3.bf16.msra.mxu0 %v4089_v54  ;;  %3785 = vmatpush3.bf16.msra.mxu1 %v4090_v52  ;;  %v1925_v54 = vrot.slane %v1923_v3, 5  ;;  %v2180_v52 = vshrl.u32 %v4875_v13, 16  ;;  %v1940_v2 = vor.u32 %v1939_v5, %v1936_v34  ;;  %v1945_v29 = vrot.slane %v1943_v9, 5  ;;  %v1888_v58 = vld [vmem:[#allocation2 + $0x5c] sm:$0x1] }
 0x19d   : > { %3806 = vmatprep.subr.bf16.mxu0 %v4091_v35  ;;  %3786 = vmatprep.subr.bf16.mxu1 %v4092_v36  ;;  %v2193_v32 = vshrl.u32 %v4877_v62, 16  ;;  %v1976_v33 = vshrl.u32 %v1887_v17, 16  ;;  %v1993_v40 = vshll.u32 %v1889_v19, 16  ;;  %v1957_v57 = vshll.u32 %v1884_v16, 16  ;;  %v1890_v14 = vld [vmem:[#allocation2 + $0x68] sm:$0x1] }
 0x19e   : > { %3775 = vmatmul.mubr.bf16.gmra.mxu0 %v3404_v20  ;;  %v1954_v20 = vor.u32 %v1953_v4, %v1950_v7  ;;  %v1926_v48 = vor.u32 %v1925_v54, %v1922_v44  ;;  %v2175_v49 = vshrl.u32 %v2158_v31, 16  ;;  %v2182_v51 = vrot.slane %v2180_v52, 7  ;;  %v4107_v7 = vld [vmem:[#allocation8 + $0x1a8] sm:$0xff]   ;;  %v4109_v31 = vld [vmem:[#allocation8 + $0x1a0] sm:$0xff]  }
 0x19f   : > { %3818 = vmatprep.mubr.bf16.mxu0 %v3425_v45  ;;  %v1968_v45 = vor.u32 %v1967_v42, %v1964_v56  ;;  %v3415_v59 = vcombine.low %v4799_v37, %v4801_v46  ;;  %v2183_v60 = vshll.u32 %v4875_v13, 16  ;;  %v2195_v0 = vrot.slane %v2193_v32, 7 }
 0x1a0   : > { %3807 = vmatpush3.bf16.msra.mxu0 %v4091_v35  ;;  %3787 = vmatpush3.bf16.msra.mxu1 %v4092_v36  ;;  %v1979_v35 = vshll.u32 %v1887_v17, 16  ;;  %v1990_v36 = vshrl.u32 %v1889_v19, 16  ;;  %v1978_v1 = vrot.slane %v1976_v33, 4  ;;  %v1959_v6 = vrot.slane %v1957_v57, 5  ;;  %v4113_v57 = vld [vmem:[#allocation8 + $0x1e0] sm:$0xff]  }
 0x1a1   : > { %3808 = vmatprep.subr.bf16.mxu0 %v4093_v22  ;;  %3788 = vmatprep.subr.bf16.mxu1 %v4094_v53  ;;  %v1969_v3 = vrot.slane %v1968_v45, 4  ;;  %v1927_v9 = vrot.slane %v1926_v48, 4  ;;  %v3437_v37 = vrot.slane %v2175_v49, 11  ;;  %v2185_v46 = vor.u32 %v2183_v60, %v2182_v51  ;;  %v4912_v45 = vld [vmem:[#allocation2 + $0x4c] sm:$0xf] }
 0x1a2   : > { %v1981_v38 = vrot.slane %v1979_v35, 5  ;;  %v1992_v41 = vrot.slane %v1990_v36, 4  ;;  %v3438_v34 = vrot.slane %v2188_v55, 11  ;;  %v1985_v5 = vshll.u32 %v1888_v58, 16  ;;  %v4110_v35 = vld [vmem:[#allocation8 + $0x1e8] sm:$0xff]   ;;  %v4111_v36 = vld [vmem:[#allocation8 + $0x198] sm:$0xff]  }
 0x1a3   : > { %v1999_v16 = vshll.u32 %v1890_v14, 16  ;;  %v1932_v28 = vsel %vm4738_vm10, %v1927_v9, %v4879_v23  ;;  %v2186_v55 = vsel %vm4715_vm9, %v3437_v37, %v2185_v46  ;;  %v4114_v48 = vld [vmem:[#allocation8 + $0x190] sm:$0xff]   ;;  %v4918_v49 = vld [vmem:[#allocation2 + $0x34] sm:$0xf]  ;;  %v2164_v51 = vld [vmem:[#allocation2 + $0x3c] sm:$0x8] }
 0x1a4   : > { %3809 = vmatpush3.bf16.msra.mxu0 %v4093_v22  ;;  %3789 = vmatpush3.bf16.msra.mxu1 %v4094_v53  ;;  %v1971_v22 = vshll.u32 %v1886_v24, 16  ;;  %v3414_v53 = vcombine.low %v4805_v50, %v4793_v30  ;;  %v1995_v30 = vrot.slane %v1993_v40, 5  ;;  %v1955_v50 = vrot.slane %v1954_v20, 4  ;;  %v4910_v40 = vld [vmem:[#allocation2 + $0x40] sm:$0xf]  ;;  %v4115_v14 = vld [vmem:[#allocation8 + $0x1d8] sm:$0xff]  }
 0x1a5   : > { %3810 = vmatprep.subr.bf16.mxu0 %v4095_v27  ;;  %3790 = vmatprep.subr.bf16.mxu1 %v4096_v26  ;;  %v1982_v56 = vor.u32 %v1981_v38, %v1978_v1  ;;  %v3416_v24 = vcombine.low %v4829_v18, %v4832_v21  ;;  %v1987_v52 = vrot.slane %v1985_v5, 5  ;;  %v2219_v58 = vshrl.u32 %v4910_v40, 16  ;;  %v4116_v1 = vld [vmem:[#allocation8 + $0x188] sm:$0xff]   ;;  %v2596_v9 = vld [vmem:[#allocation2 + $0x28] sm:$0xf] }
 0x1a6   : > { %v1973_v43 = vrot.slane %v1971_v22, 5  ;;  %v1996_v42 = vor.u32 %v1995_v30, %v1992_v41  ;;  %v1960_v19 = vsel %vm4738_vm10, %v1955_v50, %v1959_v6  ;;  %v4914_v22 = vld [vmem:[#allocation2 + $0x58] sm:$0xf]  ;;  %v2232_v60 = vshrl.u32 %v4912_v45, 16  ;;  %v4924_v30 = vld [vmem:[#allocation2 + $0x70] sm:$0xf] }
 0x1a7   : > { %v1983_v32 = vrot.slane %v1982_v56, 4  ;;  %v2221_v50 = vrot.slane %v2219_v58, 7  ;;  %v2222_v6 = vshll.u32 %v4910_v40, 16  ;;  %v4117_v5 = vld [vmem:[#allocation8 + $0x1d0] sm:$0xff]   ;;  %v4118_v56 = vld [vmem:[#allocation8 + $0x180] sm:$0xff]  }
 0x1a8   : > { %3811 = vmatpush3.bf16.msra.mxu0 %v4095_v27  ;;  %3791 = vmatpush3.bf16.msra.mxu1 %v4096_v26  ;;  %v4103_v27 = vld [vmem:[#allocation8 + $0x140] sm:$0xff]   ;;  %v1941_v26 = vrot.slane %v1940_v2, 4  ;;  %v1974_v44 = vsel %vm4738_vm10, %v1969_v3, %v1973_v43  ;;  %v1997_v23 = vrot.slane %v1996_v42, 4  ;;  %v2235_v3 = vshll.u32 %v4912_v45, 16 }
 0x1a9   : > { %3812 = vmatprep.subr.bf16.mxu0 %v4097_v12  ;;  %3792 = vmatprep.subr.bf16.mxu1 %v4098_v8  ;;  %v1988_v18 = vsel %vm4738_vm10, %v1983_v32, %v1987_v52  ;;  %v2248_v43 = vshll.u32 %v4914_v22, 16  ;;  %v2234_v37 = vrot.slane %v2232_v60, 7  ;;  %v2172_v52 = vld [vmem:[#allocation2 + $0x6c] sm:$0x8]  ;;  %v4119_v32 = vld [vmem:[#allocation8 + $0x1c8] sm:$0xff]  }
 0x1aa   : > { %v1946_v17 = vsel %vm4738_vm10, %v1941_v26, %v1945_v29  ;;  %v4108_v29 = vld [vmem:[#allocation8 + $0x1f0] sm:$0xff]   ;;  %v2162_v26 = vld [vmem:[#allocation2 + $0x30] sm:$0x8] }
 0x1ab   : > { %v3426_v54 = vcombine.low %v1932_v28, %v1946_v17  ;;  %v2628_v28 = vshll.u32 %v2596_v9, 16 }
 0x1ac   : > { %3813 = vmatpush3.bf16.msra.mxu0 %v4097_v12  ;;  %3793 = vmatpush3.bf16.msra.mxu1 %v4098_v8  ;;  %v2196_v12 = vshll.u32 %v4877_v62, 16  ;;  %v4105_v8 = vld [vmem:[#allocation8 + $0x1f8] sm:$0xff]  }
 0x1ad   : > { %3814 = vmatprep.subr.bf16.mxu0 %v4099_v25  ;;  %3826 = vmatprep.subr.bf16.mxu1 %v4101_v39 }
 0x1ae   : > { %v2198_v4 = vor.u32 %v2196_v12, %v2195_v0  ;;  %v2245_v0 = vshrl.u32 %v4914_v22, 16  ;;  %v4929_v12 = vld [vmem:[#allocation2 + $0x64] sm:$0xf] }
 0x1af   : > { %3795 = vmatmul.mubr.bf16.vlgmr.msra.gmra.mxu1 %v3414_v53  ;;  %v3457_v53 = vcombine.low %v4875_v13, %v4877_v62  ;;  %v2206_v13 = vshrl.u32 %v4918_v49, 16  ;;  %v2214_v62 = vshrl.u32 %v2164_v51, 16  ;;  %v2261_v58 = vshll.u32 %v4929_v12, 16 }
 0x1b0   : > { %3815 = vmatpush3.bf16.msra.mxu0 %v4099_v25  ;;  %3798 = vmatprep.mubr.bf16.mxu1 %v3415_v59  ;;  %v2001_v25 = vrot.slane %v1999_v16, 5  ;;  %v2199_v2 = vsel %vm4715_vm9, %v3438_v34, %v2198_v4  ;;  %v2166_v59 = vld [vmem:[#allocation2 + $0x48] sm:$0x8]  ;;  %v2247_v46 = vrot.slane %v2245_v0, 7  ;;  %v2201_v16 = vshrl.u32 %v2162_v26, 16 }
 0x1b1   : > { %3827 = vmatpush3.bf16.msra.mxu1 %v4101_v39  ;;  %3816 = vmatprep.subr.bf16.mxu0 %v4103_v27  ;;  %v3427_v39 = vcombine.low %v1960_v19, %v1974_v44  ;;  %v3445_v33 = vcombine.low %v2186_v55, %v2199_v2  ;;  %v2227_v38 = vshrl.u32 %v2166_v59, 16  ;;  %v2208_v17 = vrot.slane %v2206_v13, 7  ;;  %v2170_v19 = vld [vmem:[#allocation2 + $0x60] sm:$0x8] }
 0x1b2   : > { %3828 = vmatprep.subr.bf16.mxu1 %v4104_v63  ;;  %v2002_v21 = vsel %vm4738_vm10, %v1997_v23, %v2001_v25  ;;  %v2271_v4 = vshrl.u32 %v4924_v30, 16  ;;  %v2625_v44 = vshrl.u32 %v2596_v9, 16  ;;  %v2209_v55 = vshll.u32 %v4918_v49, 16 }
 0x1b3   : > { %v3428_v20 = vcombine.low %v1988_v18, %v2002_v21  ;;  %v3441_v42 = vrot.slane %v2227_v38, 11  ;;  %v2258_v25 = vshrl.u32 %v4929_v12, 16  ;;  %v2250_v2 = vor.u32 %v2248_v43, %v2247_v46  ;;  %v2595_v18 = vld [vmem:[#allocation2 + $0x20] sm:$0x1]  ;;  %v4120_v21 = vld [vmem:[#allocation8 + $0x238] sm:$0xff]  }
 0x1b4   : > { %3817 = vmatpush3.bf16.msra.mxu0 %v4103_v27  ;;  %v2168_v27 = vld [vmem:[#allocation2 + $0x54] sm:$0x8]  ;;  %v3439_v23 = vrot.slane %v2201_v16, 11  ;;  %v2274_v59 = vshll.u32 %v4924_v30, 16 }
 0x1b5   : > { %3829 = vmatpush3.bf16.msra.mxu1 %v4104_v63  ;;  %3850 = vmatprep.subr.bf16.mxu0 %v4105_v8  ;;  %v2594_v63 = vld [vmem:[#allocation2 + $0x1c] sm:$0xf]  ;;  %v2240_v41 = vshrl.u32 %v2168_v27, 16  ;;  %v2260_v51 = vrot.slane %v2258_v25, 7  ;;  %v2597_v27 = vld [vmem:[#allocation2 + $0x2c] sm:$0x1] }
 0x1b6   : > { %3830 = vmatprep.subr.bf16.mxu1 %v4107_v7  ;;  %v2614_v34 = vshll.u32 %v2594_v63, 16 }
 0x1b7   : > { %3819 = vmatmul.mubr.bf16.vlgmr.msra.gmra.mxu0 %v3426_v54  ;;  %3799 = vmatmul.mubr.bf16.gmra.mxu1 %v3416_v24  ;;  %v2224_v54 = vor.u32 %v2222_v6, %v2221_v50  ;;  %v3442_v24 = vrot.slane %v2240_v41, 11  ;;  %v2634_v50 = vshll.u32 %v2597_v27, 16 }
 0x1b8   : > { %3822 = vmatprep.mubr.bf16.mxu0 %v3427_v39  ;;  %3851 = vmatpush3.bf16.msra.mxu0 %v4105_v8  ;;  %v2611_v8 = vshrl.u32 %v2594_v63, 16  ;;  %v2237_v39 = vor.u32 %v2235_v3, %v2234_v37  ;;  %v4121_v63 = vld [vmem:[#allocation8 + $0x1c0] sm:$0xff]   ;;  %v2263_v3 = vor.u32 %v2261_v58, %v2260_v51  ;;  %v2603_v58 = vld [vmem:[#allocation2 + $0x50] sm:$0x1] }
 0x1b9   : > { %3831 = vmatpush3.bf16.msra.mxu1 %v4107_v7  ;;  %3842 = vmatprep.mubr.bf16.mxu1 %v3445_v33  ;;  %v3440_v7 = vrot.slane %v2214_v62, 11  ;;  %v2211_v33 = vor.u32 %v2209_v55, %v2208_v17  ;;  %v2251_v60 = vsel %vm4715_vm9, %v3442_v24, %v2250_v2  ;;  %v2602_v55 = vld [vmem:[#allocation2 + $0x4c] sm:$0xf]  ;;  %v3460_v2 = vcombine.low %v4929_v12, %v4924_v30  ;;  %v4130_v30 = vld [vmem:[#allocation8 + $0x208] sm:$0xff]   ;;  %v2599_v12 = vld [vmem:[#allocation2 + $0x38] sm:$0x1] }
 0x1ba   : > { %3852 = vmatprep.subr.bf16.mxu0 %v4108_v29  ;;  %3832 = vmatprep.subr.bf16.mxu1 %v4109_v31  ;;  %v2238_v26 = vsel %vm4715_vm9, %v3441_v42, %v2237_v39  ;;  %v3459_v42 = vcombine.low %v4912_v45, %v4914_v22  ;;  %v2667_v45 = vshrl.u32 %v2602_v55, 16  ;;  %v2670_v22 = vshll.u32 %v2602_v55, 16 }
 0x1bb   : > { %v2212_v13 = vsel %vm4715_vm9, %v3439_v23, %v2211_v33  ;;  %v3447_v6 = vcombine.low %v2238_v26, %v2251_v60  ;;  %v2601_v23 = vld [vmem:[#allocation2 + $0x44] sm:$0x1] }
 0x1bc   : > { %3853 = vmatpush3.bf16.msra.mxu0 %v4108_v29  ;;  %v2613_v29 = vrot.slane %v2611_v8, 4  ;;  %v4125_v8 = vld [vmem:[#allocation8 + $0x228] sm:$0xff]  }
 0x1bd   : > { %3833 = vmatpush3.bf16.msra.mxu1 %v4109_v31  ;;  %3854 = vmatprep.subr.bf16.mxu0 %v4110_v35  ;;  %v2616_v31 = vrot.slane %v2614_v34, 5 }
 0x1be   : > { %3834 = vmatprep.subr.bf16.mxu1 %v4111_v36 }
 0x1bf   : > { %3823 = vmatmul.mubr.bf16.gmra.mxu0 %v3428_v20  ;;  %v2273_v20 = vrot.slane %v2271_v4, 7  ;;  %v2617_v0 = vor.u32 %v2616_v31, %v2613_v29  ;;  %v3458_v4 = vcombine.low %v4918_v49, %v4910_v40  ;;  %v4128_v40 = vld [vmem:[#allocation8 + $0x218] sm:$0xff]  }
 0x1c0   : > { %3855 = vmatpush3.bf16.msra.mxu0 %v4110_v35  ;;  %3866 = vmatprep.mubr.bf16.mxu0 %v3457_v53  ;;  %v2253_v35 = vshrl.u32 %v2170_v19, 16  ;;  %v2630_v53 = vrot.slane %v2628_v28, 5  ;;  %v2600_v28 = vld [vmem:[#allocation2 + $0x40] sm:$0xf]  ;;  %v2598_v49 = vld [vmem:[#allocation2 + $0x34] sm:$0xf] }
 0x1c1   : > { %3835 = vmatpush3.bf16.msra.mxu1 %v4111_v36  ;;  %3856 = vmatprep.subr.bf16.mxu0 %v4113_v57  ;;  %v2266_v36 = vshrl.u32 %v2172_v52, 16  ;;  %v2276_v9 = vor.u32 %v2274_v59, %v2273_v20  ;;  %v2618_v37 = vrot.slane %v2617_v0, 4  ;;  %v2653_v24 = vshrl.u32 %v2600_v28, 16  ;;  %v2605_v59 = vld [vmem:[#allocation2 + $0x5c] sm:$0x1] }
 0x1c2   : > { %3836 = vmatprep.subr.bf16.mxu1 %v4114_v48  ;;  %v3443_v38 = vrot.slane %v2253_v35, 11  ;;  %v2656_v52 = vshll.u32 %v2600_v28, 16  ;;  %v2639_v29 = vshrl.u32 %v2598_v49, 16  ;;  %v2642_v31 = vshll.u32 %v2598_v49, 16 }
 0x1c3   : > { %v3444_v43 = vrot.slane %v2266_v36, 11  ;;  %v2655_v33 = vrot.slane %v2653_v24, 4  ;;  %v2672_v36 = vrot.slane %v2670_v22, 5  ;;  %v2662_v0 = vshll.u32 %v2601_v23, 16  ;;  %v4133_v23 = vld [vmem:[#allocation11 + $0x30] sm:$0xff]  }
 0x1c4   : > { %3857 = vmatpush3.bf16.msra.mxu0 %v4113_v57  ;;  %v2627_v57 = vrot.slane %v2625_v44, 4  ;;  %v2264_v16 = vsel %vm4715_vm9, %v3443_v38, %v2263_v3  ;;  %v4126_v44 = vld [vmem:[#allocation8 + $0x220] sm:$0xff]   ;;  %v2658_v35 = vrot.slane %v2656_v52, 5  ;;  %v2644_v51 = vrot.slane %v2642_v31, 5 }
 0x1c5   : > { %3837 = vmatpush3.bf16.msra.mxu1 %v4114_v48  ;;  %3858 = vmatprep.subr.bf16.mxu0 %v4115_v14  ;;  %v2225_v48 = vsel %vm4715_vm9, %v3440_v7, %v2224_v54  ;;  %v2277_v17 = vsel %vm4715_vm9, %v3444_v43, %v2276_v9  ;;  %v2604_v54 = vld [vmem:[#allocation2 + $0x58] sm:$0xf]  ;;  %v2690_v38 = vshll.u32 %v2605_v59, 16 }
 0x1c6   : > { %3838 = vmatprep.subr.bf16.mxu1 %v4116_v1  ;;  %v3446_v62 = vcombine.low %v2212_v13, %v2225_v48  ;;  %v2631_v41 = vor.u32 %v2630_v53, %v2627_v57  ;;  %v2681_v25 = vshrl.u32 %v2604_v54, 16  ;;  %v2684_v39 = vshll.u32 %v2604_v54, 16  ;;  %v2606_v53 = vld [vmem:[#allocation2 + $0x64] sm:$0xf]  ;;  %v4145_v59 = vld [vmem:[#allocation11] sm:$0xff]  }
 0x1c7   : > { %v2641_v48 = vrot.slane %v2639_v29, 4  ;;  %v2659_v60 = vor.u32 %v2658_v35, %v2655_v33  ;;  %v2698_v13 = vshll.u32 %v2606_v53, 16  ;;  %v4134_v33 = vld [vmem:[#allocation9 + $0x38] sm:$0xff]   ;;  %v4135_v35 = vld [vmem:[#allocation11 + $0x28] sm:$0xff]  }
 0x1c8   : > { %3859 = vmatpush3.bf16.msra.mxu0 %v4115_v14  ;;  %v2620_v14 = vshll.u32 %v2595_v18, 16  ;;  %v2632_v34 = vrot.slane %v2631_v41, 4  ;;  %v2608_v18 = vld [vmem:[#allocation2 + $0x70] sm:$0xf]  ;;  %v2683_v20 = vrot.slane %v2681_v25, 4  ;;  %v2686_v57 = vrot.slane %v2684_v39, 5 }
 0x1c9   : > { %3839 = vmatpush3.bf16.msra.mxu1 %v4116_v1  ;;  %3860 = vmatprep.subr.bf16.mxu0 %v4117_v5  ;;  %v4122_v1 = vld [vmem:[#allocation8 + $0x230] sm:$0xff]   ;;  %v2709_v27 = vshrl.u32 %v2608_v18, 16  ;;  %v2712_v26 = vshll.u32 %v2608_v18, 16  ;;  %v2645_v41 = vor.u32 %v2644_v51, %v2641_v48  ;;  %v2660_v9 = vrot.slane %v2659_v60, 4  ;;  %v4143_v48 = vld [vmem:[#allocation11 + $0x8] sm:$0xff]  }
 0x1ca   : > { %3840 = vmatprep.subr.bf16.mxu1 %v4118_v56  ;;  %v2622_v46 = vrot.slane %v2620_v14, 5  ;;  %v2695_v14 = vshrl.u32 %v2606_v53, 16  ;;  %v4136_v18 = vld [vmem:[#allocation9 + $0x30] sm:$0xff]   ;;  %v4142_v53 = vld [vmem:[#allocation9 + $0x18] sm:$0xff]  }
 0x1cb   : > { %v2711_v3 = vrot.slane %v2709_v27, 4  ;;  %v2714_v43 = vrot.slane %v2712_v26, 5  ;;  %v4149_v27 = vld [vmem:[%s4589_s18 + $0x8] sm:$0xff] }
 0x1cc   : > { %3861 = vmatpush3.bf16.msra.mxu0 %v4117_v5  ;;  %v2636_v5 = vrot.slane %v2634_v50, 5  ;;  %v2623_v7 = vsel %vm4738_vm10, %v2618_v37, %v2622_v46  ;;  %v2648_v50 = vshll.u32 %v2599_v12, 16  ;;  %v2664_v37 = vrot.slane %v2662_v0, 5  ;;  %v2607_v46 = vld [vmem:[#allocation2 + $0x68] sm:$0x1]  ;;  %v4148_v12 = vld [vmem:[%s4589_s18] sm:$0xff] }
 0x1cd   : > { %3841 = vmatpush3.bf16.msra.mxu1 %v4118_v56  ;;  %3862 = vmatprep.subr.bf16.mxu0 %v4119_v32  ;;  %v3448_v56 = vcombine.low %v2264_v16, %v2277_v17  ;;  %v2704_v28 = vshll.u32 %v2607_v46, 16  ;;  %v2919_v26 = vpack.c.bf16 %v4149_v27, %v4148_v12  ;;  %v4147_v0 = vld [vmem:[#allocation9] sm:$0xff]  }
 0x1ce   : > { %3874 = vmatprep.subr.bf16.mxu1 %v4120_v21  ;;  %v2637_v19 = vsel %vm4738_vm10, %v2632_v34, %v2636_v5  ;;  %v2700_v34 = vrot.slane %v2698_v13, 5  ;;  %v4150_v13 = vld [vmem:[%s4589_s18 + $0x20] sm:$0xff] }
 0x1cf   : > { %v3469_v61 = vcombine.low %v2623_v7, %v2637_v19  ;;  %v2692_v7 = vrot.slane %v2690_v38, 5  ;;  %v2715_v19 = vor.u32 %v2714_v43, %v2711_v3  ;;  %v2706_v25 = vrot.slane %v2704_v28, 5  ;;  %v4152_v38 = vld [vmem:[%s4589_s18 + $0x30] sm:$0xff] }
 0x1d0   : > { %3843 = vmatmul.mubr.bf16.vlgmr.msra.gmra.mxu1 %v3446_v62  ;;  %3863 = vmatpush3.bf16.msra.mxu0 %v4119_v32  ;;  %v4129_v32 = vld [vmem:[#allocation8 + $0x210] sm:$0xff]  }
 0x1d1   : > { %3846 = vmatprep.mubr.bf16.mxu1 %v3447_v6  ;;  %3875 = vmatpush3.bf16.msra.mxu1 %v4120_v21  ;;  %v2669_v21 = vrot.slane %v2667_v45, 4  ;;  %v4131_v6 = vld [vmem:[#allocation8 + $0x200] sm:$0xff]   ;;  %v2716_v52 = vrot.slane %v2715_v19, 4 }
 0x1d2   : > { %3864 = vmatprep.subr.bf16.mxu0 %v4121_v63  ;;  %3876 = vmatprep.subr.bf16.mxu1 %v4122_v1 }
 0x1d3   : > { %v2673_v62 = vor.u32 %v2672_v36, %v2669_v21  ;;  %v4137_v21 = vld [vmem:[#allocation11 + $0x20] sm:$0xff]   ;;  %v4138_v36 = vld [vmem:[#allocation9 + $0x28] sm:$0xff]  }
 0x1d4   : > { %3865 = vmatpush3.bf16.msra.mxu0 %v4121_v63  ;;  %v2676_v63 = vshll.u32 %v2603_v58, 16  ;;  %v4144_v58 = vld [vmem:[#allocation9 + $0x10] sm:$0xff]  }
 0x1d5   : > { %3877 = vmatpush3.bf16.msra.mxu1 %v4122_v1  ;;  %v2687_v1 = vor.u32 %v2686_v57, %v2683_v20  ;;  %v2674_v5 = vrot.slane %v2673_v62, 4  ;;  %v4140_v20 = vld [vmem:[#allocation9 + $0x20] sm:$0xff]   ;;  %v4141_v57 = vld [vmem:[#allocation11 + $0x10] sm:$0xff]   ;;  %v4151_v62 = vld [vmem:[%s4589_s18 + $0x28] sm:$0xff] }
 0x1d6   : > { %3878 = vmatprep.subr.bf16.mxu1 %v4125_v8  ;;  %v2678_v16 = vrot.slane %v2676_v63, 5  ;;  %v2921_v63 = vpack.c.bf16 %v4151_v62, %v4150_v13 }
 0x1d7   : > { %3867 = vmatmul.mubr.bf16.vlgmr.msra.gmra.mxu0 %v3458_v4  ;;  %v2688_v17 = vrot.slane %v2687_v1, 4  ;;  %v2609_v4 = vld [vmem:[#allocation2 + $0x74] sm:$0x1] }
 0x1d8   : > { %3847 = vmatmul.mubr.bf16.gmra.mxu1 %v3448_v56  ;;  %3870 = vmatprep.mubr.bf16.mxu0 %v3459_v42  ;;  %v2646_v56 = vrot.slane %v2645_v41, 4  ;;  %v2650_v42 = vrot.slane %v2648_v50, 5  ;;  %v2718_v55 = vshll.u32 %v2609_v4, 16  ;;  %v2679_v54 = vsel %vm4738_vm10, %v2674_v5, %v2678_v16  ;;  %v4153_v41 = vld [vmem:[%s4589_s18 + $0x38] sm:$0xff] }
 0x1d9   : > { %3879 = vmatpush3.bf16.msra.mxu1 %v4125_v8  ;;  %3890 = vmatprep.mubr.bf16.mxu1 %v3469_v61  ;;  %v2697_v8 = vrot.slane %v2695_v14, 4  ;;  %v2922_v50 = vpack.c.bf16 %v4153_v41, %v4152_v38 }
 0x1da   : > { %3880 = vmatprep.subr.bf16.mxu1 %v4126_v44  ;;  %v2651_v49 = vsel %vm4738_vm10, %v2646_v56, %v2650_v42  ;;  %v2720_v39 = vrot.slane %v2718_v55, 5 }
 0x1db   : > { %v2701_v61 = vor.u32 %v2700_v34, %v2697_v8 }
 0x1dc   : > { %v2721_v29 = vsel %vm4738_vm10, %v2716_v52, %v2720_v39 }
 0x1dd   : > { %3881 = vmatpush3.bf16.msra.mxu1 %v4126_v44  ;;  %v2665_v44 = vsel %vm4738_vm10, %v2660_v9, %v2664_v37  ;;  %v2702_v22 = vrot.slane %v2701_v61, 4 }
 0x1de   : > { %3882 = vmatprep.subr.bf16.mxu1 %v4128_v40  ;;  %v3470_v24 = vcombine.low %v2651_v49, %v2665_v44 }
 0x1df   : > { %3871 = vmatmul.mubr.bf16.gmra.mxu0 %v3460_v2  ;;  %v2707_v2 = vsel %vm4738_vm10, %v2702_v22, %v2706_v25 }
 0x1e0   : > { %v3472_v31 = vcombine.low %v2707_v2, %v2721_v29  ;;  %3914 = vmatprep.mubr.bf16.mxu0 %v2919_v26 }
 0x1e1   : > { %3883 = vmatpush3.bf16.msra.mxu1 %v4128_v40  ;;  %v2693_v40 = vsel %vm4738_vm10, %v2688_v17, %v2692_v7 }
 0x1e2   : > { %3884 = vmatprep.subr.bf16.mxu1 %v4129_v32  ;;  %v3471_v45 = vcombine.low %v2679_v54, %v2693_v40 }
 0x1e5   : > { %3885 = vmatpush3.bf16.msra.mxu1 %v4129_v32  ;;  %v4132_v32 = vld [vmem:[#allocation11 + $0x38] sm:$0xff]  }
 0x1e6   : > { %3886 = vmatprep.subr.bf16.mxu1 %v4130_v30  ;;  %3898 = vmatprep.subr.bf16.mxu0 %v4132_v32 }
 0x1e7   : > { %3899 = vmatpush3.bf16.msra.mxu0 %v4132_v32 }
 0x1e8   : > { %3900 = vmatprep.subr.bf16.mxu0 %v4133_v23 }
 0x1e9   : > { %3887 = vmatpush3.bf16.msra.mxu1 %v4130_v30  ;;  %v4146_v30 = vld [vmem:[#allocation9 + $0x8] sm:$0xff]  }
 0x1ea   : > { %3888 = vmatprep.subr.bf16.mxu1 %v4131_v6 }
 0x1eb   : > { %3901 = vmatpush3.bf16.msra.mxu0 %v4133_v23 }
 0x1ec   : > { %3902 = vmatprep.subr.bf16.mxu0 %v4135_v35 }
 0x1ed   : > { %3889 = vmatpush3.bf16.msra.mxu1 %v4131_v6 }
 0x1ee   : > { %3922 = vmatprep.subr.bf16.mxu1 %v4134_v33 }
 0x1ef   : > { %3903 = vmatpush3.bf16.msra.mxu0 %v4135_v35 }
 0x1f0   : > { %3891 = vmatmul.mubr.bf16.vlgmr.msra.gmra.mxu1 %v3470_v24  ;;  %3904 = vmatprep.subr.bf16.mxu0 %v4137_v21 }
 0x1f1   : > { %3894 = vmatprep.mubr.bf16.mxu1 %v3471_v45  ;;  %3923 = vmatpush3.bf16.msra.mxu1 %v4134_v33 }
 0x1f2   : > { %3924 = vmatprep.subr.bf16.mxu1 %v4136_v18 }
 0x1f3   : > { %3905 = vmatpush3.bf16.msra.mxu0 %v4137_v21 }
 0x1f4   : > { %3906 = vmatprep.subr.bf16.mxu0 %v4139_v47 }
 0x1f5   : > { %3925 = vmatpush3.bf16.msra.mxu1 %v4136_v18 }
 0x1f6   : > { %3926 = vmatprep.subr.bf16.mxu1 %v4138_v36 }
 0x1f7   : > { %3907 = vmatpush3.bf16.msra.mxu0 %v4139_v47 }
 0x1f8   : > { %3895 = vmatmul.mubr.bf16.gmra.mxu1 %v3472_v31  ;;  %3908 = vmatprep.subr.bf16.mxu0 %v4141_v57 }
 0x1f9   : > { %3927 = vmatpush3.bf16.msra.mxu1 %v4138_v36 }
 0x1fa   : > { %3928 = vmatprep.subr.bf16.mxu1 %v4140_v20 }
 0x1fb   : > { %3909 = vmatpush3.bf16.msra.mxu0 %v4141_v57 }
 0x1fc   : > { %3910 = vmatprep.subr.bf16.mxu0 %v4143_v48 }
 0x1fd   : > { %3929 = vmatpush3.bf16.msra.mxu1 %v4140_v20 }
 0x1fe   : > { %3930 = vmatprep.subr.bf16.mxu1 %v4142_v53 }
 0x1ff   : > { %3911 = vmatpush3.bf16.msra.mxu0 %v4143_v48 }
 0x200   : > { %3912 = vmatprep.subr.bf16.mxu0 %v4145_v59 }
 0x201   : > { %3931 = vmatpush3.bf16.msra.mxu1 %v4142_v53 }
 0x202   : > { %3932 = vmatprep.subr.bf16.mxu1 %v4144_v58 }
 0x203   : > { %3913 = vmatpush3.bf16.msra.mxu0 %v4145_v59 }
 0x205   : > { %3933 = vmatpush3.bf16.msra.mxu1 %v4144_v58 }
 0x206   : > { %3934 = vmatprep.subr.bf16.mxu1 %v4146_v30  ;;  %3915 = vmatmul.mubr.bf16.vlgmr.msra.gmra.mxu0 %v2920_v15 }
 0x207   : > { %3918 = vmatprep.mubr.bf16.mxu0 %v2921_v63 }
 0x209   : > { %3935 = vmatpush3.bf16.msra.mxu1 %v4146_v30 }
 0x20a   : > { %3936 = vmatprep.subr.bf16.mxu1 %v4147_v0 }
 0x20d   : > { %3937 = vmatpush3.bf16.msra.mxu1 %v4147_v0 }
 0x20e   : > { %3919 = vmatmul.mubr.bf16.gmra.mxu0 %v2922_v50 }
 0x22f   : > { %v4970_v51 = vpop.f32.mrf.mxu1 }
 0x231   : > { %v4974_v60 = vpop.f32.mrf.mxu1 }
 0x233   : > { %v4979_v14 = vpop.f32.mrf.mxu1 }
 0x235   : > { %v997_v6 = vpop.f32.mrf.mxu1 }
 0x236   : > { %v3724_v1 = vpop.f32.mrf.mxu0 }
 0x237   : > { %v4985_v43 = vpop.f32.mrf.mxu1  ;;  %v1132_v26 = vadd.f32 %v3724_v1, %v4970_v51 }
 0x238   : > { %v1123_v3 = vpop.f32.mrf.mxu0 }
 0x239   : > { %v4987_v11 = vpop.f32.mrf.mxu1  ;;  %v1124_v27 = vadd.f32 %v1123_v3, %v4974_v60 }
 0x23a   : > { %v3725_v10 = vpop.f32.mrf.mxu0 }
 0x23b   : > { %v4989_v9 = vpop.f32.mrf.mxu1  ;;  %v1135_v62 = vadd.f32 %v3725_v10, %v4979_v14 }
 0x23c   : > { %v1126_v15 = vpop.f32.mrf.mxu0 }
 0x23d   : > { %v4993_v46 = vpop.f32.mrf.mxu1  ;;  %v1127_v41 = vadd.f32 %v1126_v15, %v997_v6 }
 0x23e   : > { %v4991_v37 = vpop.f32.mrf.mxu0 }
 0x23f   : > { %v1148_v14 = vadd.f32 %v4991_v37, %v4985_v43 }
 0x240   : > { %v1139_v34 = vpop.f32.mrf.mxu0 }
 0x241   : > { %v1140_v60 = vadd.f32 %v1139_v34, %v4987_v11 }
 0x242   : > { %v3729_v16 = vpop.f32.mrf.mxu0 }
 0x243   : > { %v1151_v10 = vadd.f32 %v3729_v16, %v4989_v9 }
 0x244   : > { %v4995_v7 = vpop.f32.mrf.mxu0 }
 0x24f   : > { %v3748_v8 = vpop.f32.mrf.mxu1 }
 0x250   : > { %v1433_v38 = vadd.f32 %v3748_v8, %v1132_v26 }
 0x251   : > { %v1400_v5 = vpop.f32.mrf.mxu1 }
 0x252   : > { %v1431_v63 = vadd.f32 %v1400_v5, %v1124_v27 }
 0x253   : > { %v3749_v17 = vpop.f32.mrf.mxu1 }
 0x254   : > { %v1434_v50 = vadd.f32 %v3749_v17, %v1135_v62 }
 0x255   : > { %v1403_v4 = vpop.f32.mrf.mxu1 }
 0x256   : > { %v3772_v56 = vpop.f32.mrf.mxu0 }
 0x257   : > { %v4997_v42 = vpop.f32.mrf.mxu1 }
 0x258   : > { %v1674_v19 = vpop.f32.mrf.mxu0  ;;  %v1437_v11 = vadd.f32 %v4997_v42, %v1148_v14 }
 0x259   : > { %v1416_v44 = vpop.f32.mrf.mxu1 }
 0x25a   : > { %v3773_v61 = vpop.f32.mrf.mxu0  ;;  %v1435_v5 = vadd.f32 %v1416_v44, %v1140_v60 }
 0x25b   : > { %v3753_v28 = vpop.f32.mrf.mxu1 }
 0x25c   : > { %v1677_v55 = vpop.f32.mrf.mxu0  ;;  %v1438_v34 = vadd.f32 %v3753_v28, %v1151_v10 }
 0x25d   : > { %v4999_v54 = vpop.f32.mrf.mxu1 }
 0x25e   : > { %v5001_v40 = vpop.f32.mrf.mxu0 }
 0x25f   : > { %v1711_v16 = vadd.f32 %v5001_v40, %v1437_v11 }
 0x260   : > { %v1690_v24 = vpop.f32.mrf.mxu0 }
 0x262   : > { %v5003_v45 = vpop.f32.mrf.mxu0 }
 0x263   : > { %v1712_v44 = vadd.f32 %v5003_v45, %v1438_v34  ;;  %v3481_v45 = vld [vmem:[%s5119_s6] ss:$0 sm:$0xff] }
 0x264   : > { %v5005_v25 = vpop.f32.mrf.mxu0 }
 0x26f   : > { %v3796_v49 = vpop.f32.mrf.mxu1 }
 0x271   : > { %v1836_v52 = vpop.f32.mrf.mxu1 }
 0x273   : > { %v3797_v22 = vpop.f32.mrf.mxu1 }
 0x275   : > { %v1839_v39 = vpop.f32.mrf.mxu1 }
 0x277   : > { %v3820_v2 = vpop.f32.mrf.mxu0  ;;  %v5007_v29 = vpop.f32.mrf.mxu1 }
 0x278   : > { %5156 = vst [vmem:[#allocation17_spill] sm:$0xff] %v5007_v29 }
 0x279   : > { %v2118_v31 = vpop.f32.mrf.mxu0  ;;  %v1852_v32 = vpop.f32.mrf.mxu1 }
 0x27b   : > { %v3821_v23 = vpop.f32.mrf.mxu0  ;;  %v5009_v33 = vpop.f32.mrf.mxu1 }
 0x27c   : > { %5157 = vst [vmem:[#allocation18_spill] sm:$0xff] %v5009_v33  ;;  %v1708_v33 = vadd.f32 %v3773_v61, %v1434_v50 }
 0x27d   : > { %v2121_v35 = vpop.f32.mrf.mxu0  ;;  %v5011_v18 = vpop.f32.mrf.mxu1 }
 0x27e   : > { %5158 = vst [vmem:[#allocation19_spill] sm:$0xff] %v5011_v18  ;;  %v1870_v51 = vadd.f32 %v3797_v22, %v1708_v33 }
 0x27f   : > { %v5013_v21 = vpop.f32.mrf.mxu0 }
 0x280   : > { %5159 = vst [vmem:[#allocation20_spill] sm:$0xff] %v5013_v21  ;;  %v1707_v21 = vadd.f32 %v3772_v56, %v1433_v38  ;;  %v2152_v56 = vadd.f32 %v3821_v23, %v1870_v51 }
 0x281   : > { %v5015_v47 = vpop.f32.mrf.mxu0 }
 0x282   : > { %5160 = vst [vmem:[#allocation21_spill] sm:$0xff] %v5015_v47  ;;  %v1432_v47 = vadd.f32 %v1403_v4, %v1127_v41  ;;  %v1869_v29 = vadd.f32 %v3796_v49, %v1707_v21  ;;  %v1709_v49 = vadd.f32 %v1690_v24, %v1435_v5 }
 0x283   : > { %v5017_v57 = vpop.f32.mrf.mxu0  ;;  %v5165_v23 = vld [vmem:[#allocation18_spill] sm:$0xff] }
 0x284   : > { %5161 = vst [vmem:[#allocation22_spill] sm:$0xff] %v5017_v57  ;;  %v1705_v57 = vadd.f32 %v1674_v19, %v1431_v63  ;;  %v1706_v3 = vadd.f32 %v1677_v55, %v1432_v47  ;;  %v2151_v6 = vadd.f32 %v3820_v2, %v1869_v29  ;;  %v1143_v19 = vadd.f32 %v4995_v7, %v4993_v46 }
 0x285   : > { %v5019_v48 = vpop.f32.mrf.mxu0  ;;  %v1871_v29 = vadd.f32 %v1852_v32, %v1709_v49  ;;  %v1874_v33 = vadd.f32 %v5165_v23, %v1712_v44  ;;  %v5167_v32 = vld [vmem:[#allocation19_spill] sm:$0xff] }
 0x286   : > { %5162 = vst [vmem:[#allocation23_spill] sm:$0xff] %v5019_v48  ;;  %v1868_v17 = vadd.f32 %v1839_v39, %v1706_v3  ;;  %v1436_v9 = vadd.f32 %v4999_v54, %v1143_v19 }
 0x288   : > { %v1710_v28 = vadd.f32 %v5005_v25, %v1436_v9 }
 0x289   : > { %v5166_v54 = vld [vmem:[#allocation21_spill] sm:$0xff] }
 0x28d   : > { %v5170_v62 = vld [vmem:[#allocation23_spill] sm:$0xff] }
 0x290   : > { %v3844_v36 = vpop.f32.mrf.mxu1 }
 0x291   : > { %v2426_v61 = vadd.f32 %v3844_v36, %v2151_v6  ;;  %v2153_v36 = vadd.f32 %v5166_v54, %v1871_v29 }
 0x292   : > { %v2393_v20 = vpop.f32.mrf.mxu1 }
 0x294   : > { %v3845_v53 = vpop.f32.mrf.mxu1 }
 0x295   : > { %v2427_v43 = vadd.f32 %v3845_v53, %v2152_v56 }
 0x296   : > { %v2396_v58 = vpop.f32.mrf.mxu1 }
 0x297   : > { %v3868_v59 = vpop.f32.mrf.mxu0 }
 0x298   : > { %v5021_v30 = vpop.f32.mrf.mxu1  ;;  %v2588_v22 = vadd.f32 %v3868_v59, %v2426_v61 }
 0x299   : > { %5163 = vst [vmem:[#allocation24_spill] sm:$0xff] %v5021_v30  ;;  %v2555_v12 = vpop.f32.mrf.mxu0  ;;  %v1867_v30 = vadd.f32 %v1836_v52, %v1705_v57  ;;  %v2150_v52 = vadd.f32 %v2121_v35, %v1868_v17  ;;  %v5168_v57 = vld [vmem:[#allocation20_spill] sm:$0xff] }
 0x29a   : > { %v2409_v0 = vpop.f32.mrf.mxu1 }
 0x29b   : > { %v3869_v13 = vpop.f32.mrf.mxu0  ;;  %v2149_v1 = vadd.f32 %v2118_v31, %v1867_v30  ;;  %v2425_v46 = vadd.f32 %v2396_v58, %v2150_v52  ;;  %v5164_v31 = vld [vmem:[#allocation17_spill] sm:$0xff]  ;;  %v5169_v58 = vld [vmem:[#allocation22_spill] sm:$0xff] }
 0x29c   : > { %v3849_v48 = vpop.f32.mrf.mxu1  ;;  %v2589_v7 = vadd.f32 %v3869_v13, %v2427_v43  ;;  %v1873_v24 = vadd.f32 %v5164_v31, %v1711_v16  ;;  %v2156_v25 = vadd.f32 %v5169_v58, %v1874_v33 }
 0x29d   : > { %v2558_v18 = vpop.f32.mrf.mxu0  ;;  %v2424_v4 = vadd.f32 %v2393_v20, %v2149_v1  ;;  %v1872_v20 = vadd.f32 %v5167_v32, %v1710_v28 }
 0x29e   : > { %v2412_v15 = vpop.f32.mrf.mxu1  ;;  %v2587_v40 = vadd.f32 %v2558_v18, %v2425_v46  ;;  %v2155_v53 = vadd.f32 %v5168_v57, %v1873_v24  ;;  %v2431_v60 = vadd.f32 %v3849_v48, %v2156_v25  ;;  %v3498_v24 = vld [vmem:[%s5122_s9] ss:$0 sm:$0xff] }
 0x29f   : > { %v3872_v8 = vpop.f32.mrf.mxu0  ;;  %v2586_v37 = vadd.f32 %v2555_v12, %v2424_v4  ;;  %v2428_v12 = vadd.f32 %v2409_v0, %v2153_v36  ;;  %v2154_v63 = vadd.f32 %v5170_v62, %v1872_v20 }
 0x2a0   : > { %v5171_v18 = vld [vmem:[#allocation24_spill] sm:$0xff] }
 0x2a1   : > { %v2571_v39 = vpop.f32.mrf.mxu0  ;;  %v2430_v38 = vadd.f32 %v5171_v18, %v2155_v53  ;;  %v2429_v1 = vadd.f32 %v2412_v15, %v2154_v63 }
 0x2a2   : > { %v2590_v3 = vadd.f32 %v2571_v39, %v2428_v12 }
 0x2a3   : > { %v3873_v59 = vpop.f32.mrf.mxu0  ;;  %v2592_v14 = vadd.f32 %v3872_v8, %v2430_v38 }
 0x2a4   : > { %v2593_v17 = vadd.f32 %v3873_v59, %v2431_v60 }
 0x2a5   : > { %v2574_v10 = vpop.f32.mrf.mxu0 }
 0x2a6   : > { %v2591_v61 = vadd.f32 %v2574_v10, %v2429_v1 }
 0x2b0   : > { %v3892_v55 = vpop.f32.mrf.mxu1 }
 0x2b1   : > { %v2870_v35 = vadd.f32 %v3892_v55, %v2588_v22 }
 0x2b2   : > { %v2837_v2 = vpop.f32.mrf.mxu1 }
 0x2b3   : > { %v2868_v42 = vadd.f32 %v2837_v2, %v2586_v37  ;;  %v2885_v41 = vadd.f32 %v3481_v45, %v2870_v35 }
 0x2b4   : > { %v3893_v21 = vpop.f32.mrf.mxu1 }
 0x2b5   : > { %v2871_v47 = vadd.f32 %v3893_v21, %v2589_v7  ;;  %v2883_v27 = vadd.f32 %v3481_v45, %v2868_v42  ;;  %v2893_v19 = vmax.f32 %v2885_v41, 0.0 }
 0x2b6   : > { %v2840_v30 = vpop.f32.mrf.mxu1 }
 0x2b7   : > { %v2886_v26 = vadd.f32 %v3481_v45, %v2871_v47  ;;  %v2869_v13 = vadd.f32 %v2840_v30, %v2587_v40  ;;  %v2891_v56 = vmax.f32 %v2883_v27, 0.0 }
 0x2b8   : > { %v3896_v50 = vpop.f32.mrf.mxu1 }
 0x2b9   : > { %v2884_v51 = vadd.f32 %v3481_v45, %v2869_v13  ;;  %v2894_v6 = vmax.f32 %v2886_v26, 0.0  ;;  %v2874_v11 = vadd.f32 %v3896_v50, %v2592_v14 }
 0x2ba   : > { %v2853_v5 = vpop.f32.mrf.mxu1 }
 0x2bb   : > { %v2892_v0 = vmax.f32 %v2884_v51, 0.0  ;;  %v2872_v4 = vadd.f32 %v2853_v5, %v2590_v3  ;;  %v2900_v52 = vpack.c.bf16 %v2894_v6, %v2893_v19  ;;  %v2889_v15 = vadd.f32 %v3481_v45, %v2874_v11 }
 0x2bc   : > { %v3897_v34 = vpop.f32.mrf.mxu1 }
 0x2bd   : > { %v2875_v55 = vadd.f32 %v3897_v34, %v2593_v17  ;;  %v2899_v49 = vpack.c.bf16 %v2892_v0, %v2891_v56  ;;  %v2887_v48 = vadd.f32 %v3481_v45, %v2872_v4  ;;  %v2897_v39 = vmax.f32 %v2889_v15, 0.0 }
 0x2be   : > { %v2856_v43 = vpop.f32.mrf.mxu1 }
 0x2bf   : > { %v2890_v37 = vadd.f32 %v3481_v45, %v2875_v55  ;;  %v2873_v9 = vadd.f32 %v2856_v43, %v2591_v61  ;;  %3938 = vmatprep.mubr.bf16.mxu1 %v2899_v49  ;;  %v2895_v44 = vmax.f32 %v2887_v48, 0.0 }
 0x2c0   : > { %3939 = vmatmul.mubr.bf16.vlgmr.msra.gmra.mxu1 %v2900_v52 }
 0x2c1   : > { %v2888_v8 = vadd.f32 %v3481_v45, %v2873_v9  ;;  %v2898_v16 = vmax.f32 %v2890_v37, 0.0 }
 0x2c3   : > { %v2896_v22 = vmax.f32 %v2888_v8, 0.0  ;;  %v2902_v29 = vpack.c.bf16 %v2898_v16, %v2897_v39 }
 0x2c5   : > { %v2901_v2 = vpack.c.bf16 %v2896_v22, %v2895_v44 }
 0x2c6   : > { %v3916_v46 = vpop.f32.mrf.mxu0 }
 0x2c7   : > { %3942 = vmatprep.mubr.bf16.mxu1 %v2901_v2 }
 0x2c8   : > { %3943 = vmatmul.mubr.bf16.gmra.mxu1 %v2902_v29  ;;  %v3021_v7 = vpop.f32.mrf.mxu0 }
 0x2ca   : > { %v3917_v42 = vpop.f32.mrf.mxu0 }
 0x2cc   : > { %v3024_v28 = vpop.f32.mrf.mxu0 }
 0x2ce   : > { %v3920_v33 = vpop.f32.mrf.mxu0 }
 0x2d0   : > { %v3037_v47 = vpop.f32.mrf.mxu0 }
 0x2d2   : > { %v3921_v59 = vpop.f32.mrf.mxu0 }
 0x2d4   : > { %v3040_v63 = vpop.f32.mrf.mxu0 }
 0x380   : > { %v3940_v31 = vpop.f32.mrf.mxu1 }
 0x381   : > { %v3143_v23 = vadd.f32 %v3940_v31, %v3916_v46 }
 0x382   : > { %v3134_v35 = vpop.f32.mrf.mxu1 }
 0x383   : > { %v3174_v21 = vadd.f32 %v3498_v24, %v3143_v23  ;;  %v3135_v54 = vadd.f32 %v3134_v35, %v3021_v7 }
 0x384   : > { %v3941_v36 = vpop.f32.mrf.mxu1 }
 0x385   : > { %3182 = vst [vmem:[%s5053_s11 + $0x10] sm:$0xff] %v3174_v21  ;;  %v3172_v40 = vadd.f32 %v3498_v24, %v3135_v54  ;;  %v3146_v45 = vadd.f32 %v3941_v36, %v3917_v42 }
 0x386   : > { %v3137_v32 = vpop.f32.mrf.mxu1 }
 0x387   : > { %3180 = vst [vmem:[%s5053_s11] sm:$0xff] %v3172_v40  ;;  %v3175_v20 = vadd.f32 %v3498_v24, %v3146_v45  ;;  %v3138_v57 = vadd.f32 %v3137_v32, %v3024_v28 }
 0x388   : > { %v3944_v53 = vpop.f32.mrf.mxu1 }
 0x389   : > { %3183 = vst [vmem:[%s5053_s11 + $0x18] sm:$0xff] %v3175_v20  ;;  %v3173_v58 = vadd.f32 %v3498_v24, %v3138_v57  ;;  %v3159_v25 = vadd.f32 %v3944_v53, %v3920_v33 }
 0x38a   : > { %v3150_v30 = vpop.f32.mrf.mxu1 }
 0x38b   : > { %3181 = vst [vmem:[%s5053_s11 + $0x8] sm:$0xff] %v3173_v58  ;;  %v3178_v12 = vadd.f32 %v3498_v24, %v3159_v25  ;;  %v3151_v27 = vadd.f32 %v3150_v30, %v3037_v47 }
 0x38c   : > { %v3945_v26 = vpop.f32.mrf.mxu1 }
 0x38d   : > { %3186 = vst [vmem:[%s5053_s11 + $0x30] sm:$0xff] %v3178_v12  ;;  %v3176_v13 = vadd.f32 %v3498_v24, %v3151_v27  ;;  %v3162_v62 = vadd.f32 %v3945_v26, %v3921_v59 }
 0x38e   : > { %v3153_v18 = vpop.f32.mrf.mxu1 }
 0x38f   : > { %3184 = vst [vmem:[%s5053_s11 + $0x20] sm:$0xff] %v3176_v13  ;;  %v3179_v38 = vadd.f32 %v3498_v24, %v3162_v62  ;;  %v3154_v41 = vadd.f32 %v3153_v18, %v3040_v63 }
 0x391   : > { %3187 = vst [vmem:[%s5053_s11 + $0x38] sm:$0xff] %v3179_v38  ;;  %v3177_v50 = vadd.f32 %v3498_v24, %v3154_v41 }
 0x393   : > { %3185 = vst [vmem:[%s5053_s11 + $0x28] sm:$0xff] %v3177_v50 }
 0x394   : > { %4299 = shalt.err (!%p4296_p5)
}
 0x395   : > { %s4300_s25 = scalar_lea.hbm %s5068_s19, 1024  ;;  %s4304_s5 = scalar_lea.hbm %s5123_s10, 2048 }
 0x396   : > { %p4301_p3 = scmp.ne.s32.totalorder %s5068_s19, %s4300_s25  ;;  %p4305_p8 = scmp.lt.s32.totalorder %s5068_s19, %s5123_s10 }
 0x397   : > { %p4306_p9 = scmp.lt.s32.totalorder %s4304_s5, %s4300_s25 }
 0x398   : > { %p4302_p4 = pnand %p4301_p3, %p5172_p12 }
 0x399   : > { %p4307_p2 = por %p4306_p9, %p4305_p8 }
 0x39a   : > { %p4303_p6 = pneg %p4302_p4 }
 0x39c   : > { %p4308_p10 = pnand %p4307_p2, %p4303_p6 }
 0x39e   : > { %4311 = shalt.err (!%p4308_p10)
}
 0x39f   : > { %s4371_s18 = smov 128   ;;  %s4372_s3 = smov 8  }
 0x3a0   : > { %3964 = dma.vmem_to_hbm [thread:$0]  (%p5172_p12), %s5062_s8, 1024, %s5068_s19, %s3189_s21, %s4371_s18, %s4371_s18, %s4372_s3  }
 0x3a1 PF: > { %s3217_s17 = sand.u32 1, %s4346_s13   ;;  %p5173_p7 = scmp.ne.s32.totalorder %s5133_s20, 0 }
 0x3a2   : > { %p5174_p1 = scmp.ge.s32.totalorder %s4358_s16, 2  ;;  %s3218_s28 = scalar_lea.sflag [#allocation5], %s3217_s17 }
 0x3a4   : > { %p3984_p13 = pnand %p5174_p1, %p5173_p7 }
 0x3a6   : > { %p3985_p0 = pneg %p3984_p13 }
 0x3a8   : > { %4341 = dma.done.wait (%p3985_p0), %s3218_s28, 1024  }
 0x3a9   : > { %4343 = vsyncadd (%p3985_p0), %s3218_s28, 4294966272  ;;  %p25_p11 = scmp.ge.s32.totalorder %s4528_s27, 4   ;;  %s5175_s13 = smov %s4350_s14 }
 0x3aa   : > { %s5176_s14 = smov %s4354_s15  ;;  %s5177_s15 = smov %s4544_s12 }
 0x3ab   : > { %s5178_s16 = smov %s4528_s27  ;;  %27 = sbr.rel (!%p25_p11) target bundleno = 12 (0xc), region = 132 }
 0x3b0   :  { %3223 = vsyncpa [#allocation4], 1 }
 0x3b1   :  { %3225 = vsyncpa [#allocation4 + $0x1], 1 }
 0x3b2   :  { %3226 = vsyncpa [#allocation7], 1 }
 0x3b3   :  { %3227 = vsyncpa [#allocation10], 1 }
 0x3b4   :  { %3228 = vsyncpa [#allocation5], 1 }
 0x3b5   :  { %3230 = vsyncpa [#allocation5 + $0x1], 1 }

</bundles_post_ra>
